<compile_context>
chip_gen: v7x
topology: tpu7x:2x2x1
jax: 0.10.0
libtpu: 0.0.40
codegen_flags: <defaults>
</compile_context>

<pallas_src>
import functools

import jax
import jax.numpy as jnp
from jax.experimental import pallas as pl
from jax.experimental.pallas import tpu as pltpu


def _conv_bn_relu_kernel(xp_ref, w_ref, scale_ref, bias_ref, o_ref, *,
                         kh, kw, stride, h_out, w_out):
    """Fused conv (kh*kw shifted matmuls) + folded BN + ReLU for one image.

    xp_ref:    (Hp, Wp, C_in)       padded NHWC input tile (compute dtype)
    w_ref:     (kh*kw, C_in, tn)    conv weight taps       (compute dtype)
    scale_ref: (1, tn)              gamma / sqrt(var + eps)          (f32)
    bias_ref:  (1, tn)              beta - mean * scale              (f32)
    o_ref:     (h_out, w_out, tn)   output tile (lane-dense channels)
    """
    c_in = xp_ref.shape[-1]
    tn = o_ref.shape[-1]
    acc = jnp.zeros((h_out * w_out, tn), dtype=jnp.float32)
    for i in range(kh):              # statically unrolled: kh*kw MXU matmuls
        for j in range(kw):
            if stride == 1:
                patch = xp_ref[i:i + h_out, j:j + w_out, :]
            else:
                # TODO(synk): stride > 1 uses strided VMEM loads; less tuned
                # than the stride-1 path exercised by the demo.
                patch = xp_ref[pl.ds(i, h_out, stride),
                               pl.ds(j, w_out, stride), :]
            patch = patch.reshape(h_out * w_out, c_in)
            acc = acc + jnp.dot(patch, w_ref[i * kw + j],
                                preferred_element_type=jnp.float32)
    y = acc * scale_ref[...] + bias_ref[...]        # folded BatchNorm (eval)
    y = jnp.maximum(y, 0.0)                         # ReLU
    o_ref[...] = y.reshape(h_out, w_out, tn).astype(o_ref.dtype)


def basic_conv2d_nhwc(x_nhwc, weight, gamma, beta, running_mean, running_var,
                      *, stride=1, padding=1, eps=1e-3,
                      compute_dtype=jnp.bfloat16, tn=128):
    """Core NHWC path. weight is OIHW (PyTorch layout). Returns NHWC, un-padded C_out."""
    N, H, W, C_in = x_nhwc.shape
    C_out, _, kh, kw = weight.shape
    H_out = (H + 2 * padding - kh) // stride + 1
    W_out = (W + 2 * padding - kw) // stride + 1
    Hp, Wp = H + 2 * padding, W + 2 * padding
    C_out_pad = ((C_out + tn - 1) // tn) * tn       # lane-dense output channels

    # Spatial zero-pad once; cast matmul operands to the compute dtype (bf16).
    xp = jnp.pad(x_nhwc, ((0, 0), (padding, padding), (padding, padding),
                          (0, 0))).astype(compute_dtype)

    # weight (C_out, C_in, kh, kw) -> per-tap matrices (kh*kw, C_in, C_out_pad)
    w = weight.transpose(2, 3, 1, 0).reshape(kh * kw, C_in, C_out)
    w = jnp.pad(w, ((0, 0), (0, 0), (0, C_out_pad - C_out))).astype(compute_dtype)

    # Fold BatchNorm (eval) into per-channel scale/bias, padded to C_out_pad.
    scale = (gamma / jnp.sqrt(running_var + eps)).astype(jnp.float32)
    bias = (beta - running_mean * scale).astype(jnp.float32)
    scale2d = jnp.pad(scale, (0, C_out_pad - C_out)).reshape(1, C_out_pad)
    bias2d = jnp.pad(bias, (0, C_out_pad - C_out)).reshape(1, C_out_pad)

    kernel = functools.partial(_conv_bn_relu_kernel, kh=kh, kw=kw,
                               stride=stride, h_out=H_out, w_out=W_out)

    out_dtype = x_nhwc.dtype
    itemsize_in = jnp.dtype(compute_dtype).itemsize
    itemsize_out = jnp.dtype(out_dtype).itemsize
    flops = 2 * N * H_out * W_out * C_in * kh * kw * C_out_pad
    bytes_accessed = (N * Hp * Wp * C_in * itemsize_in
                      + kh * kw * C_in * C_out_pad * itemsize_in
                      + 2 * C_out_pad * 4
                      + N * H_out * W_out * C_out_pad * itemsize_out)

    out = pl.pallas_call(
        kernel,
        out_shape=jax.ShapeDtypeStruct((N, H_out, W_out, C_out_pad), out_dtype),
        grid_spec=pltpu.PrefetchScalarGridSpec(
            num_scalar_prefetch=0,
            grid=(N, C_out_pad // tn),
            in_specs=[
                # whole padded image per batch step; input read from HBM once
                pl.BlockSpec((None, Hp, Wp, C_in), lambda n, co: (n, 0, 0, 0)),
                # weight taps for this C_out tile (constant over batch axis)
                pl.BlockSpec((kh * kw, C_in, tn), lambda n, co: (0, 0, co)),
                pl.BlockSpec((1, tn), lambda n, co: (0, co)),
                pl.BlockSpec((1, tn), lambda n, co: (0, co)),
            ],
            out_specs=pl.BlockSpec((None, H_out, W_out, tn),
                                   lambda n, co: (n, 0, 0, co)),
        ),
        compiler_params=pltpu.CompilerParams(
            dimension_semantics=("parallel", "parallel")),
        cost_estimate=pl.CostEstimate(flops=flops, transcendentals=0,
                                      bytes_accessed=bytes_accessed),
    )(xp, w, scale2d, bias2d)

    return out[..., :C_out]


def basic_conv2d(x_nchw, weight, gamma, beta, running_mean, running_var,
                 *, stride=1, padding=1, eps=1e-3, compute_dtype=jnp.bfloat16):
    """PyTorch-parity wrapper (NCHW in/out). The NCHW<->NHWC transposes are
    boundary glue only; chain basic_conv2d_nhwc directly to avoid them."""
    x_nhwc = jnp.transpose(x_nchw, (0, 2, 3, 1))
    out_nhwc = basic_conv2d_nhwc(x_nhwc, weight, gamma, beta, running_mean,
                                 running_var, stride=stride, padding=padding,
                                 eps=eps, compute_dtype=compute_dtype)
    return jnp.transpose(out_nhwc, (0, 3, 1, 2))


def _reference(x, weight, gamma, beta, rm, rv, *, stride=1, padding=1, eps=1e-3):
    y = jax.lax.conv_general_dilated(
        x, weight, window_strides=(stride, stride),
        padding=[(padding, padding), (padding, padding)],
        dimension_numbers=("NCHW", "OIHW", "NCHW"))
    s = (gamma / jnp.sqrt(rv + eps)).reshape(1, -1, 1, 1)
    b = (beta - rm * gamma / jnp.sqrt(rv + eps)).reshape(1, -1, 1, 1)
    return jnp.maximum(y * s + b, 0.0)


if __name__ == "__main__":
    # Small shapes consistent with BasicConv2d(in_channels=4, out_channels=8,
    # kernel_size=3, padding=1) applied to x of shape (2, 4, 16, 16).
    N, C_in, H, W = 2, 4, 16, 16
    C_out, kh, kw = 8, 3, 3

    key = jax.random.PRNGKey(0)
    kx, kw_, kg, kb, km, kv = jax.random.split(key, 6)

    x = jax.random.normal(kx, (N, C_in, H, W), dtype=jnp.float32)
    weight = 0.1 * jax.random.normal(kw_, (C_out, C_in, kh, kw), dtype=jnp.float32)
    gamma = jax.random.uniform(kg, (C_out,), minval=0.5, maxval=1.5,
                               dtype=jnp.float32)
    beta = 0.1 * jax.random.normal(kb, (C_out,), dtype=jnp.float32)
    running_mean = 0.1 * jax.random.normal(km, (C_out,), dtype=jnp.float32)
    running_var = jax.random.uniform(kv, (C_out,), minval=0.5, maxval=1.5,
                                     dtype=jnp.float32)

    out = basic_conv2d(x, weight, gamma, beta, running_mean, running_var,
                       stride=1, padding=1, eps=1e-3)
    out = jax.block_until_ready(out)

    ref = _reference(x, weight, gamma, beta, running_mean, running_var,
                     stride=1, padding=1, eps=1e-3)
    assert out.shape == (N, C_out, H, W), out.shape
    # bf16 matmul operands (f32 accumulation) -> tolerance loosened vs f32.
    assert jnp.allclose(out, ref, atol=5e-2, rtol=5e-2), (
        "mismatch vs reference, max abs err = "
        f"{float(jnp.max(jnp.abs(out - ref)))}")

    print("KERNEL_OK")
</pallas_src>

<mosaic_0001>
module attributes {stable_mosaic.version = 11 : i64} {
  func.func @_conv_bn_relu_kernel(%arg0: i32, %arg1: i32, %arg2: memref<1x18x18x4xbf16, #tpu.memory_space<vmem>>, %arg3: memref<9x4x128xbf16, #tpu.memory_space<vmem>>, %arg4: memref<1x128xf32, #tpu.memory_space<vmem>>, %arg5: memref<1x128xf32, #tpu.memory_space<vmem>>, %arg6: memref<1x16x16x128xf32, #tpu.memory_space<vmem>>) attributes {dimension_semantics = [#tpu.dimension_semantics<parallel>, #tpu.dimension_semantics<parallel>], iteration_bounds = array<i64: 2, 1>, scalar_prefetch = 0 : i64, scratch_operands = 0 : i64, tpu.core_type = #tpu.core_type<tc>, window_params = [{transform_indices = @transform_0, window_bounds = array<i64: 1, 18, 18, 4>}, {transform_indices = @transform_1, window_bounds = array<i64: 9, 4, 128>}, {transform_indices = @transform_2, window_bounds = array<i64: 1, 128>}, {transform_indices = @transform_3, window_bounds = array<i64: 1, 128>}, {transform_indices = @transform_4, window_bounds = array<i64: 1, 16, 16, 128>}]} {
    %cst = arith.constant 0.000000e+00 : f32
    %0 = vector.broadcast %cst : f32 to vector<256x128xf32>
    %c0 = arith.constant 0 : index
    %c0_0 = arith.constant 0 : index
    %c0_1 = arith.constant 0 : index
    %c0_2 = arith.constant 0 : index
    %1 = vector.load %arg2[%c0, %c0_0, %c0_1, %c0_2] : memref<1x18x18x4xbf16, #tpu.memory_space<vmem>>, vector<1x16x16x4xbf16>
    %2 = vector.shape_cast %1 : vector<1x16x16x4xbf16> to vector<16x16x4xbf16>
    %3 = vector.shape_cast %2 : vector<16x16x4xbf16> to vector<256x4xbf16>
    %c0_3 = arith.constant 0 : index
    %c0_4 = arith.constant 0 : index
    %c0_5 = arith.constant 0 : index
    %4 = vector.load %arg3[%c0_3, %c0_4, %c0_5] : memref<9x4x128xbf16, #tpu.memory_space<vmem>>, vector<1x4x128xbf16>
    %5 = vector.shape_cast %4 : vector<1x4x128xbf16> to vector<4x128xbf16>
    %cst_6 = arith.constant dense<0.000000e+00> : vector<256x128xf32>
    %6 = tpu.matmul %3, %5, %cst_6 {dimension_numbers = #tpu.dot_dimension_numbers<[1], [0], [0], [1], [0, 0, 1, 1], [], []>} : vector<256x4xbf16>, vector<4x128xbf16>, vector<256x128xf32> -> vector<256x128xf32>
    %7 = arith.addf %0, %6 : vector<256x128xf32>
    %c0_7 = arith.constant 0 : index
    %c0_8 = arith.constant 0 : index
    %c1 = arith.constant 1 : index
    %c0_9 = arith.constant 0 : index
    %8 = vector.load %arg2[%c0_7, %c0_8, %c1, %c0_9] : memref<1x18x18x4xbf16, #tpu.memory_space<vmem>>, vector<1x16x16x4xbf16>
    %9 = vector.shape_cast %8 : vector<1x16x16x4xbf16> to vector<16x16x4xbf16>
    %10 = vector.shape_cast %9 : vector<16x16x4xbf16> to vector<256x4xbf16>
    %c1_10 = arith.constant 1 : index
    %c0_11 = arith.constant 0 : index
    %c0_12 = arith.constant 0 : index
    %11 = vector.load %arg3[%c1_10, %c0_11, %c0_12] : memref<9x4x128xbf16, #tpu.memory_space<vmem>>, vector<1x4x128xbf16>
    %12 = vector.shape_cast %11 : vector<1x4x128xbf16> to vector<4x128xbf16>
    %cst_13 = arith.constant dense<0.000000e+00> : vector<256x128xf32>
    %13 = tpu.matmul %10, %12, %cst_13 {dimension_numbers = #tpu.dot_dimension_numbers<[1], [0], [0], [1], [0, 0, 1, 1], [], []>} : vector<256x4xbf16>, vector<4x128xbf16>, vector<256x128xf32> -> vector<256x128xf32>
    %14 = arith.addf %7, %13 : vector<256x128xf32>
    %c0_14 = arith.constant 0 : index
    %c0_15 = arith.constant 0 : index
    %c2 = arith.constant 2 : index
    %c0_16 = arith.constant 0 : index
    %15 = vector.load %arg2[%c0_14, %c0_15, %c2, %c0_16] : memref<1x18x18x4xbf16, #tpu.memory_space<vmem>>, vector<1x16x16x4xbf16>
    %16 = vector.shape_cast %15 : vector<1x16x16x4xbf16> to vector<16x16x4xbf16>
    %17 = vector.shape_cast %16 : vector<16x16x4xbf16> to vector<256x4xbf16>
    %c2_17 = arith.constant 2 : index
    %c0_18 = arith.constant 0 : index
    %c0_19 = arith.constant 0 : index
    %18 = vector.load %arg3[%c2_17, %c0_18, %c0_19] : memref<9x4x128xbf16, #tpu.memory_space<vmem>>, vector<1x4x128xbf16>
    %19 = vector.shape_cast %18 : vector<1x4x128xbf16> to vector<4x128xbf16>
    %cst_20 = arith.constant dense<0.000000e+00> : vector<256x128xf32>
    %20 = tpu.matmul %17, %19, %cst_20 {dimension_numbers = #tpu.dot_dimension_numbers<[1], [0], [0], [1], [0, 0, 1, 1], [], []>} : vector<256x4xbf16>, vector<4x128xbf16>, vector<256x128xf32> -> vector<256x128xf32>
    %21 = arith.addf %14, %20 : vector<256x128xf32>
    %c0_21 = arith.constant 0 : index
    %c1_22 = arith.constant 1 : index
    %c0_23 = arith.constant 0 : index
    %c0_24 = arith.constant 0 : index
    %22 = vector.load %arg2[%c0_21, %c1_22, %c0_23, %c0_24] : memref<1x18x18x4xbf16, #tpu.memory_space<vmem>>, vector<1x16x16x4xbf16>
    %23 = vector.shape_cast %22 : vector<1x16x16x4xbf16> to vector<16x16x4xbf16>
    %24 = vector.shape_cast %23 : vector<16x16x4xbf16> to vector<256x4xbf16>
    %c3 = arith.constant 3 : index
    %c0_25 = arith.constant 0 : index
    %c0_26 = arith.constant 0 : index
    %25 = vector.load %arg3[%c3, %c0_25, %c0_26] : memref<9x4x128xbf16, #tpu.memory_space<vmem>>, vector<1x4x128xbf16>
    %26 = vector.shape_cast %25 : vector<1x4x128xbf16> to vector<4x128xbf16>
    %cst_27 = arith.constant dense<0.000000e+00> : vector<256x128xf32>
    %27 = tpu.matmul %24, %26, %cst_27 {dimension_numbers = #tpu.dot_dimension_numbers<[1], [0], [0], [1], [0, 0, 1, 1], [], []>} : vector<256x4xbf16>, vector<4x128xbf16>, vector<256x128xf32> -> vector<256x128xf32>
    %28 = arith.addf %21, %27 : vector<256x128xf32>
    %c0_28 = arith.constant 0 : index
    %c1_29 = arith.constant 1 : index
    %c1_30 = arith.constant 1 : index
    %c0_31 = arith.constant 0 : index
    %29 = vector.load %arg2[%c0_28, %c1_29, %c1_30, %c0_31] : memref<1x18x18x4xbf16, #tpu.memory_space<vmem>>, vector<1x16x16x4xbf16>
    %30 = vector.shape_cast %29 : vector<1x16x16x4xbf16> to vector<16x16x4xbf16>
    %31 = vector.shape_cast %30 : vector<16x16x4xbf16> to vector<256x4xbf16>
    %c4 = arith.constant 4 : index
    %c0_32 = arith.constant 0 : index
    %c0_33 = arith.constant 0 : index
    %32 = vector.load %arg3[%c4, %c0_32, %c0_33] : memref<9x4x128xbf16, #tpu.memory_space<vmem>>, vector<1x4x128xbf16>
    %33 = vector.shape_cast %32 : vector<1x4x128xbf16> to vector<4x128xbf16>
    %cst_34 = arith.constant dense<0.000000e+00> : vector<256x128xf32>
    %34 = tpu.matmul %31, %33, %cst_34 {dimension_numbers = #tpu.dot_dimension_numbers<[1], [0], [0], [1], [0, 0, 1, 1], [], []>} : vector<256x4xbf16>, vector<4x128xbf16>, vector<256x128xf32> -> vector<256x128xf32>
    %35 = arith.addf %28, %34 : vector<256x128xf32>
    %c0_35 = arith.constant 0 : index
    %c1_36 = arith.constant 1 : index
    %c2_37 = arith.constant 2 : index
    %c0_38 = arith.constant 0 : index
    %36 = vector.load %arg2[%c0_35, %c1_36, %c2_37, %c0_38] : memref<1x18x18x4xbf16, #tpu.memory_space<vmem>>, vector<1x16x16x4xbf16>
    %37 = vector.shape_cast %36 : vector<1x16x16x4xbf16> to vector<16x16x4xbf16>
    %38 = vector.shape_cast %37 : vector<16x16x4xbf16> to vector<256x4xbf16>
    %c5 = arith.constant 5 : index
    %c0_39 = arith.constant 0 : index
    %c0_40 = arith.constant 0 : index
    %39 = vector.load %arg3[%c5, %c0_39, %c0_40] : memref<9x4x128xbf16, #tpu.memory_space<vmem>>, vector<1x4x128xbf16>
    %40 = vector.shape_cast %39 : vector<1x4x128xbf16> to vector<4x128xbf16>
    %cst_41 = arith.constant dense<0.000000e+00> : vector<256x128xf32>
    %41 = tpu.matmul %38, %40, %cst_41 {dimension_numbers = #tpu.dot_dimension_numbers<[1], [0], [0], [1], [0, 0, 1, 1], [], []>} : vector<256x4xbf16>, vector<4x128xbf16>, vector<256x128xf32> -> vector<256x128xf32>
    %42 = arith.addf %35, %41 : vector<256x128xf32>
    %c0_42 = arith.constant 0 : index
    %c2_43 = arith.constant 2 : index
    %c0_44 = arith.constant 0 : index
    %c0_45 = arith.constant 0 : index
    %43 = vector.load %arg2[%c0_42, %c2_43, %c0_44, %c0_45] : memref<1x18x18x4xbf16, #tpu.memory_space<vmem>>, vector<1x16x16x4xbf16>
    %44 = vector.shape_cast %43 : vector<1x16x16x4xbf16> to vector<16x16x4xbf16>
    %45 = vector.shape_cast %44 : vector<16x16x4xbf16> to vector<256x4xbf16>
    %c6 = arith.constant 6 : index
    %c0_46 = arith.constant 0 : index
    %c0_47 = arith.constant 0 : index
    %46 = vector.load %arg3[%c6, %c0_46, %c0_47] : memref<9x4x128xbf16, #tpu.memory_space<vmem>>, vector<1x4x128xbf16>
    %47 = vector.shape_cast %46 : vector<1x4x128xbf16> to vector<4x128xbf16>
    %cst_48 = arith.constant dense<0.000000e+00> : vector<256x128xf32>
    %48 = tpu.matmul %45, %47, %cst_48 {dimension_numbers = #tpu.dot_dimension_numbers<[1], [0], [0], [1], [0, 0, 1, 1], [], []>} : vector<256x4xbf16>, vector<4x128xbf16>, vector<256x128xf32> -> vector<256x128xf32>
    %49 = arith.addf %42, %48 : vector<256x128xf32>
    %c0_49 = arith.constant 0 : index
    %c2_50 = arith.constant 2 : index
    %c1_51 = arith.constant 1 : index
    %c0_52 = arith.constant 0 : index
    %50 = vector.load %arg2[%c0_49, %c2_50, %c1_51, %c0_52] : memref<1x18x18x4xbf16, #tpu.memory_space<vmem>>, vector<1x16x16x4xbf16>
    %51 = vector.shape_cast %50 : vector<1x16x16x4xbf16> to vector<16x16x4xbf16>
    %52 = vector.shape_cast %51 : vector<16x16x4xbf16> to vector<256x4xbf16>
    %c7 = arith.constant 7 : index
    %c0_53 = arith.constant 0 : index
    %c0_54 = arith.constant 0 : index
    %53 = vector.load %arg3[%c7, %c0_53, %c0_54] : memref<9x4x128xbf16, #tpu.memory_space<vmem>>, vector<1x4x128xbf16>
    %54 = vector.shape_cast %53 : vector<1x4x128xbf16> to vector<4x128xbf16>
    %cst_55 = arith.constant dense<0.000000e+00> : vector<256x128xf32>
    %55 = tpu.matmul %52, %54, %cst_55 {dimension_numbers = #tpu.dot_dimension_numbers<[1], [0], [0], [1], [0, 0, 1, 1], [], []>} : vector<256x4xbf16>, vector<4x128xbf16>, vector<256x128xf32> -> vector<256x128xf32>
    %56 = arith.addf %49, %55 : vector<256x128xf32>
    %c0_56 = arith.constant 0 : index
    %c2_57 = arith.constant 2 : index
    %c2_58 = arith.constant 2 : index
    %c0_59 = arith.constant 0 : index
    %57 = vector.load %arg2[%c0_56, %c2_57, %c2_58, %c0_59] : memref<1x18x18x4xbf16, #tpu.memory_space<vmem>>, vector<1x16x16x4xbf16>
    %58 = vector.shape_cast %57 : vector<1x16x16x4xbf16> to vector<16x16x4xbf16>
    %59 = vector.shape_cast %58 : vector<16x16x4xbf16> to vector<256x4xbf16>
    %c8 = arith.constant 8 : index
    %c0_60 = arith.constant 0 : index
    %c0_61 = arith.constant 0 : index
    %60 = vector.load %arg3[%c8, %c0_60, %c0_61] : memref<9x4x128xbf16, #tpu.memory_space<vmem>>, vector<1x4x128xbf16>
    %61 = vector.shape_cast %60 : vector<1x4x128xbf16> to vector<4x128xbf16>
    %cst_62 = arith.constant dense<0.000000e+00> : vector<256x128xf32>
    %62 = tpu.matmul %59, %61, %cst_62 {dimension_numbers = #tpu.dot_dimension_numbers<[1], [0], [0], [1], [0, 0, 1, 1], [], []>} : vector<256x4xbf16>, vector<4x128xbf16>, vector<256x128xf32> -> vector<256x128xf32>
    %63 = arith.addf %56, %62 : vector<256x128xf32>
    %c0_63 = arith.constant 0 : index
    %c0_64 = arith.constant 0 : index
    %64 = vector.load %arg4[%c0_63, %c0_64] : memref<1x128xf32, #tpu.memory_space<vmem>>, vector<1x128xf32>
    %65 = vector.broadcast %64 : vector<1x128xf32> to vector<256x128xf32>
    %66 = arith.mulf %63, %65 : vector<256x128xf32>
    %c0_65 = arith.constant 0 : index
    %c0_66 = arith.constant 0 : index
    %67 = vector.load %arg5[%c0_65, %c0_66] : memref<1x128xf32, #tpu.memory_space<vmem>>, vector<1x128xf32>
    %68 = vector.broadcast %67 : vector<1x128xf32> to vector<256x128xf32>
    %69 = arith.addf %66, %68 : vector<256x128xf32>
    %cst_67 = arith.constant 0.000000e+00 : f32
    %70 = vector.broadcast %cst_67 : f32 to vector<256x128xf32>
    %71 = arith.maximumf %69, %70 : vector<256x128xf32>
    %72 = vector.shape_cast %71 : vector<256x128xf32> to vector<16x16x128xf32>
    %c0_68 = arith.constant 0 : index
    %c0_69 = arith.constant 0 : index
    %c0_70 = arith.constant 0 : index
    %c0_71 = arith.constant 0 : index
    %73 = vector.load %arg6[%c0_68, %c0_69, %c0_70, %c0_71] : memref<1x16x16x128xf32, #tpu.memory_space<vmem>>, vector<1x16x16x128xf32>
    %74 = vector.shape_cast %73 : vector<1x16x16x128xf32> to vector<16x16x128xf32>
    %75 = vector.shape_cast %72 : vector<16x16x128xf32> to vector<1x16x16x128xf32>
    tpu.vector_store %arg6[%c0_68, %c0_69, %c0_70, %c0_71], %75 {strides = array<i32>} : memref<1x16x16x128xf32, #tpu.memory_space<vmem>>, vector<1x16x16x128xf32>,
    return
  }
  func.func @transform_0(%arg0: i32, %arg1: i32) -> (i32, i32, i32, i32) {
    %c0_i32 = arith.constant 0 : i32
    %c0_i32_0 = arith.constant 0 : i32
    %c0_i32_1 = arith.constant 0 : i32
    %c0_i32_2 = arith.constant 0 : i32
    return %arg0, %c0_i32, %c0_i32_0, %c0_i32_1 : i32, i32, i32, i32
  }
  func.func @transform_1(%arg0: i32, %arg1: i32) -> (i32, i32, i32) {
    %c0_i32 = arith.constant 0 : i32
    %c0_i32_0 = arith.constant 0 : i32
    %c0_i32_1 = arith.constant 0 : i32
    return %c0_i32, %c0_i32_0, %arg1 : i32, i32, i32
  }
  func.func @transform_2(%arg0: i32, %arg1: i32) -> (i32, i32) {
    %c0_i32 = arith.constant 0 : i32
    %c0_i32_0 = arith.constant 0 : i32
    return %c0_i32, %arg1 : i32, i32
  }
  func.func @transform_3(%arg0: i32, %arg1: i32) -> (i32, i32) {
    %c0_i32 = arith.constant 0 : i32
    %c0_i32_0 = arith.constant 0 : i32
    return %c0_i32, %arg1 : i32, i32
  }
  func.func @transform_4(%arg0: i32, %arg1: i32) -> (i32, i32, i32, i32) {
    %c0_i32 = arith.constant 0 : i32
    %c0_i32_0 = arith.constant 0 : i32
    %c0_i32_1 = arith.constant 0 : i32
    return %arg0, %c0_i32, %c0_i32_0, %arg1 : i32, i32, i32, i32
  }
}

</mosaic_0001>

<bundles_post_ra>
// kernel: tpu_custom_call.1
= control target key start
LH: loop header
LB: loop body
LE: loop exit
PB: predicated region body
PF: predicated region fallthrough
CT: control target
= control target key end

     0   :  { %9 = vsyncpa [#allocation3], 0  ;;  %s8578_s0 = inlined_call_operand.vmem [shape: bf16[2,18,18,4], index: 0, kind: input, shape index: {}]   ;;  %s8579_s1 = inlined_call_operand.vmem [shape: bf16[9,4,128], index: 1, kind: input, shape index: {}]   ;;  %s8580_s2 = inlined_call_operand.vmem [shape: f32[1,128], index: 2, kind: input, shape index: {}]   ;;  %s8581_s3 = inlined_call_operand.vmem [shape: f32[1,128], index: 3, kind: input, shape index: {}]   ;;  %s8582_s4 = inlined_call_operand.hbm [shape: f32[2,16,16,128], index: 4, kind: output, shape index: {}]  }
   0x1   :  { %11 = vsyncpa [#allocation3 + $0x1], 0  ;;  %s6635_s15 = smov 0   ;;  %s6637_s16 = smov 0  }
   0x2   :  { %s6639_s17 = smov 0   ;;  %s6641_s18 = smov 0  }
   0x3   :  { %s6643_s19 = smov 0   ;;  %s6645_s20 = smov 0  }
   0x4 LB: > { %s5083_s21 = sadd.s32 4294967295, %s6605_s20   ;;  %s5084_s22 = sadd.s32 4294967294, %s6605_s20   ;;  %s6605_s20 = sphi %s6645_s20, %s17_s20   ;;  %s6601_s19 = sphi %s6643_s19, %s8656_s19   ;;  %s6597_s18 = sphi %s6641_s18, %s8655_s18   ;;  %s6593_s17 = sphi %s6639_s17, %s8654_s17   ;;  %s6589_s16 = sphi %s6637_s16, %s8653_s16   ;;  %s6585_s15 = sphi %s6635_s15, %s8652_s15  }
   0x5   : > { %s29_s23 = sadd.s32 1, %s6601_s19  ;;  %s142_s24 = sadd.s32 1, %s6593_s17 }
   0x6   : > { %p31_p0 = scmp.ge.s32.totalorder %s29_s23, 2  ;;  %p152_p1 = scmp.ne.s32.totalorder %s6593_s17, %s6589_s16 }
   0x7   : > { %p153_p2 = scmp.eq.s32.totalorder %s5083_s21, 1  ;;  %p158_p3 = scmp.ne.s32.totalorder %s6589_s16, %s6585_s15 }
   0x8   : > { %s8658_s23 = smov (%p31_p0, %s29_s23), 0  ;;  %p159_p5 = scmp.eq.s32.totalorder %s5084_s22, 1 }
   0x9   : > { %p6675_p4 = por %p153_p2, %p152_p1  ;;  %s137_s26 = ssub.s32 %s6601_s19, %s8658_s23 }
   0xa   : > { %p5090_p6 = scmp.ge.s32.totalorder %s6605_s20, 1  ;;  %p140_p7 = scmp.eq.s32.totalorder %s137_s26, 0 }
   0xb   : > { %p6682_p8 = por %p159_p5, %p158_p3  ;;  %p204_p9 = scmp.lt.s32.totalorder %s6605_s20, 3 }
   0xc   : > { %s6688_s28 = scalar_select %p140_p7, %s6593_s17, %s142_s24  }
   0xd   : > { %p205_p10 = pnand %p5090_p6, %p204_p9 }
   0xf   : > { %208 = sbr.rel (%p205_p10) target bundleno = 613 (0x265), region = 36 }
  0x16   : > { %v5093_v0 = vld [vmem:[%s8579_s1 + $0x2] sm:$0x3]  ;;  %vm791_vm0 = vcmask 1041408   ;;  %v5320_v1 = vld [vmem:[%s8579_s1 + $0x8] sm:$0x3]  ;;  %p240_p11 = scmp.lt.s32.totalorder %s6597_s18, 1 }
  0x17   : > { %6354 = vmatprep.subr.msk.bf16.mxu1 %vm791_vm0, %v5093_v0  ;;  %6358 = vmatprep.subr.msk.bf16.mxu0 %vm791_vm0, %v5320_v1  ;;  %v793_v2 = vsel %vm791_vm0, %v5093_v0, 0  ;;  %v6701_v3 = vsel %vm791_vm0, %v5320_v1, 0  ;;  %v288_v4 = vld [vmem:[%s8579_s1] sm:$0x3]  ;;  %v5385_v5 = vld [vmem:[%s8579_s1 + $0xa] sm:$0x3] }
  0x18   : > { %8598 = vst [vmem:[#allocation5_spill] sm:$0xff] %v6701_v3  ;;  %5791 = vmatpush3.bf16.msra.mxu1 %v793_v2  ;;  %5927 = vmatpush3.bf16.msra.mxu0 %v6701_v3  ;;  %s241_s7 = scalar_select %p240_p11, %s6597_s18, 1  ;;  %vm305_vm1 = vsmask.f32 3328  ;;  %vm306_vm2 = vsmask.f32 7440 }
  0x19   : > { %6355 = vmatprep.subr.msk.bf16.mxu1 %vm791_vm0, %v288_v4  ;;  %6360 = vmatprep.subr.msk.bf16.mxu0 %vm791_vm0, %v5385_v5  ;;  %vm742_vm3 = vcmask 31744   ;;  %v6729_v17 = vsel %vm791_vm0, %v288_v4, 0  ;;  %v6735_v26 = vld [vmem:[%s8579_s1 + $0xc] sm:$0x3]  ;;  %vm6742_vm4 = vmor %vm305_vm1, %vm306_vm2  ;;  %v6748_v37 = vsel %vm791_vm0, %v5385_v5, 0  ;;  %vm1296_vm5 = vcmask 1042432  }
  0x1a   : > { %s6364_s12 = smul.u32 216, %s241_s7  ;;  %v6752_v41 = vsel %vm791_vm0, %v6735_v26, 0  ;;  %vm1297_vm6 = vcmask 1046532   ;;  %s237_s14 = sand.u32 1, %s6589_s16  }
  0x1b   : > { %vm6968_vm7 = vmor %vm1296_vm5, %vm1297_vm6  ;;  %s5091_s29 = sshll.u32 %s237_s14, 8  ;;  %s5636_s5 = sshll.u32 %s6597_s18, 12 }
  0x1c   : > { %s6716_s21 = scalar_lea.vmem %s8578_s0, %s6364_s12  ;;  %s8425_s30 = scalar_lea.vmem [#allocation2], %s5091_s29 }
  0x1d   : > { %v256_v6 = vld [vmem:[%s6716_s21] sm:$0xf]  ;;  %v257_v7 = vld [vmem:[%s6716_s21 + $0x4] sm:$0xf]  ;;  %v289_v8 = vld [vmem:[%s6716_s21 + $0x8] sm:$0x1]  ;;  %s8523_s9 = scalar_lea.hbm %s8582_s4, %s5636_s5 }
  0x1e   : > { %v309_v9 = vshrl.u32 %v256_v6, 16  ;;  %v312_v10 = vshll.u32 %v256_v6, 16  ;;  %v318_v11 = vshll.u32 %v257_v7, 16  ;;  %v322_v12 = vshrl.u32 %v257_v7, 16  ;;  %v5272_v13 = vld [vmem:[%s6716_s21 + $0xc] sm:$0xf] }
  0x1f   : > { %v328_v14 = vshll.u32 %v289_v8, 16  ;;  %v6723_v15 = vld [vmem:[%s6716_s21 + $0x10] sm:$0xf]  ;;  %v6726_v16 = vld [vmem:[%s6716_s21 + $0x14] sm:$0x1]  ;;  %v2113_v23 = vshrl.u32 %v5272_v13, 16 }
  0x20   : > { %v311_v18 = vrot.slane %v309_v9, 4  ;;  %v314_v19 = vrot.slane %v312_v10, 5  ;;  %v320_v20 = vrot.slane %v318_v11, 5  ;;  %v324_v21 = vrot.slane %v322_v12, 4  ;;  %v258_v31 = vld [vmem:[%s6716_s21 + $0xc] sm:$0xf] }
  0x21   : > { %v330_v22 = vrot.slane %v328_v14, 5  ;;  %v2116_v24 = vshll.u32 %v5272_v13, 16  ;;  %v2122_v25 = vshll.u32 %v6723_v15, 16  ;;  %v2126_v29 = vshrl.u32 %v6723_v15, 16  ;;  %v259_v36 = vld [vmem:[%s6716_s21 + $0x10] sm:$0xf] }
  0x22   : > { %v315_v27 = vor.u32 %v314_v19, %v311_v18  ;;  %v325_v28 = vor.u32 %v324_v21, %v320_v20  ;;  %v2132_v30 = vshll.u32 %v6726_v16, 16  ;;  %v2115_v33 = vrot.slane %v2113_v23, 4  ;;  %v290_v44 = vld [vmem:[%s6716_s21 + $0x14] sm:$0x1]  ;;  %v5275_v55 = vld [vmem:[%s6716_s21 + $0x18] sm:$0xf] }
  0x23   : > { %v2118_v34 = vrot.slane %v2116_v24, 5  ;;  %v2124_v35 = vrot.slane %v2122_v25, 5  ;;  %v2128_v40 = vrot.slane %v2126_v29, 4  ;;  %v333_v45 = vshrl.u32 %v258_v31, 16  ;;  %v6761_v60 = vld [vmem:[%s6716_s21 + $0x1c] sm:$0xf] }
  0x24   : > { %v316_v38 = vrot.slane %v315_v27, 4  ;;  %v326_v39 = vrot.slane %v325_v28, 4  ;;  %v2134_v43 = vrot.slane %v2132_v30, 5  ;;  %v336_v46 = vshll.u32 %v258_v31, 16  ;;  %v6769_v1 = vld [vmem:[%s6716_s21 + $0x20] sm:$0x1] }
  0x25   : > { %v2119_v42 = vor.u32 %v2118_v34, %v2115_v33  ;;  %v2129_v49 = vor.u32 %v2128_v40, %v2124_v35  ;;  %v342_v50 = vshll.u32 %v259_v36, 16  ;;  %v335_v53 = vrot.slane %v333_v45, 4  ;;  %v260_v18 = vld [vmem:[%s6716_s21 + $0x18] sm:$0xf]  ;;  %v261_v23 = vld [vmem:[%s6716_s21 + $0x1c] sm:$0xf] }
  0x26   : > { %v321_v47 = vsel %vm6742_vm4, %v316_v38, %v320_v20  ;;  %v331_v48 = vsel %vm6742_vm4, %v326_v39, %v330_v22  ;;  %v338_v54 = vrot.slane %v336_v46, 5  ;;  %v346_v58 = vshrl.u32 %v259_v36, 16  ;;  %v291_v31 = vld [vmem:[%s6716_s21 + $0x20] sm:$0x1]  ;;  %v5278_v40 = vld [vmem:[%s6716_s21 + $0x24] sm:$0xf] }
  0x27   : > { %v5094_v51 = vcombine.low %v321_v47, %v331_v48  ;;  %v2120_v52 = vrot.slane %v2119_v42, 4  ;;  %v2130_v56 = vrot.slane %v2129_v49, 4  ;;  %v344_v57 = vrot.slane %v342_v50, 5  ;;  %v6792_v46 = vld [vmem:[%s6716_s21 + $0x28] sm:$0xf]  ;;  %s4972_s6 = sshll.u32 %s8425_s30, 4  ;;  %s8525_s6 = int_to_ptr.vmem [resolvable:$true] %s4972_s6 }
  0x28   : > { %v352_v59 = vshll.u32 %v290_v44, 16  ;;  %v2856_v62 = vrot.slane %v6723_v15, 5  ;;  %v2859_v63 = vrot.slane %v6726_v16, 5  ;;  %v339_v0 = vor.u32 %v338_v54, %v335_v53  ;;  %v6801_v54 = vld [vmem:[%s6716_s21 + $0x2c] sm:$0x1]  ;;  %s8532_s18 = scalar_lea.sflag [#allocation3], %s237_s14 }
  0x29   : > { %5792 = vmatprep.mubr.msk.bf16.mxu1 %vm742_vm3, %v5094_v51  ;;  %v2125_v61 = vsel %vm6742_vm4, %v2120_v52, %v2124_v35  ;;  %v2135_v2 = vsel %vm6742_vm4, %v2130_v56, %v2134_v43  ;;  %v348_v4 = vrot.slane %v346_v58, 4  ;;  %v2137_v6 = vshrl.u32 %v5275_v55, 16  ;;  %v5174_v51 = vld [vmem:[%s8579_s1 + $0x4] sm:$0x3]  ;;  %v7001_v16 = vld [vmem:[%s6716_s21 + $0x7c] sm:$0xf] }
  0x2a   : > { %v354_v5 = vrot.slane %v352_v59, 5  ;;  %v5321_v7 = vcombine.low %v2125_v61, %v2135_v2  ;;  %v340_v8 = vrot.slane %v339_v0, 4  ;;  %v2140_v9 = vshll.u32 %v5275_v55, 16  ;;  %v262_v0 = vld [vmem:[%s6716_s21 + $0x24] sm:$0xf]  ;;  %s6527_s10 = scalar_lea.vmem %s8525_s6, 4096 }
  0x2b   : > { %v2146_v10 = vshll.u32 %v6761_v60, 16  ;;  %v349_v11 = vor.u32 %v348_v4, %v344_v57  ;;  %v2139_v12 = vrot.slane %v2137_v6, 4  ;;  %v2150_v13 = vshrl.u32 %v6761_v60, 16  ;;  %p6528_p12 = scmp.ne.s32.totalorder %s8525_s6, %s6527_s10  ;;  %s6607_s11 = smov [#allocation2]  }
  0x2c   : > { %v2156_v14 = vshll.u32 %v6769_v1, 16  ;;  %5928 = vmatprep.mubr.msk.bf16.mxu0 %vm742_vm3, %v5321_v7  ;;  %v345_v19 = vsel %vm6742_vm4, %v340_v8, %v344_v57  ;;  %v2142_v20 = vrot.slane %v2140_v9, 5  ;;  %v2863_v22 = vrot.slane %v6761_v60, 5  ;;  %v263_v7 = vld [vmem:[%s6716_s21 + $0x28] sm:$0xf]  ;;  %s6531_s12 = sshll.u32 %s6607_s11, 4  ;;  %s6532_s12 = int_to_ptr.vmem [resolvable:$false] %s6531_s12 }
  0x2d   : > { %v2148_v21 = vrot.slane %v2146_v10, 5  ;;  %v350_v24 = vrot.slane %v349_v11, 4  ;;  %v2152_v25 = vrot.slane %v2150_v13, 4  ;;  %v2866_v28 = vrot.slane %v6769_v1, 5  ;;  %v292_v13 = vld [vmem:[%s6716_s21 + $0x2c] sm:$0x1]  ;;  %p6529_p13 = pnand %p6528_p12, %p6675_p4  ;;  %p6534_p1 = scmp.lt.s32.totalorder %s8525_s6, %s6532_s12 }
  0x2e   : > { %v2158_v27 = vrot.slane %v2156_v14, 5  ;;  %v2143_v29 = vor.u32 %v2142_v20, %v2139_v12  ;;  %v6785_v30 = vrot.slane %v2863_v22, 4  ;;  %v357_v33 = vshrl.u32 %v260_v18, 16  ;;  %s6533_s13 = scalar_lea.vmem %s6532_s12, 8192 }
  0x2f   : > { %v360_v34 = vshll.u32 %v260_v18, 16  ;;  %v355_v35 = vsel %vm6742_vm4, %v350_v24, %v354_v5  ;;  %v2153_v36 = vor.u32 %v2152_v25, %v2148_v21  ;;  %v366_v38 = vshll.u32 %v261_v23, 16  ;;  %v5281_v24 = vld [vmem:[%s6716_s21 + $0x30] sm:$0xf]  ;;  %p6530_p0 = pneg %p6529_p13  ;;  %p6535_p2 = scmp.lt.s32.totalorder %s6533_s13, %s6527_s10 }
  0x30   : > { %v370_v39 = vshrl.u32 %v261_v23, 16  ;;  %v5095_v42 = vcombine.low %v345_v19, %v355_v35  ;;  %v2144_v43 = vrot.slane %v2143_v29, 4  ;;  %v359_v44 = vrot.slane %v357_v33, 4  ;;  %v6821_v33 = vld [vmem:[%s6716_s21 + $0x34] sm:$0xf] }
  0x31   : > { %v362_v45 = vrot.slane %v360_v34, 5  ;;  %v2154_v47 = vrot.slane %v2153_v36, 4  ;;  %v368_v48 = vrot.slane %v366_v38, 5  ;;  %v376_v50 = vshll.u32 %v291_v31, 16  ;;  %p6536_p3 = por %p6535_p2, %p6534_p1 }
  0x32   : > { %v372_v49 = vrot.slane %v370_v39, 4  ;;  %5793 = vmatmul.mubr.msk.bf16.vlgmr.msra.gmra.mrb[0].mxu1 %vm742_vm3, %v5095_v42  ;;  %v2149_v52 = vsel %vm6742_vm4, %v2144_v43, %v2148_v21  ;;  %v2161_v55 = vshrl.u32 %v5278_v40, 16  ;;  %v2164_v56 = vshll.u32 %v5278_v40, 16  ;;  %v6829_v40 = vld [vmem:[%s6716_s21 + $0x38] sm:$0x1] }
  0x33   : > { %v363_v53 = vor.u32 %v362_v45, %v359_v44  ;;  %5825 = vmatpush3.bf16.msra.mxu1 %v6729_v17  ;;  %v2159_v57 = vsel %vm6742_vm4, %v2154_v47, %v2158_v27  ;;  %v378_v59 = vrot.slane %v376_v50, 5  ;;  %v2170_v61 = vshll.u32 %v6792_v46, 16  ;;  %p6537_p5 = pnand %p6536_p3, %p6530_p0 }
  0x34   : > { %v373_v58 = vor.u32 %v372_v49, %v368_v48  ;;  %v5322_v2 = vcombine.low %v2149_v52, %v2159_v57  ;;  %v2163_v5 = vrot.slane %v2161_v55, 4  ;;  %v2166_v6 = vrot.slane %v2164_v56, 5  ;;  %6356 = vmatprep.subr.msk.bf16.mxu1 %vm791_vm0, %v5174_v51  ;;  %v264_v52 = vld [vmem:[%s6716_s21 + $0x30] sm:$0xf] }
  0x35   : > { %v364_v4 = vrot.slane %v363_v53, 4  ;;  %v2172_v9 = vrot.slane %v2170_v61, 5  ;;  %v2174_v17 = vshrl.u32 %v6792_v46, 16  ;;  %v2180_v10 = vshll.u32 %v6801_v54, 16 }
  0x36   : > { %v374_v8 = vrot.slane %v373_v58, 4  ;;  %5929 = vmatmul.mubr.msk.bf16.vlgmr.msra.gmra.mrb[0].mxu0 %vm742_vm3, %v5322_v2  ;;  %v2167_v12 = vor.u32 %v2166_v6, %v2163_v5  ;;  %v381_v14 = vshrl.u32 %v262_v0, 16  ;;  %v384_v18 = vshll.u32 %v262_v0, 16  ;;  %v265_v58 = vld [vmem:[%s6716_s21 + $0x34] sm:$0xf] }
  0x37   : > { %v369_v11 = vsel %vm6742_vm4, %v364_v4, %v368_v48  ;;  %5961 = vmatpush3.bf16.msra.mxu0 %v6748_v37  ;;  %v2176_v20 = vrot.slane %v2174_v17, 4  ;;  %v2182_v21 = vrot.slane %v2180_v10, 5  ;;  %v390_v23 = vshll.u32 %v263_v7, 16  ;;  %v293_v4 = vld [vmem:[%s6716_s21 + $0x38] sm:$0x1] }
  0x38   : > { %v379_v19 = vsel %vm6742_vm4, %v374_v8, %v378_v59  ;;  %v2168_v27 = vrot.slane %v2167_v12, 4  ;;  %v383_v29 = vrot.slane %v381_v14, 4  ;;  %v386_v31 = vrot.slane %v384_v18, 5  ;;  %6361 = vmatprep.subr.msk.bf16.mxu0 %vm791_vm0, %v6735_v26  ;;  %v5284_v12 = vld [vmem:[%s6716_s21 + $0x3c] sm:$0xf] }
  0x39   : > { %v5096_v25 = vcombine.low %v369_v11, %v379_v19  ;;  %v2177_v34 = vor.u32 %v2176_v20, %v2172_v9  ;;  %v392_v35 = vrot.slane %v390_v23, 5  ;;  %v394_v37 = vshrl.u32 %v263_v7, 16  ;;  %v6846_v20 = vld [vmem:[%s6716_s21 + $0x40] sm:$0xf] }
  0x3a   : > { %v400_v36 = vshll.u32 %v292_v13, 16  ;;  %v2173_v38 = vsel %vm6742_vm4, %v2168_v27, %v2172_v9  ;;  %v387_v39 = vor.u32 %v386_v31, %v383_v29  ;;  %v2185_v42 = vshrl.u32 %v5281_v24, 16 }
  0x3b   : > { %5796 = vmatprep.mubr.msk.bf16.mxu1 %vm742_vm3, %v5096_v25  ;;  %v2188_v43 = vshll.u32 %v5281_v24, 16  ;;  %v2178_v44 = vrot.slane %v2177_v34, 4  ;;  %v396_v45 = vrot.slane %v394_v37, 4  ;;  %v2194_v26 = vshll.u32 %v6821_v33, 16  ;;  %v6851_v34 = vld [vmem:[%s6716_s21 + $0x44] sm:$0x1] }
  0x3c   : > { %v402_v47 = vrot.slane %v400_v36, 5  ;;  %v388_v48 = vrot.slane %v387_v39, 4  ;;  %v2187_v49 = vrot.slane %v2185_v42, 4  ;;  %v2198_v51 = vshrl.u32 %v6821_v33, 16  ;;  %v266_v42 = vld [vmem:[%s6716_s21 + $0x3c] sm:$0xf] }
  0x3d   : > { %v2190_v50 = vrot.slane %v2188_v43, 5  ;;  %v2183_v53 = vsel %vm6742_vm4, %v2178_v44, %v2182_v21  ;;  %v397_v55 = vor.u32 %v396_v45, %v392_v35  ;;  %v2196_v56 = vrot.slane %v2194_v26, 5  ;;  %v267_v26 = vld [vmem:[%s6716_s21 + $0x40] sm:$0xf] }
  0x3e   : > { %v2204_v57 = vshll.u32 %v6829_v40, 16  ;;  %v5323_v59 = vcombine.low %v2173_v38, %v2183_v53  ;;  %v393_v61 = vsel %vm6742_vm4, %v388_v48, %v392_v35  ;;  %v2200_v2 = vrot.slane %v2198_v51, 4 }
  0x3f   : > { %v2191_v0 = vor.u32 %v2190_v50, %v2187_v49  ;;  %v398_v5 = vrot.slane %v397_v55, 4  ;;  %v405_v7 = vshrl.u32 %v264_v52, 16  ;;  %v408_v8 = vshll.u32 %v264_v52, 16 }
  0x40   : > { %v2206_v6 = vrot.slane %v2204_v57, 5  ;;  %5932 = vmatprep.mubr.msk.bf16.mxu0 %vm742_vm3, %v5323_v59  ;;  %v2201_v17 = vor.u32 %v2200_v2, %v2196_v56  ;;  %v414_v10 = vshll.u32 %v265_v58, 16  ;;  %v418_v11 = vshrl.u32 %v265_v58, 16  ;;  %v5287_v2 = vld [vmem:[%s6716_s21 + $0x48] sm:$0xf] }
  0x41   : > { %v2192_v9 = vrot.slane %v2191_v0, 4  ;;  %v403_v13 = vsel %vm6742_vm4, %v398_v5, %v402_v47  ;;  %v407_v14 = vrot.slane %v405_v7, 4  ;;  %v410_v18 = vrot.slane %v408_v8, 5  ;;  %v6869_v8 = vld [vmem:[%s6716_s21 + $0x4c] sm:$0xf] }
  0x42   : > { %v424_v19 = vshll.u32 %v293_v4, 16  ;;  %v5097_v21 = vcombine.low %v393_v61, %v403_v13  ;;  %v2202_v24 = vrot.slane %v2201_v17, 4  ;;  %v416_v25 = vrot.slane %v414_v10, 5  ;;  %v294_v61 = vld [vmem:[%s6716_s21 + $0x44] sm:$0x1] }
  0x43   : > { %v2197_v23 = vsel %vm6742_vm4, %v2192_v9, %v2196_v56  ;;  %v411_v27 = vor.u32 %v410_v18, %v407_v14  ;;  %v420_v29 = vrot.slane %v418_v11, 4  ;;  %v2209_v35 = vshrl.u32 %v5284_v12, 16 }
  0x44   : > { %v426_v31 = vrot.slane %v424_v19, 5  ;;  %5797 = vmatmul.mubr.msk.bf16.gmra.mrb[4].mxu1 %vm742_vm3, %v5097_v21  ;;  %v2207_v37 = vsel %vm6742_vm4, %v2202_v24, %v2206_v6  ;;  %v2212_v36 = vshll.u32 %v5284_v12, 16  ;;  %v2218_v38 = vshll.u32 %v6846_v20, 16 }
  0x45   : > { %v2222_v39 = vshrl.u32 %v6846_v20, 16  ;;  %v5324_v43 = vcombine.low %v2197_v23, %v2207_v37  ;;  %v412_v44 = vrot.slane %v411_v27, 4  ;;  %v421_v45 = vor.u32 %v420_v29, %v416_v25  ;;  %v6877_v23 = vld [vmem:[%s6716_s21 + $0x50] sm:$0x1]  ;;  %v6881_v27 = vld [vmem:[%s6716_s21 + $0x48] sm:$0xf] }
  0x46   : > { %v2211_v47 = vrot.slane %v2209_v35, 4  ;;  %v2214_v48 = vrot.slane %v2212_v36, 5  ;;  %v2220_v49 = vrot.slane %v2218_v38, 5  ;;  %v2228_v51 = vshll.u32 %v6851_v34, 16  ;;  %v6884_v36 = vld [vmem:[%s6716_s21 + $0x4c] sm:$0xf] }
  0x47   : > { %v2224_v50 = vrot.slane %v2222_v39, 4  ;;  %5933 = vmatmul.mubr.msk.bf16.gmra.mrb[4].mxu0 %vm742_vm3, %v5324_v43  ;;  %v417_v52 = vsel %vm6742_vm4, %v412_v44, %v416_v25  ;;  %v422_v53 = vrot.slane %v421_v45, 4  ;;  %v429_v55 = vshrl.u32 %v266_v42, 16 }
  0x48   : > { %v432_v56 = vshll.u32 %v266_v42, 16  ;;  %v2215_v57 = vor.u32 %v2214_v48, %v2211_v47  ;;  %v2230_v59 = vrot.slane %v2228_v51, 5  ;;  %v438_v0 = vshll.u32 %v267_v26, 16 }
  0x49   : > { %v2225_v58 = vor.u32 %v2224_v50, %v2220_v49  ;;  %v427_v4 = vsel %vm6742_vm4, %v422_v53, %v426_v31  ;;  %v431_v5 = vrot.slane %v429_v55, 4  ;;  %v442_v7 = vshrl.u32 %v267_v26, 16  ;;  %v295_v26 = vld [vmem:[%s6716_s21 + $0x50] sm:$0x1]  ;;  %v5290_v53 = vld [vmem:[%s6716_s21 + $0x54] sm:$0xf] }
  0x4a   : > { %v434_v6 = vrot.slane %v432_v56, 5  ;;  %v5098_v9 = vcombine.low %v417_v52, %v427_v4  ;;  %v2216_v17 = vrot.slane %v2215_v57, 4  ;;  %v440_v11 = vrot.slane %v438_v0, 5  ;;  %v6900_v4 = vld [vmem:[%s6716_s21 + $0x58] sm:$0xf] }
  0x4b   : > { %v2226_v10 = vrot.slane %v2225_v58, 4  ;;  %v444_v13 = vrot.slane %v442_v7, 4  ;;  %v448_v14 = vshll.u32 %v294_v61, 16  ;;  %v2233_v18 = vshrl.u32 %v5287_v2, 16 }
  0x4c   : > { %v435_v12 = vor.u32 %v434_v6, %v431_v5  ;;  %5800 = vmatprep.mubr.msk.bf16.mxu1 %vm742_vm3, %v5098_v9  ;;  %v2221_v19 = vsel %vm6742_vm4, %v2216_v17, %v2220_v49  ;;  %v2236_v24 = vshll.u32 %v5287_v2, 16  ;;  %v2242_v25 = vshll.u32 %v6869_v8, 16 }
  0x4d   : > { %v2231_v21 = vsel %vm6742_vm4, %v2226_v10, %v2230_v59  ;;  %v445_v35 = vor.u32 %v444_v13, %v440_v11  ;;  %v450_v37 = vrot.slane %v448_v14, 5  ;;  %v2235_v38 = vrot.slane %v2233_v18, 4 }
  0x4e   : > { %v5325_v29 = vcombine.low %v2221_v19, %v2231_v21  ;;  %v436_v31 = vrot.slane %v435_v12, 4  ;;  %v2238_v39 = vrot.slane %v2236_v24, 5  ;;  %v2244_v42 = vrot.slane %v2242_v25, 5  ;;  %v6906_v12 = vld [vmem:[%s6716_s21 + $0x5c] sm:$0x1] }
  0x4f   : > { %v2246_v43 = vshrl.u32 %v6869_v8, 16  ;;  %v446_v45 = vrot.slane %v445_v35, 4  ;;  %v2252_v47 = vshll.u32 %v6877_v23, 16  ;;  %v453_v48 = vshrl.u32 %v6881_v27, 16  ;;  %v6910_v24 = vld [vmem:[%s6716_s21 + $0x54] sm:$0xf] }
  0x50   : > { %5936 = vmatprep.mubr.msk.bf16.mxu0 %vm742_vm3, %v5325_v29  ;;  %v441_v44 = vsel %vm6742_vm4, %v436_v31, %v440_v11  ;;  %v2239_v49 = vor.u32 %v2238_v39, %v2235_v38  ;;  %v456_v51 = vshll.u32 %v6881_v27, 16  ;;  %v462_v52 = vshll.u32 %v6884_v36, 16 }
  0x51   : > { %v2248_v50 = vrot.slane %v2246_v43, 4  ;;  %v451_v55 = vsel %vm6742_vm4, %v446_v45, %v450_v37  ;;  %v2254_v56 = vrot.slane %v2252_v47, 5  ;;  %v455_v57 = vrot.slane %v453_v48, 4  ;;  %v6916_v37 = vld [vmem:[%s6716_s21 + $0x58] sm:$0xf] }
  0x52   : > { %v466_v58 = vshrl.u32 %v6884_v36, 16  ;;  %v5099_v59 = vcombine.low %v441_v44, %v451_v55  ;;  %v2240_v61 = vrot.slane %v2239_v49, 4  ;;  %v458_v2 = vrot.slane %v456_v51, 5 }
  0x53   : > { %v2249_v0 = vor.u32 %v2248_v50, %v2244_v42  ;;  %v464_v5 = vrot.slane %v462_v52, 5  ;;  %v472_v7 = vshll.u32 %v295_v26, 16  ;;  %v2257_v9 = vshrl.u32 %v5290_v53, 16  ;;  %v296_v26 = vld [vmem:[%s6716_s21 + $0x5c] sm:$0x1] }
  0x54   : > { %v468_v6 = vrot.slane %v466_v58, 4  ;;  %5801 = vmatmul.mubr.msk.bf16.gmra.mrb[8].mxu1 %vm742_vm3, %v5099_v59  ;;  %v2245_v17 = vsel %vm6742_vm4, %v2240_v61, %v2244_v42  ;;  %v459_v11 = vor.u32 %v458_v2, %v455_v57  ;;  %v2260_v13 = vshll.u32 %v5290_v53, 16  ;;  %v5293_v53 = vld [vmem:[%s6716_s21 + $0x60] sm:$0xf]  ;;  %v6930_v59 = vld [vmem:[%s6716_s21 + $0x64] sm:$0xf] }
  0x55   : > { %v2250_v10 = vrot.slane %v2249_v0, 4  ;;  %v474_v18 = vrot.slane %v472_v7, 5  ;;  %v2259_v19 = vrot.slane %v2257_v9, 4  ;;  %v2266_v21 = vshll.u32 %v6900_v4, 16  ;;  %v6937_v9 = vld [vmem:[%s6716_s21 + $0x68] sm:$0x1] }
  0x56   : > { %v469_v14 = vor.u32 %v468_v6, %v464_v5  ;;  %v460_v29 = vrot.slane %v459_v11, 4  ;;  %v2262_v31 = vrot.slane %v2260_v13, 5  ;;  %v2270_v35 = vshrl.u32 %v6900_v4, 16 }
  0x57   : > { %v2255_v25 = vsel %vm6742_vm4, %v2250_v10, %v2254_v56  ;;  %v2268_v42 = vrot.slane %v2266_v21, 5  ;;  %v2276_v43 = vshll.u32 %v6906_v12, 16  ;;  %v477_v48 = vshrl.u32 %v6910_v24, 16 }
  0x58   : > { %v5326_v38 = vcombine.low %v2245_v17, %v2255_v25  ;;  %v470_v39 = vrot.slane %v469_v14, 4  ;;  %v465_v44 = vsel %vm6742_vm4, %v460_v29, %v464_v5  ;;  %v2263_v45 = vor.u32 %v2262_v31, %v2259_v19  ;;  %v6941_v19 = vld [vmem:[%s6716_s21 + $0x60] sm:$0xf] }
  0x59   : > { %v2272_v47 = vrot.slane %v2270_v35, 4  ;;  %v2278_v50 = vrot.slane %v2276_v43, 5  ;;  %v480_v51 = vshll.u32 %v6910_v24, 16  ;;  %v486_v52 = vshll.u32 %v6916_v37, 16  ;;  %v6947_v35 = vld [vmem:[%s6716_s21 + $0x64] sm:$0xf] }
  0x5a   : > { %5937 = vmatmul.mubr.msk.bf16.gmra.mrb[8].mxu0 %vm742_vm3, %v5326_v38  ;;  %v475_v49 = vsel %vm6742_vm4, %v470_v39, %v474_v18  ;;  %v2264_v56 = vrot.slane %v2263_v45, 4  ;;  %v479_v58 = vrot.slane %v477_v48, 4  ;;  %v490_v2 = vshrl.u32 %v6916_v37, 16 }
  0x5b   : > { %v5100_v55 = vcombine.low %v465_v44, %v475_v49  ;;  %v2273_v57 = vor.u32 %v2272_v47, %v2268_v42  ;;  %v482_v61 = vrot.slane %v480_v51, 5  ;;  %v488_v0 = vrot.slane %v486_v52, 5 }
  0x5c   : > { %v496_v5 = vshll.u32 %v296_v26, 16  ;;  %v2269_v6 = vsel %vm6742_vm4, %v2264_v56, %v2268_v42  ;;  %v2281_v17 = vshrl.u32 %v5293_v53, 16  ;;  %v2284_v10 = vshll.u32 %v5293_v53, 16 }
  0x5d   : > { %5804 = vmatprep.mubr.msk.bf16.mxu1 %vm742_vm3, %v5100_v55  ;;  %v2274_v7 = vrot.slane %v2273_v57, 4  ;;  %v483_v11 = vor.u32 %v482_v61, %v479_v58  ;;  %v492_v13 = vrot.slane %v490_v2, 4  ;;  %v2290_v18 = vshll.u32 %v6930_v59, 16  ;;  %v5353_v58 = vld [vmem:[%s6716_s21 + $0xc] sm:$0xe] }
  0x5e   : > { %v498_v14 = vrot.slane %v496_v5, 5  ;;  %v2283_v25 = vrot.slane %v2281_v17, 4  ;;  %v2286_v29 = vrot.slane %v2284_v10, 5  ;;  %v2294_v31 = vshrl.u32 %v6930_v59, 16 }
  0x5f   : > { %v2279_v21 = vsel %vm6742_vm4, %v2274_v7, %v2278_v50  ;;  %v484_v39 = vrot.slane %v483_v11, 4  ;;  %v493_v42 = vor.u32 %v492_v13, %v488_v0  ;;  %v2292_v43 = vrot.slane %v2290_v18, 5  ;;  %v297_v50 = vld [vmem:[%s6716_s21 + $0x68] sm:$0x1] }
  0x60   : > { %v5327_v38 = vcombine.low %v2269_v6, %v2279_v21  ;;  %v2287_v44 = vor.u32 %v2286_v29, %v2283_v25  ;;  %v2296_v45 = vrot.slane %v2294_v31, 4  ;;  %v2300_v47 = vshll.u32 %v6937_v9, 16  ;;  %v6975_v29 = vld [vmem:[%s6716_s21 + $0x70] sm:$0xf] }
  0x61   : > { %v501_v26 = vshrl.u32 %v6941_v19, 16  ;;  %v489_v48 = vsel %vm6742_vm4, %v484_v39, %v488_v0  ;;  %v494_v49 = vrot.slane %v493_v42, 4  ;;  %v504_v51 = vshll.u32 %v6941_v19, 16  ;;  %v6962_v0 = vld [vmem:[%s6716_s21 + $0x6c] sm:$0xf] }
  0x62   : > { %5940 = vmatprep.mubr.msk.bf16.mxu0 %vm742_vm3, %v5327_v38  ;;  %v510_v52 = vshll.u32 %v6947_v35, 16  ;;  %v2288_v53 = vrot.slane %v2287_v44, 4  ;;  %v2297_v55 = vor.u32 %v2296_v45, %v2292_v43  ;;  %v2302_v56 = vrot.slane %v2300_v47, 5 }
  0x63   : > { %v503_v57 = vrot.slane %v501_v26, 4  ;;  %v499_v61 = vsel %vm6742_vm4, %v494_v49, %v498_v14  ;;  %v506_v2 = vrot.slane %v504_v51, 5  ;;  %v514_v6 = vshrl.u32 %v6947_v35, 16  ;;  %v298_v26 = vld [vmem:[%s6716_s21 + $0x74] sm:$0x1] }
  0x64   : > { %v512_v5 = vrot.slane %v510_v52, 5  ;;  %v5101_v7 = vcombine.low %v489_v48, %v499_v61  ;;  %v2293_v17 = vsel %vm6742_vm4, %v2288_v53, %v2292_v43  ;;  %v2298_v10 = vrot.slane %v2297_v55, 4  ;;  %v5354_v48 = vld [vmem:[%s6716_s21 + $0x18] sm:$0xe] }
  0x65   : > { %v520_v11 = vshll.u32 %v297_v50, 16  ;;  %v507_v14 = vor.u32 %v506_v2, %v503_v57  ;;  %v516_v18 = vrot.slane %v514_v6, 4  ;;  %v5369_v21 = vrot.slane %v5353_v58, 9  ;;  %v6994_v53 = vld [vmem:[%s6716_s21 + $0x78] sm:$0xf] }
  0x66   : > { %v2858_v25 = vrot.slane %v2856_v62, 4  ;;  %5805 = vmatmul.mubr.msk.bf16.gmra.mrb[12].mxu1 %vm742_vm3, %v5101_v7  ;;  %v2303_v31 = vsel %vm6742_vm4, %v2298_v10, %v2302_v56  ;;  %v525_v39 = vshrl.u32 %v6962_v0, 16  ;;  %v528_v42 = vshll.u32 %v6962_v0, 16  ;;  %v299_v57 = vld [vmem:[%s6716_s21 + $0x80] sm:$0x1] }
  0x67   : > { %v522_v38 = vrot.slane %v520_v11, 5  ;;  %v5328_v43 = vcombine.low %v2293_v17, %v2303_v31  ;;  %v508_v44 = vrot.slane %v507_v14, 4  ;;  %v517_v45 = vor.u32 %v516_v18, %v512_v5  ;;  %v5355_v10 = vld [vmem:[%s6716_s21 + $0x24] sm:$0xe] }
  0x68   : > { %v2857_v47 = vsel %vm6968_vm7, %v5369_v21, %v2856_v62  ;;  %v2860_v49 = vsel %vm6968_vm7, %v2858_v25, %v2859_v63  ;;  %v527_v50 = vrot.slane %v525_v39, 4  ;;  %v530_v51 = vrot.slane %v528_v42, 5  ;;  %v7020_v39 = vld [vmem:[%s6716_s21 + $0x84] sm:$0xf] }
  0x69   : > { %v534_v52 = vshll.u32 %v6975_v29, 16  ;;  %5941 = vmatmul.mubr.msk.bf16.gmra.mrb[12].mxu0 %vm742_vm3, %v5328_v43  ;;  %v513_v15 = vsel %vm6742_vm4, %v508_v44, %v512_v5  ;;  %v518_v62 = vrot.slane %v517_v45, 4  ;;  %v5386_v55 = vcombine.low %v2857_v47, %v2860_v49  ;;  %v7028_v43 = vld [vmem:[%s6716_s21 + $0x88] sm:$0xf] }
  0x6a   : > { %v538_v56 = vshrl.u32 %v6975_v29, 16  ;;  %v531_v63 = vor.u32 %v530_v51, %v527_v50  ;;  %v544_v61 = vshll.u32 %v298_v26, 16  ;;  %v5370_v2 = vrot.slane %v5354_v48, 9 }
  0x6b   : > { %v536_v58 = vrot.slane %v534_v52, 5  ;;  %v523_v6 = vsel %vm6742_vm4, %v518_v62, %v522_v38  ;;  %5962 = vmatprep.mubr.msk.bf16.mxu0 %vm742_vm3, %v5386_v55  ;;  %v2867_v5 = vsel %vm6968_vm7, %v6785_v30, %v2866_v28  ;;  %v549_v17 = vshrl.u32 %v6994_v53, 16  ;;  %v300_v52 = vld [vmem:[%s6716_s21 + $0x8c] sm:$0x1] }
  0x6c   : > { %v540_v7 = vrot.slane %v538_v56, 4  ;;  %v5102_v11 = vcombine.low %v513_v15, %v523_v6  ;;  %v532_v14 = vrot.slane %v531_v63, 4  ;;  %v546_v18 = vrot.slane %v544_v61, 5 }
  0x6d   : > { %v2864_v21 = vsel %vm6968_vm7, %v5370_v2, %v2863_v22  ;;  %v551_v38 = vrot.slane %v549_v17, 4  ;;  %v552_v1 = vshll.u32 %v6994_v53, 16  ;;  %v558_v30 = vshll.u32 %v7001_v16, 16  ;;  %v7033_v22 = vld [vmem:[%s8579_s1 + $0xe] sm:$0x3] }
  0x6e   : > { %v541_v25 = vor.u32 %v540_v7, %v536_v58  ;;  %v5387_v31 = vcombine.low %v2864_v21, %v2867_v5  ;;  %5808 = vmatprep.mubr.msk.bf16.mxu1 %vm742_vm3, %v5102_v11  ;;  %v537_v28 = vsel %vm6742_vm4, %v532_v14, %v536_v58  ;;  %v562_v60 = vshrl.u32 %v7001_v16, 16  ;;  %v7052_v5 = vld [vmem:[%s6716_s21 + $0x90] sm:$0xf] }
  0x6f   : > { %v568_v42 = vshll.u32 %v299_v57, 16  ;;  %v554_v45 = vrot.slane %v552_v1, 5  ;;  %v5371_v47 = vrot.slane %v5355_v10, 9  ;;  %v2870_v26 = vrot.slane %v6792_v46, 5  ;;  %v5356_v57 = vld [vmem:[%s6716_s21 + $0x30] sm:$0xe] }
  0x70   : > { %v542_v44 = vrot.slane %v541_v25, 4  ;;  %v560_v48 = vrot.slane %v558_v30, 5  ;;  %v564_v49 = vrot.slane %v562_v60, 4  ;;  %v2873_v51 = vrot.slane %v6801_v54, 5  ;;  %v7064_v30 = vld [vmem:[%s6716_s21 + $0x94] sm:$0xf] }
  0x71   : > { %v570_v50 = vrot.slane %v568_v42, 5  ;;  %5963 = vmatmul.mubr.msk.bf16.vlgmr.msra.gmra.mrb[0].mxu0 %vm742_vm3, %v5387_v31  ;;  %v555_v62 = vor.u32 %v554_v45, %v551_v38  ;;  %v2871_v55 = vsel %vm6968_vm7, %v5371_v47, %v2870_v26  ;;  %v2872_v56 = vrot.slane %v2870_v26, 4  ;;  %v301_v60 = vld [vmem:[%s6716_s21 + $0x98] sm:$0x1]  ;;  %v5357_v26 = vld [vmem:[%s6716_s21 + $0x3c] sm:$0xe] }
  0x72   : > { %v547_v15 = vsel %vm6742_vm4, %v542_v44, %v546_v18  ;;  %5995 = vmatpush3.bf16.msra.mxu0 %v6752_v41  ;;  %v565_v46 = vor.u32 %v564_v49, %v560_v48  ;;  %v573_v58 = vshrl.u32 %v7020_v39, 16  ;;  %v576_v54 = vshll.u32 %v7020_v39, 16 }
  0x73   : > { %v5103_v63 = vcombine.low %v537_v28, %v547_v15  ;;  %v556_v61 = vrot.slane %v555_v62, 4  ;;  %v2874_v2 = vsel %vm6968_vm7, %v2872_v56, %v2873_v51  ;;  %v582_v6 = vshll.u32 %v7028_v43, 16  ;;  %6362 = vmatprep.subr.msk.bf16.mxu0 %vm791_vm0, %v7033_v22 }
  0x74   : > { %v586_v7 = vshrl.u32 %v7028_v43, 16  ;;  %v566_v41 = vrot.slane %v565_v46, 4  ;;  %v5388_v17 = vcombine.low %v2871_v55, %v2874_v2  ;;  %v575_v10 = vrot.slane %v573_v58, 4  ;;  %v7084_v46 = vld [vmem:[%s6716_s21 + $0xa0] sm:$0xf] }
  0x75   : > { %5809 = vmatmul.mubr.msk.bf16.gmra.mrb[16].mxu1 %vm742_vm3, %v5103_v63  ;;  %v578_v11 = vrot.slane %v576_v54, 5  ;;  %v561_v14 = vsel %vm6742_vm4, %v556_v61, %v560_v48  ;;  %v584_v18 = vrot.slane %v582_v6, 5  ;;  %v592_v25 = vshll.u32 %v300_v52, 16  ;;  %v7073_v52 = vld [vmem:[%s6716_s21 + $0x9c] sm:$0xf] }
  0x76   : > { %v588_v21 = vrot.slane %v586_v7, 4  ;;  %v571_v31 = vsel %vm6742_vm4, %v566_v41, %v570_v50  ;;  %5966 = vmatprep.mubr.msk.bf16.mxu0 %vm742_vm3, %v5388_v17  ;;  %v5372_v1 = vrot.slane %v5356_v57, 9  ;;  %v2877_v28 = vrot.slane %v6821_v33, 5 }
  0x77   : > { %v579_v38 = vor.u32 %v578_v11, %v575_v10  ;;  %v5104_v42 = vcombine.low %v561_v14, %v571_v31  ;;  %v594_v45 = vrot.slane %v592_v25, 5  ;;  %v2880_v47 = vrot.slane %v6829_v40, 5  ;;  %v302_v10 = vld [vmem:[%s6716_s21 + $0xa4] sm:$0x1]  ;;  %v5358_v11 = vld [vmem:[%s6716_s21 + $0x48] sm:$0xe] }
  0x78   : > { %v589_v44 = vor.u32 %v588_v21, %v584_v18  ;;  %v2878_v49 = vsel %vm6968_vm7, %v5372_v1, %v2877_v28  ;;  %v2879_v50 = vrot.slane %v2877_v28, 4  ;;  %v597_v51 = vshrl.u32 %v7052_v5, 16 }
  0x79   : > { %v580_v48 = vrot.slane %v579_v38, 4  ;;  %5812 = vmatprep.mubr.msk.bf16.mxu1 %vm742_vm3, %v5104_v42  ;;  %v600_v15 = vshll.u32 %v7052_v5, 16  ;;  %v606_v62 = vshll.u32 %v7064_v30, 16  ;;  %v610_v40 = vshrl.u32 %v7064_v30, 16 }
  0x7a   : > { %v590_v33 = vrot.slane %v589_v44, 4  ;;  %v2881_v56 = vsel %vm6968_vm7, %v2879_v50, %v2880_v47  ;;  %v599_v57 = vrot.slane %v597_v51, 4  ;;  %v616_v63 = vshll.u32 %v301_v60, 16 }
  0x7b   : > { %v585_v55 = vsel %vm6742_vm4, %v580_v48, %v584_v18  ;;  %v5389_v54 = vcombine.low %v2878_v49, %v2881_v56  ;;  %v602_v61 = vrot.slane %v600_v15, 5  ;;  %v608_v2 = vrot.slane %v606_v62, 5  ;;  %v7110_v56 = vld [vmem:[%s6716_s21 + $0xac] sm:$0xf] }
  0x7c   : > { %v595_v58 = vsel %vm6742_vm4, %v590_v33, %v594_v45  ;;  %v612_v7 = vrot.slane %v610_v40, 4  ;;  %v618_v41 = vrot.slane %v616_v63, 5  ;;  %v5373_v17 = vrot.slane %v5357_v26, 9  ;;  %v7105_v33 = vld [vmem:[%s6716_s21 + $0xa8] sm:$0xf] }
  0x7d   : > { %v5105_v6 = vcombine.low %v585_v55, %v595_v58  ;;  %5967 = vmatmul.mubr.msk.bf16.gmra.mrb[4].mxu0 %vm742_vm3, %v5389_v54  ;;  %v603_v14 = vor.u32 %v602_v61, %v599_v57  ;;  %v2884_v18 = vrot.slane %v6846_v20, 5  ;;  %v2887_v21 = vrot.slane %v6851_v34, 5  ;;  %v303_v61 = vld [vmem:[%s6716_s21 + $0xb0] sm:$0x1] }
  0x7e   : > { %v621_v25 = vshrl.u32 %v7073_v52, 16  ;;  %v613_v31 = vor.u32 %v612_v7, %v608_v2  ;;  %v624_v38 = vshll.u32 %v7073_v52, 16  ;;  %v630_v1 = vshll.u32 %v7084_v46, 16 }
  0x7f   : > { %5813 = vmatmul.mubr.msk.bf16.gmra.mrb[20].mxu1 %vm742_vm3, %v5105_v6  ;;  %v634_v28 = vshrl.u32 %v7084_v46, 16  ;;  %v604_v60 = vrot.slane %v603_v14, 4  ;;  %v2885_v42 = vsel %vm6968_vm7, %v5373_v17, %v2884_v18  ;;  %v2886_v20 = vrot.slane %v2884_v18, 4  ;;  %v7125_v14 = vld [vmem:[%s6716_s21 + $0xb4] sm:$0xf] }
  0x80   : > { %v623_v44 = vrot.slane %v621_v25, 4  ;;  %v614_v34 = vrot.slane %v613_v31, 4  ;;  %v626_v45 = vrot.slane %v624_v38, 5  ;;  %v632_v47 = vrot.slane %v630_v1, 5 }
  0x81   : > { %v636_v26 = vrot.slane %v634_v28, 4  ;;  %v609_v48 = vsel %vm6742_vm4, %v604_v60, %v608_v2  ;;  %v2888_v49 = vsel %vm6968_vm7, %v2886_v20, %v2887_v21  ;;  %v640_v50 = vshll.u32 %v302_v10, 16  ;;  %v5359_v2 = vld [vmem:[%s6716_s21 + $0x54] sm:$0xe] }
  0x82   : > { %v5374_v51 = vrot.slane %v5358_v11, 9  ;;  %v619_v15 = vsel %vm6742_vm4, %v614_v34, %v618_v41  ;;  %v5390_v62 = vcombine.low %v2885_v42, %v2888_v49  ;;  %v627_v40 = vor.u32 %v626_v45, %v623_v44  ;;  %v7134_v42 = vld [vmem:[%s6716_s21 + $0xb8] sm:$0xf]  ;;  %v304_v49 = vld [vmem:[%s6716_s21 + $0xbc] sm:$0x1] }
  0x83   : > { %v637_v55 = vor.u32 %v636_v26, %v632_v47  ;;  %v5106_v57 = vcombine.low %v609_v48, %v619_v15  ;;  %v642_v63 = vrot.slane %v640_v50, 5  ;;  %v2891_v58 = vrot.slane %v6869_v8, 5 }
  0x84   : > { %v2894_v54 = vrot.slane %v6877_v23, 5  ;;  %5970 = vmatprep.mubr.msk.bf16.mxu0 %vm742_vm3, %v5390_v62  ;;  %v628_v6 = vrot.slane %v627_v40, 4  ;;  %v645_v41 = vshrl.u32 %v7105_v33, 16  ;;  %v648_v17 = vshll.u32 %v7105_v33, 16 }
  0x85   : > { %v638_v7 = vrot.slane %v637_v55, 4  ;;  %5816 = vmatprep.mubr.msk.bf16.mxu1 %vm742_vm3, %v5106_v57  ;;  %v2892_v10 = vsel %vm6968_vm7, %v5374_v51, %v2891_v58  ;;  %v2893_v11 = vrot.slane %v2891_v58, 4  ;;  %v654_v8 = vshll.u32 %v7110_v56, 16  ;;  %v5360_v55 = vld [vmem:[%s6716_s21 + $0x60] sm:$0xe] }
  0x86   : > { %v658_v23 = vshrl.u32 %v7110_v56, 16  ;;  %v633_v18 = vsel %vm6742_vm4, %v628_v6, %v632_v47  ;;  %v647_v25 = vrot.slane %v645_v41, 4  ;;  %v650_v31 = vrot.slane %v648_v17, 5  ;;  %v5361_v6 = vld [vmem:[%s6716_s21 + $0x6c] sm:$0xe] }
  0x87   : > { %v643_v21 = vsel %vm6742_vm4, %v638_v7, %v642_v63  ;;  %v2895_v1 = vsel %vm6968_vm7, %v2893_v11, %v2894_v54  ;;  %v656_v28 = vrot.slane %v654_v8, 5  ;;  %v664_v34 = vshll.u32 %v303_v61, 16  ;;  %v5297_v11 = vld [vmem:[%s6716_s21 + $0x70] sm:$0xf]  ;;  %v5298_v8 = vld [vmem:[%s6716_s21 + $0x74] sm:$0x1] }
  0x88   : > { %v5107_v38 = vcombine.low %v633_v18, %v643_v21  ;;  %v660_v60 = vrot.slane %v658_v23, 4  ;;  %v5391_v20 = vcombine.low %v2892_v10, %v2895_v1  ;;  %v651_v44 = vor.u32 %v650_v31, %v647_v25 }
  0x89   : > { %v5375_v45 = vrot.slane %v5359_v2, 9  ;;  %v2898_v26 = vrot.slane %v6900_v4, 5  ;;  %v2901_v48 = vrot.slane %v6906_v12, 5  ;;  %v669_v50 = vshrl.u32 %v7125_v14, 16 }
  0x8a   : > { %5817 = vmatmul.mubr.msk.bf16.gmra.mrb[24].mxu1 %vm742_vm3, %v5107_v38  ;;  %v661_v47 = vor.u32 %v660_v60, %v656_v28  ;;  %5971 = vmatmul.mubr.msk.bf16.gmra.mrb[8].mxu0 %vm742_vm3, %v5391_v20  ;;  %v652_v51 = vrot.slane %v651_v44, 4  ;;  %v666_v15 = vrot.slane %v664_v34, 5  ;;  %v672_v62 = vshll.u32 %v7125_v14, 16 }
  0x8b   : > { %v678_v40 = vshll.u32 %v7134_v42, 16  ;;  %v2899_v4 = vsel %vm6968_vm7, %v5375_v45, %v2898_v26  ;;  %v2900_v12 = vrot.slane %v2898_v26, 4  ;;  %v671_v63 = vrot.slane %v669_v50, 4 }
  0x8c   : > { %v662_v57 = vrot.slane %v661_v47, 4  ;;  %v657_v58 = vsel %vm6742_vm4, %v652_v51, %v656_v28  ;;  %v674_v54 = vrot.slane %v672_v62, 5  ;;  %v682_v2 = vshrl.u32 %v7134_v42, 16  ;;  %v5362_v47 = vld [vmem:[%s6716_s21 + $0x78] sm:$0xe] }
  0x8d   : > { %v680_v61 = vrot.slane %v678_v40, 5  ;;  %v2902_v41 = vsel %vm6968_vm7, %v2900_v12, %v2901_v48  ;;  %v688_v17 = vshll.u32 %v304_v49, 16  ;;  %v5376_v10 = vrot.slane %v5360_v55, 9  ;;  %v6470_v51 = vld [vmem:[%s6716_s21] sm:$0xf] }
  0x8e   : > { %v667_v7 = vsel %vm6742_vm4, %v662_v57, %v666_v15  ;;  %v5392_v18 = vcombine.low %v2899_v4, %v2902_v41  ;;  %v675_v21 = vor.u32 %v674_v54, %v671_v63  ;;  %v684_v25 = vrot.slane %v682_v2, 4  ;;  %v7172_v15 = vld [vmem:[%s6716_s21 + $0x4] sm:$0xf]  ;;  %v7176_v40 = vld [vmem:[%s6716_s21 + $0x7c] sm:$0xf] }
  0x8f   : > { %v5108_v23 = vcombine.low %v657_v58, %v667_v7  ;;  %v690_v31 = vrot.slane %v688_v17, 5  ;;  %v2905_v38 = vrot.slane %v6930_v59, 5  ;;  %v2908_v1 = vrot.slane %v6937_v9, 5  ;;  %v7179_v55 = vld [vmem:[%s6716_s21 + $0x80] sm:$0x1] }
  0x90   : > { %v5377_v28 = vrot.slane %v5361_v6, 9  ;;  %5974 = vmatprep.mubr.msk.bf16.mxu0 %vm742_vm3, %v5392_v18  ;;  %v676_v60 = vrot.slane %v675_v21, 4  ;;  %v685_v20 = vor.u32 %v684_v25, %v680_v61  ;;  %v2912_v44 = vrot.slane %v5297_v11, 5  ;;  %v5303_v57 = vld [vmem:[%s6716_s21 + $0x88] sm:$0xf] }
  0x91   : > { %5820 = vmatprep.mubr.msk.bf16.mxu1 %vm742_vm3, %v5108_v23  ;;  %v2915_v34 = vrot.slane %v5298_v8, 5  ;;  %v2906_v45 = vsel %vm6968_vm7, %v5376_v10, %v2905_v38  ;;  %v2907_v59 = vrot.slane %v2905_v38, 4  ;;  %v5126_v62 = vcombine.low %v6470_v51, %v7172_v15  ;;  %v5304_v54 = vld [vmem:[%s6716_s21 + $0x8c] sm:$0x1]  ;;  %v5306_v17 = vld [vmem:[%s6716_s21 + $0x94] sm:$0xf] }
  0x92   : > { %v681_v9 = vsel %vm6742_vm4, %v676_v60, %v680_v61  ;;  %v686_v26 = vrot.slane %v685_v20, 4  ;;  %v2913_v48 = vsel %vm6968_vm7, %v5377_v28, %v2912_v44  ;;  %v2914_v49 = vrot.slane %v2912_v44, 4  ;;  %v5363_v61 = vld [vmem:[%s6716_s21 + $0x84] sm:$0xe]  ;;  %v5364_v23 = vld [vmem:[%s6716_s21 + $0x90] sm:$0xe] }
  0x93   : > { %v2909_v50 = vsel %vm6968_vm7, %v2907_v59, %v2908_v1  ;;  %v5378_v58 = vrot.slane %v5362_v47, 9  ;;  %v2919_v7 = vrot.slane %v7176_v40, 5  ;;  %v2922_v41 = vrot.slane %v7179_v55, 5  ;;  %v5307_v25 = vld [vmem:[%s6716_s21 + $0x98] sm:$0x1] }
  0x94   : > { %v691_v4 = vsel %vm6742_vm4, %v686_v26, %v690_v31  ;;  %v5393_v12 = vcombine.low %v2906_v45, %v2909_v50  ;;  %v2916_v63 = vsel %vm6968_vm7, %v2914_v49, %v2915_v34  ;;  %v5379_v10 = vrot.slane %v5363_v61, 9  ;;  %v5309_v31 = vld [vmem:[%s6716_s21 + $0xa0] sm:$0xf]  ;;  %v5310_v60 = vld [vmem:[%s6716_s21 + $0xa4] sm:$0x1] }
  0x95   : > { %v5109_v2 = vcombine.low %v681_v9, %v691_v4  ;;  %v5394_v6 = vcombine.low %v2913_v48, %v2916_v63  ;;  %v2926_v11 = vrot.slane %v5303_v57, 5  ;;  %v2929_v8 = vrot.slane %v5304_v54, 5  ;;  %v5365_v20 = vld [vmem:[%s6716_s21 + $0x9c] sm:$0xe]  ;;  %v6472_v44 = vld [vmem:[%s6716_s21 + $0xc] sm:$0xf] }
  0x96   : > { %5975 = vmatmul.mubr.msk.bf16.gmra.mrb[12].mxu0 %vm742_vm3, %v5393_v12  ;;  %v2920_v18 = vsel %vm6968_vm7, %v5378_v58, %v2919_v7  ;;  %v2921_v21 = vrot.slane %v2919_v7, 4  ;;  %v2933_v28 = vrot.slane %v5306_v17, 5  ;;  %v7206_v34 = vld [vmem:[%s6716_s21 + $0x10] sm:$0xf]  ;;  %v6474_v47 = vld [vmem:[%s6716_s21 + $0x18] sm:$0xf] }
  0x97   : > { %5821 = vmatmul.mubr.msk.bf16.gmra.mrb[28].mxu1 %vm742_vm3, %v5109_v2  ;;  %5978 = vmatprep.mubr.msk.bf16.mxu0 %vm742_vm3, %v5394_v6  ;;  %v2927_v38 = vsel %vm6968_vm7, %v5379_v10, %v2926_v11  ;;  %v2928_v1 = vrot.slane %v2926_v11, 4  ;;  %v5127_v45 = vcombine.low %v6472_v44, %v7206_v34  ;;  %v7213_v9 = vld [vmem:[%s6716_s21 + $0x1c] sm:$0xf]  ;;  %v5380_v48 = vrot.slane %v5364_v23, 9  ;;  %v5312_v57 = vld [vmem:[%s6716_s21 + $0xac] sm:$0xf] }
  0x98   : > { %5826 = vmatprep.mubr.msk.bf16.mxu1 %vm742_vm3, %v5126_v62  ;;  %v2923_v59 = vsel %vm6968_vm7, %v2921_v21, %v2922_v41  ;;  %v5128_v26 = vcombine.low %v6474_v47, %v7213_v9  ;;  %v2935_v51 = vrot.slane %v2933_v28, 4  ;;  %v2936_v62 = vrot.slane %v5307_v25, 5  ;;  %v6476_v54 = vld [vmem:[%s8579_s1 + $0x4] sm:$0x3]  ;;  %v5315_v2 = vld [vmem:[%s6716_s21 + $0xb8] sm:$0xf] }
  0x99   : > { %v5395_v49 = vcombine.low %v2920_v18, %v2923_v59  ;;  %v2930_v50 = vsel %vm6968_vm7, %v2928_v1, %v2929_v8  ;;  %v5381_v12 = vrot.slane %v5365_v20, 9  ;;  %v2940_v63 = vrot.slane %v5309_v31, 5  ;;  %v7228_v7 = vld [vmem:[%s8579_s1 + $0x6] sm:$0x3]  ;;  %v5313_v10 = vld [vmem:[%s6716_s21 + $0xb0] sm:$0x1] }
  0x9a   : > { %v5396_v4 = vcombine.low %v2927_v38, %v2930_v50  ;;  %v2943_v58 = vrot.slane %v5310_v60, 5  ;;  %v1510_v61 = vsel %vm791_vm0, %v6476_v54, 0  ;;  %v2934_v41 = vsel %vm6968_vm7, %v5380_v48, %v2933_v28  ;;  %v5366_v11 = vld [vmem:[%s6716_s21 + $0xa8] sm:$0xe]  ;;  %v5316_v25 = vld [vmem:[%s6716_s21 + $0xbc] sm:$0x1] }
  0x9b   : > { %v2942_v6 = vrot.slane %v2940_v63, 4  ;;  %v2937_v17 = vsel %vm6968_vm7, %v2935_v51, %v2936_v62  ;;  %v2947_v8 = vrot.slane %v5312_v57, 5  ;;  %v2941_v23 = vsel %vm6968_vm7, %v5381_v12, %v2940_v63  ;;  %v5367_v31 = vld [vmem:[%s6716_s21 + $0xb4] sm:$0xe]  ;;  %v6477_v38 = vld [vmem:[%s6716_s21 + $0x24] sm:$0xf] }
  0x9c   : > { %v2954_v21 = vrot.slane %v5315_v2, 5  ;;  %v7249_v1 = vld [vmem:[%s6716_s21 + $0x28] sm:$0xf]  ;;  %v5397_v60 = vcombine.low %v2934_v41, %v2937_v17  ;;  %v5382_v44 = vrot.slane %v5366_v11, 9  ;;  %v2950_v59 = vrot.slane %v5313_v10, 5 }
  0x9d   : > { %v2944_v18 = vsel %vm6968_vm7, %v2942_v6, %v2943_v58  ;;  %v5129_v28 = vcombine.low %v6477_v38, %v7249_v1  ;;  %v6479_v47 = vld [vmem:[%s6716_s21 + $0x30] sm:$0xf]  ;;  %v2957_v51 = vrot.slane %v5316_v25, 5  ;;  %v5318_v62 = vld [vmem:[%s6716_s21 + $0xc4] sm:$0xf]  ;;  %v2342_v25 = vshrl.u32 %v7176_v40, 16 }
  0x9e   : > { %5979 = vmatmul.mubr.msk.bf16.gmra.mrb[16].mxu0 %vm742_vm3, %v5395_v49  ;;  %v5398_v20 = vcombine.low %v2941_v23, %v2944_v18  ;;  %v5383_v49 = vrot.slane %v5367_v31, 9  ;;  %v2956_v50 = vrot.slane %v2954_v21, 4  ;;  %v2948_v57 = vsel %vm6968_vm7, %v5382_v44, %v2947_v8  ;;  %v5368_v12 = vld [vmem:[%s6716_s21 + $0xc0] sm:$0xe]  ;;  %v6481_v41 = vld [vmem:[%s6716_s21 + $0x3c] sm:$0xf] }
  0x9f   : > { %5827 = vmatmul.mubr.msk.bf16.vlgmr.msra.gmra.mrb[0].mxu1 %vm742_vm3, %v5127_v45  ;;  %5982 = vmatprep.mubr.msk.bf16.mxu0 %vm742_vm3, %v5396_v4  ;;  %v2949_v45 = vrot.slane %v2947_v8, 4  ;;  %v2961_v63 = vrot.slane %v5318_v62, 5  ;;  %v5384_v6 = vrot.slane %v5368_v12, 9  ;;  %v7274_v17 = vld [vmem:[%s6716_s21 + $0x40] sm:$0xf]  ;;  %v5132_v18 = vcombine.low %v6881_v27, %v6884_v36  ;;  %v6433_v62 = vld [vmem:[%s6716_s21 + $0x24] sm:$0xff]  }
  0xa0   : > { %5859 = vmatpush3.bf16.msra.mxu1 %v1510_v61  ;;  %5830 = vmatprep.mubr.msk.bf16.mxu1 %vm742_vm3, %v5128_v26  ;;  %v7254_v26 = vld [vmem:[%s6716_s21 + $0x34] sm:$0xf]  ;;  %v2955_v58 = vsel %vm6968_vm7, %v5383_v49, %v2954_v21  ;;  %v2958_v54 = vsel %vm6968_vm7, %v2956_v50, %v2957_v51  ;;  %v5319_v61 = vld [vmem:[%s6716_s21 + $0xc8] sm:$0x1]  ;;  %v5131_v10 = vcombine.low %v6481_v41, %v7274_v17  ;;  %v2338_v21 = vshll.u32 %v7176_v40, 16 }
  0xa1   : > { %6357 = vmatprep.subr.msk.bf16.mxu1 %vm791_vm0, %v7228_v7  ;;  %v5130_v48 = vcombine.low %v6479_v47, %v7254_v26  ;;  %v2951_v4 = vsel %vm6968_vm7, %v2949_v45, %v2950_v59  ;;  %v5400_v11 = vcombine.low %v2955_v58, %v2958_v54  ;;  %v2963_v8 = vrot.slane %v2961_v63, 4  ;;  %v1248_v45 = vld [vmem:[%s6716_s21] sm:$0xe]  ;;  %v1249_v59 = vld [vmem:[%s6716_s21 + $0xc] sm:$0xe] }
  0xa2   : > { %v5399_v2 = vcombine.low %v2948_v57, %v2951_v4  ;;  %v2964_v23 = vrot.slane %v5319_v61, 5  ;;  %v2962_v31 = vsel %vm6968_vm7, %v5384_v6, %v2961_v63  ;;  %v7289_v27 = vrot.slane %v2338_v21, 5  ;;  %v1252_v41 = vld [vmem:[%s6716_s21 + $0x30] sm:$0xe] }
  0xa3   : > { %v2344_v36 = vrot.slane %v2342_v25, 4  ;;  %v5134_v44 = vcombine.low %v6941_v19, %v6947_v35  ;;  %v2348_v47 = vshll.u32 %v7179_v55, 16  ;;  %v5158_v19 = vrot.slane %v1248_v45, 9 }
  0xa4   : > { %v2965_v38 = vsel %vm6968_vm7, %v2963_v8, %v2964_v23  ;;  %8603 = vst [vmem:[#allocation6_spill] sm:$0xff] %v7289_v27  ;;  %v5159_v35 = vrot.slane %v1249_v59, 9  ;;  %v1315_v4 = vrot.slane %v7213_v9, 5  ;;  %v1322_v12 = vrot.slane %v7249_v1, 5  ;;  %v1253_v8 = vld [vmem:[%s6716_s21 + $0x3c] sm:$0xe] }
  0xa5   : > { %v5401_v40 = vcombine.low %v2962_v31, %v2965_v38  ;;  %v2345_v49 = vor.u32 %v2344_v36, %v7289_v27  ;;  %v7309_v51 = vrot.slane %v2348_v47, 5  ;;  %v5135_v58 = vcombine.low %v6962_v0, %v6975_v29  ;;  %v1254_v31 = vld [vmem:[%s6716_s21 + $0x48] sm:$0xe]  ;;  %v6487_v59 = vld [vmem:[%s6716_s21 + $0x38] sm:$0x1] }
  0xa6   : > { %5983 = vmatmul.mubr.msk.bf16.gmra.mrb[20].mxu0 %vm742_vm3, %v5397_v60  ;;  %v5133_v60 = vcombine.low %v6910_v24, %v6916_v37  ;;  %v6484_v24 = vld [vmem:[%s6716_s21 + $0x14] sm:$0x1]  ;;  %v4150_v54 = vsel %vm791_vm0, %v7033_v22, 0  ;;  %v5136_v61 = vcombine.low %v6994_v53, %v7001_v16  ;;  %v5137_v6 = vcombine.low %v7020_v39, %v7028_v43  ;;  %v6485_v16 = vld [vmem:[%s6716_s21 + $0x20] sm:$0x1] }
  0xa7   : > { %5831 = vmatmul.mubr.msk.bf16.gmra.mrb[4].mxu1 %vm742_vm3, %v5129_v28  ;;  %5986 = vmatprep.mubr.msk.bf16.mxu0 %vm742_vm3, %v5398_v20  ;;  %v1308_v28 = vrot.slane %v7206_v34, 5  ;;  %v6431_v20 = vld [vmem:[%s6716_s21 + $0x18] sm:$0xff]   ;;  %v6483_v34 = vld [vmem:[%s6716_s21 + $0x8] sm:$0x1]  ;;  %v1311_v37 = vrot.slane %v6484_v24, 5  ;;  %8604 = vst [vmem:[#allocation7_spill] sm:$0xff] %v7309_v51  ;;  %v5138_v9 = vcombine.low %v7052_v5, %v7064_v30 }
  0xa8   : > { %5834 = vmatprep.mubr.msk.bf16.mxu1 %vm742_vm3, %v5130_v48  ;;  %v1301_v48 = vrot.slane %v7172_v15, 5  ;;  %v1304_v50 = vrot.slane %v6483_v34, 5  ;;  %v1250_v15 = vld [vmem:[%s6716_s21 + $0x18] sm:$0xe]  ;;  %v7314_v63 = vrot.slane %v2345_v49, 4  ;;  %v1318_v22 = vrot.slane %v6485_v16, 5 }
  0xa9   : > { %v1310_v55 = vrot.slane %v1308_v28, 4  ;;  %v5160_v1 = vrot.slane %v1250_v15, 9  ;;  %v7336_v29 = vsel %vm6968_vm7, %v5159_v35, %v1308_v28  ;;  %v1324_v25 = vrot.slane %v1322_v12, 4  ;;  %v5483_v24 = vld [vmem:[%s6716_s21 + $0x18] sm:$0xf] }
  0xaa   : > { %v1303_v57 = vrot.slane %v1301_v48, 4  ;;  %8605 = vst [vmem:[#allocation8_spill] sm:$0xff] %v7314_v63  ;;  %v7332_v0 = vsel %vm6968_vm7, %v5158_v19, %v1301_v48  ;;  %v1332_v47 = vrot.slane %v6487_v59, 5  ;;  %v7373_v49 = vsel %vm791_vm0, %v7228_v7, 0  ;;  %v5484_v7 = vld [vmem:[%s6716_s21 + $0x1c] sm:$0xf] }
  0xab   : > { %v7340_v53 = vsel %vm6968_vm7, %v1310_v55, %v1311_v37  ;;  %v7377_v34 = vsel %vm6968_vm7, %v5160_v1, %v1315_v4  ;;  %v6437_v37 = vld [vmem:[%s6716_s21 + $0x3c] sm:$0xff]   ;;  %v5163_v35 = vrot.slane %v1253_v8, 9  ;;  %v6488_v55 = vld [vmem:[%s6716_s21 + $0x44] sm:$0x1]  ;;  %v3671_v8 = vshll.u32 %v5483_v24, 16 }
  0xac   : > { %v7351_v23 = vsel %vm6968_vm7, %v1303_v57, %v1304_v50  ;;  %v1255_v50 = vld [vmem:[%s6716_s21 + $0x54] sm:$0xe]  ;;  %v1339_v15 = vrot.slane %v6488_v55, 5  ;;  %v5487_v39 = vld [vmem:[%s6716_s21 + $0x28] sm:$0xf] }
  0xad   : > { %v6495_v5 = vld [vmem:[%s6716_s21 + $0x70] sm:$0xf] }
  0xae   : > { %5987 = vmatmul.mubr.msk.bf16.gmra.mrb[24].mxu0 %vm742_vm3, %v5399_v2  ;;  %v1251_v2 = vld [vmem:[%s6716_s21 + $0x24] sm:$0xe]  ;;  %v1364_v30 = vrot.slane %v6495_v5, 5 }
  0xaf   : > { %5835 = vmatmul.mubr.msk.bf16.gmra.mrb[8].mxu1 %vm742_vm3, %v5131_v10  ;;  %5990 = vmatprep.mubr.msk.bf16.mxu0 %vm742_vm3, %v5400_v11  ;;  %v1329_v10 = vrot.slane %v7254_v26, 5  ;;  %v6435_v11 = vld [vmem:[%s6716_s21 + $0x30] sm:$0xff]   ;;  %v5161_v21 = vrot.slane %v1251_v2, 9 }
  0xb0   : > { %5838 = vmatprep.mubr.msk.bf16.mxu1 %vm742_vm3, %v5132_v18  ;;  %v7347_v26 = vld [vmem:[%s8579_s1 + $0x10] sm:$0x3]  ;;  %v1317_v18 = vrot.slane %v1315_v4, 4  ;;  %v1366_v48 = vrot.slane %v1364_v30, 4 }
  0xb1   : > { %v1331_v45 = vrot.slane %v1329_v10, 4  ;;  %v7384_v19 = vsel %vm6968_vm7, %v5161_v21, %v1322_v12  ;;  %v3681_v21 = vshrl.u32 %v5484_v7, 16 }
  0xb2   : > { %v7393_v4 = vsel %vm6968_vm7, %v1317_v18, %v1318_v22  ;;  %v3668_v22 = vshrl.u32 %v5483_v24, 16  ;;  %v3677_v18 = vshll.u32 %v5484_v7, 16  ;;  %v5486_v24 = vld [vmem:[%s6716_s21 + $0x24] sm:$0xf] }
  0xb3   : > { %v7406_v1 = vsel %vm6968_vm7, %v1331_v45, %v1332_v47 }
  0xb4   : > { %v3670_v43 = vrot.slane %v3668_v22, 4  ;;  %v7448_v7 = vrot.slane %v3677_v18, 5  ;;  %v3695_v22 = vshll.u32 %v5486_v24, 16  ;;  %v3705_v18 = vshrl.u32 %v5487_v39, 16 }
  0xb6   : > { %5991 = vmatmul.mubr.msk.bf16.gmra.mrb[28].mxu0 %vm742_vm3, %v5401_v40  ;;  %v6486_v40 = vld [vmem:[%s6716_s21 + $0x2c] sm:$0x1]  ;;  %v3697_v27 = vrot.slane %v3695_v22, 5 }
  0xb7   : > { %5839 = vmatmul.mubr.msk.bf16.gmra.mrb[12].mxu1 %vm742_vm3, %v5133_v60  ;;  %5996 = vmatprep.mubr.msk.bf16.mxu0 %vm742_vm3, %v6431_v20  ;;  %v1325_v28 = vrot.slane %v6486_v40, 5  ;;  %v1336_v60 = vrot.slane %v7274_v17, 5  ;;  %v6491_v40 = vld [vmem:[%s6716_s21 + $0x50] sm:$0x1]  ;;  %v6496_v17 = vld [vmem:[%s6716_s21 + $0x74] sm:$0x1] }
  0xb8   : > { %5842 = vmatprep.mubr.msk.bf16.mxu1 %vm742_vm3, %v5134_v44  ;;  %v5162_v44 = vrot.slane %v1252_v41, 9  ;;  %v5165_v41 = vrot.slane %v1255_v50, 9  ;;  %v1256_v50 = vld [vmem:[%s6716_s21 + $0x60] sm:$0xe]  ;;  %v5488_v20 = vld [vmem:[%s6716_s21 + $0x2c] sm:$0x1] }
  0xb9   : > { %v1338_v12 = vrot.slane %v1336_v60, 4  ;;  %v7419_v45 = vsel %vm6968_vm7, %v5163_v35, %v1336_v60  ;;  %v6492_v35 = vld [vmem:[%s6716_s21 + $0x5c] sm:$0x1] }
  0xba   : > { %v7402_v2 = vsel %vm6968_vm7, %v5162_v44, %v1329_v10  ;;  %v1353_v55 = vrot.slane %v6492_v35, 5  ;;  %v1257_v35 = vld [vmem:[%s6716_s21 + $0x6c] sm:$0xe] }
  0xbb   : > { %v7423_v59 = vsel %vm6968_vm7, %v1338_v12, %v1339_v15  ;;  %v6493_v15 = vld [vmem:[%s6716_s21 + $0x64] sm:$0xf]  ;;  %v3683_v12 = vrot.slane %v3681_v21, 4  ;;  %v5167_v5 = vrot.slane %v1257_v35, 9 }
  0xbc   : > { %v6443_v21 = vld [vmem:[%s6716_s21 + $0x60] sm:$0xff]  }
  0xbe   : > { %5997 = vmatmul.mubr.msk.bf16.vlgmr.msra.gmra.mrb[0].mxu0 %vm742_vm3, %v6433_v62  ;;  %v6489_v62 = vld [vmem:[%s6716_s21 + $0x4c] sm:$0xf] }
  0xbf   : > { %5843 = vmatmul.mubr.msk.bf16.gmra.mrb[16].mxu1 %vm742_vm3, %v5135_v58  ;;  %6029 = vmatpush3.bf16.msra.mxu0 %v4150_v54  ;;  %v1343_v57 = vrot.slane %v6489_v62, 5  ;;  %v7397_v58 = vsel %vm6968_vm7, %v1324_v25, %v1325_v28  ;;  %v5164_v54 = vrot.slane %v1254_v31, 9  ;;  %v1346_v28 = vrot.slane %v6491_v40, 5 }
  0xc0   : > { %5846 = vmatprep.mubr.msk.bf16.mxu1 %vm742_vm3, %v5136_v61  ;;  %6000 = vmatprep.mubr.msk.bf16.mxu0 %vm742_vm3, %v6435_v11  ;;  %v6439_v61 = vld [vmem:[%s6716_s21 + $0x48] sm:$0xff]   ;;  %v6490_v11 = vld [vmem:[%s6716_s21 + $0x58] sm:$0xf]  ;;  %v1357_v62 = vrot.slane %v6493_v15, 5  ;;  %v5490_v15 = vld [vmem:[%s6716_s21 + $0x34] sm:$0xf] }
  0xc1   : > { %6363 = vmatprep.subr.msk.bf16.mxu0 %vm791_vm0, %v7347_v26  ;;  %v1350_v16 = vrot.slane %v6490_v11, 5  ;;  %v1345_v31 = vrot.slane %v1343_v57, 4  ;;  %v7427_v47 = vsel %vm6968_vm7, %v5164_v54, %v1343_v57  ;;  %v5485_v57 = vld [vmem:[%s6716_s21 + $0x20] sm:$0x1]  ;;  %v5489_v54 = vld [vmem:[%s6716_s21 + $0x30] sm:$0xf] }
  0xc2   : > { %v5166_v11 = vrot.slane %v1256_v50, 9  ;;  %v3719_v50 = vshll.u32 %v5489_v54, 16  ;;  %v3687_v25 = vshll.u32 %v5485_v57, 16  ;;  %v3725_v36 = vshll.u32 %v5490_v15, 16 }
  0xc3   : > { %v7438_v60 = vsel %vm6968_vm7, %v5165_v41, %v1350_v16  ;;  %v7454_v41 = vsel %vm6968_vm7, %v1345_v31, %v1346_v28  ;;  %v1359_v31 = vrot.slane %v1357_v62, 4  ;;  %v3716_v28 = vshrl.u32 %v5489_v54, 16 }
  0xc4   : > { %v7496_v35 = vrot.slane %v3725_v36, 5 }
  0xc6   : > { %6001 = vmatmul.mubr.msk.bf16.gmra.mrb[4].mxu0 %vm742_vm3, %v6437_v37  ;;  %v1352_v37 = vrot.slane %v1350_v16, 4  ;;  %v6494_v16 = vld [vmem:[%s6716_s21 + $0x68] sm:$0x1] }
  0xc7   : > { %5847 = vmatmul.mubr.msk.bf16.gmra.mrb[20].mxu1 %vm742_vm3, %v5137_v6  ;;  %6004 = vmatprep.mubr.msk.bf16.mxu0 %vm742_vm3, %v6439_v61  ;;  %v3673_v6 = vrot.slane %v3671_v8, 5  ;;  %v6441_v61 = vld [vmem:[%s6716_s21 + $0x54] sm:$0xff]   ;;  %v1360_v40 = vrot.slane %v6494_v16, 5  ;;  %v3701_v8 = vshll.u32 %v5487_v39, 16  ;;  %v3684_v16 = vor.u32 %v3683_v12, %v7448_v7 }
  0xc8   : > { %5850 = vmatprep.mubr.msk.bf16.mxu1 %vm742_vm3, %v5138_v9  ;;  %v3692_v9 = vshrl.u32 %v5486_v24, 16  ;;  %v7463_v44 = vsel %vm6968_vm7, %v1352_v37, %v1353_v55  ;;  %v1367_v24 = vrot.slane %v6496_v17, 5  ;;  %v3729_v39 = vshrl.u32 %v5490_v15, 16 }
  0xc9   : > { %v3674_v10 = vor.u32 %v3673_v6, %v3670_v43  ;;  %v7469_v37 = vrot.slane %v3701_v8, 5  ;;  %v3707_v55 = vrot.slane %v3705_v18, 4  ;;  %v8606_v43 = vcombine.low %v7073_v52, %v7084_v46  ;;  %v6497_v8 = vld [vmem:[%s6716_s21 + $0x7c] sm:$0xf]  ;;  %v7505_v18 = vld [vmem:[%s6716_s21 + $0x38] sm:$0x1] }
  0xca   : > { %v3694_v38 = vrot.slane %v3692_v9, 4  ;;  %v7478_v17 = vsel %vm6968_vm7, %v5166_v11, %v1357_v62  ;;  %v7482_v57 = vsel %vm6968_vm7, %v1359_v31, %v1360_v40  ;;  %v3718_v6 = vrot.slane %v3716_v28, 4  ;;  %8608 = vst [vmem:[#allocation9_spill] sm:$0xff] %v7505_v18 }
  0xcb   : > { %v3721_v12 = vrot.slane %v3719_v50, 5  ;;  %v8607_v52 = vcombine.low %v7105_v33, %v7110_v56  ;;  %v3675_v46 = vrot.slane %v3674_v10, 4  ;;  %v3685_v54 = vrot.slane %v3684_v16, 4  ;;  %v6445_v33 = vld [vmem:[%s6716_s21 + $0x6c] sm:$0xff]   ;;  %v1259_v16 = vld [vmem:[%s6716_s21 + $0x84] sm:$0xe] }
  0xcc   : > { %v3711_v62 = vshll.u32 %v5488_v20, 16  ;;  %v7490_v11 = vsel %vm6968_vm7, %v5167_v5, %v1364_v30  ;;  %v7494_v40 = vsel %vm6968_vm7, %v1366_v48, %v1367_v24  ;;  %v3731_v9 = vrot.slane %v3729_v39, 4  ;;  %v6446_v48 = vld [vmem:[%s6716_s21 + $0x78] sm:$0xff]  }
  0xcd   : > { %v3698_v10 = vor.u32 %v3697_v27, %v3694_v38  ;;  %v3708_v20 = vor.u32 %v3707_v55, %v7469_v37  ;;  %v1371_v30 = vrot.slane %v6497_v8, 5  ;;  %v3722_v38 = vor.u32 %v3721_v12, %v3718_v6  ;;  %v5492_v5 = vld [vmem:[%s6716_s21 + $0x3c] sm:$0xf] }
  0xce   : > { %6005 = vmatmul.mubr.msk.bf16.gmra.mrb[8].mxu0 %vm742_vm3, %v6441_v61  ;;  %v3689_v61 = vrot.slane %v3687_v25, 5  ;;  %v1258_v25 = vld [vmem:[%s6716_s21 + $0x78] sm:$0xe]  ;;  %v7521_v50 = vrot.slane %v3711_v62, 5  ;;  %v3732_v39 = vor.u32 %v3731_v9, %v7496_v35  ;;  %v3735_v55 = vshll.u32 %v7505_v18, 16 }
  0xcf   : > { %5851 = vmatmul.mubr.msk.bf16.gmra.mrb[24].mxu1 %vm742_vm3, %v8606_v43  ;;  %6008 = vmatprep.mubr.msk.bf16.mxu0 %vm742_vm3, %v6443_v21  ;;  %v3680_v21 = vsel %vm6742_vm4, %v3675_v46, %v7448_v7  ;;  %v5168_v24 = vrot.slane %v1258_v25, 9  ;;  %v6498_v43 = vld [vmem:[%s6716_s21 + $0x88] sm:$0xf]  ;;  %v7529_v7 = vld [vmem:[%s6716_s21 + $0x40] sm:$0xf]  ;;  %v3699_v12 = vrot.slane %v3698_v10, 4  ;;  %v8610_v62 = vcombine.low %v7125_v14, %v7134_v42 }
  0xd0   : > { %5854 = vmatprep.mubr.msk.bf16.mxu1 %vm742_vm3, %v8607_v52  ;;  %v3690_v31 = vsel %vm6742_vm4, %v3685_v54, %v3689_v61  ;;  %v1378_v6 = vrot.slane %v6498_v43, 5  ;;  %8609 = vst [vmem:[#allocation10_spill] sm:$0xff] %v7529_v7  ;;  %v3709_v52 = vrot.slane %v3708_v20, 4  ;;  %v1373_v46 = vrot.slane %v1371_v30, 4  ;;  %v6499_v54 = vld [vmem:[%s6716_s21 + $0x80] sm:$0x1] }
  0xd1   : > { %v1374_v61 = vrot.slane %v6499_v54, 5  ;;  %v3723_v9 = vrot.slane %v3722_v38, 4  ;;  %v5169_v25 = vrot.slane %v1259_v16, 9  ;;  %v3740_v8 = vshrl.u32 %v5492_v5, 16  ;;  %v6447_v10 = vld [vmem:[%s6716_s21 + $0x84] sm:$0xff]  }
  0xd2   : > { %v3743_v43 = vshll.u32 %v5492_v5, 16  ;;  %v7543_v20 = vcombine.low %v3680_v21, %v3690_v31  ;;  %v7547_v14 = vsel %vm791_vm0, %v7347_v26, 0  ;;  %v3753_v38 = vshrl.u32 %v7529_v7, 16  ;;  %v6448_v21 = vld [vmem:[%s6716_s21 + $0x90] sm:$0xff]   ;;  %v6504_v18 = vld [vmem:[%s6716_s21 + $0xa0] sm:$0xf] }
  0xd3   : > { %v3733_v16 = vrot.slane %v3732_v39, 4  ;;  %v3737_v5 = vrot.slane %v3735_v55, 5  ;;  %v1380_v54 = vrot.slane %v1378_v6, 4  ;;  %v3704_v31 = vsel %vm6742_vm4, %v3699_v12, %v7469_v37 }
  0xd4   : > { %v3714_v26 = vsel %vm6742_vm4, %v3709_v52, %v7521_v50  ;;  %v7562_v39 = vsel %vm6968_vm7, %v5168_v24, %v1371_v30  ;;  %v7566_v55 = vsel %vm6968_vm7, %v1373_v46, %v1374_v61  ;;  %v3728_v37 = vsel %vm6742_vm4, %v3723_v9, %v7496_v35  ;;  %v5498_v30 = vld [vmem:[%s6716_s21 + $0x54] sm:$0xf]  ;;  %v7583_v24 = vld [vmem:[%s6716_s21 + $0x58] sm:$0xf]  ;;  %v7588_v61 = vld [vmem:[%s6716_s21 + $0x90] sm:$0xe] }
  0xd5   : > { %v7579_v12 = vsel %vm6968_vm7, %v5169_v25, %v1378_v6  ;;  %v3742_v50 = vrot.slane %v3740_v8, 4  ;;  %v3745_v52 = vrot.slane %v3743_v43, 5  ;;  %v3755_v46 = vrot.slane %v3753_v38, 4 }
  0xd6   : > { %6009 = vmatmul.mubr.msk.bf16.gmra.mrb[12].mxu0 %vm742_vm3, %v6445_v33  ;;  %v8611_v33 = vcombine.low %v7332_v0, %v7351_v23  ;;  %v6500_v0 = vld [vmem:[%s6716_s21 + $0x8c] sm:$0x1]  ;;  %v3738_v36 = vsel %vm6742_vm4, %v3733_v16, %v3737_v5  ;;  %v3788_v25 = vshrl.u32 %v5498_v30, 16  ;;  %v3791_v8 = vshll.u32 %v5498_v30, 16 }
  0xd7   : > { %5855 = vmatmul.mubr.msk.bf16.gmra.mrb[28].mxu1 %vm742_vm3, %v8610_v62  ;;  %6012 = vmatprep.mubr.msk.bf16.mxu0 %vm742_vm3, %v6446_v48  ;;  %v3749_v48 = vshll.u32 %v7529_v7, 16  ;;  %v1381_v23 = vrot.slane %v6500_v0, 5  ;;  %v5495_v62 = vld [vmem:[%s6716_s21 + $0x48] sm:$0xf]  ;;  %v7572_v0 = vld [vmem:[%s6716_s21 + $0x4c] sm:$0xf]  ;;  %v8613_v38 = vcombine.low %v7336_v29, %v7340_v53  ;;  %v7606_v16 = vcombine.low %v3704_v31, %v3714_v26 }
  0xd8   : > { %5860 = vmatprep.mubr.msk.bf16.mxu1 %vm742_vm3, %v8611_v33  ;;  %v7569_v33 = vld [vmem:[%s6716_s21 + $0x44] sm:$0x1]  ;;  %v3764_v27 = vshrl.u32 %v5495_v62, 16  ;;  %v3767_v15 = vshll.u32 %v5495_v62, 16  ;;  %v3773_v6 = vshll.u32 %v7572_v0, 16  ;;  %v3777_v9 = vshrl.u32 %v7572_v0, 16 }
  0xd9   : > { %8612 = vst [vmem:[#allocation11_spill] sm:$0xff] %v7569_v33  ;;  %v7585_v28 = vrot.slane %v3749_v48, 5  ;;  %v7594_v35 = vsel %vm6968_vm7, %v1380_v54, %v1381_v23  ;;  %v3797_v43 = vshll.u32 %v7583_v24, 16  ;;  %v3801_v48 = vshrl.u32 %v7583_v24, 16  ;;  %v5501_v31 = vld [vmem:[%s6716_s21 + $0x60] sm:$0xf] }
  0xda   : > { %v3759_v5 = vshll.u32 %v7569_v33, 16  ;;  %v5170_v54 = vrot.slane %v7588_v61, 9  ;;  %v8614_v23 = vcombine.low %v7377_v34, %v7393_v4  ;;  %v7617_v29 = vcombine.low %v3728_v37, %v3738_v36  ;;  %v6449_v26 = vld [vmem:[%s6716_s21 + $0x9c] sm:$0xff]   ;;  %v6450_v30 = vld [vmem:[%s6716_s21 + $0xa8] sm:$0xff]  }
  0xdb   : > { %v3746_v53 = vor.u32 %v3745_v52, %v3742_v50  ;;  %v3766_v62 = vrot.slane %v3764_v27, 4  ;;  %v7628_v34 = vrot.slane %v3773_v6, 5  ;;  %v3779_v4 = vrot.slane %v3777_v9, 4  ;;  %v6501_v36 = vld [vmem:[%s8579_s1 + $0x8] sm:$0x3] }
  0xdc   : > { %v3790_v27 = vrot.slane %v3788_v25, 4  ;;  %v3793_v37 = vrot.slane %v3791_v8, 5  ;;  %v7637_v50 = vrot.slane %v3797_v43, 5  ;;  %v3803_v52 = vrot.slane %v3801_v48, 4  ;;  %v6502_v6 = vld [vmem:[%s6716_s21 + $0x94] sm:$0xf] }
  0xdd   : > { %v7643_v9 = vld [vmem:[%s6716_s21 + $0x64] sm:$0xf]  ;;  %v3812_v61 = vshrl.u32 %v5501_v31, 16  ;;  %v7645_v22 = vrot.slane %v3746_v53, 4  ;;  %v1392_v25 = vrot.slane %v6504_v18, 5  ;;  %v3780_v43 = vor.u32 %v3779_v4, %v7628_v34 }
  0xde   : > { %6013 = vmatmul.mubr.msk.bf16.gmra.mrb[16].mxu0 %vm742_vm3, %v6447_v10  ;;  %8615 = vst [vmem:[#allocation12_spill] sm:$0xff] %v7643_v9  ;;  %v3815_v10 = vshll.u32 %v5501_v31, 16  ;;  %v3794_v31 = vor.u32 %v3793_v37, %v3790_v27  ;;  %v3804_v53 = vor.u32 %v3803_v52, %v7637_v50  ;;  %v8616_v18 = vcombine.low %v7384_v19, %v7397_v58  ;;  %v6451_v37 = vld [vmem:[%s6716_s21 + $0xb4] sm:$0xff]  }
  0xdf   : > { %5861 = vmatmul.mubr.msk.bf16.vlgmr.msra.gmra.mrb[0].mxu1 %vm742_vm3, %v8613_v38  ;;  %6016 = vmatprep.mubr.msk.bf16.mxu0 %vm742_vm3, %v6448_v21  ;;  %v3769_v21 = vrot.slane %v3767_v15, 5  ;;  %v7626_v38 = vld [vmem:[%s6716_s21 + $0x50] sm:$0x1]  ;;  %v7635_v15 = vld [vmem:[%s6716_s21 + $0x5c] sm:$0x1]  ;;  %v8617_v27 = vcombine.low %v7402_v2, %v7406_v1  ;;  %v1394_v52 = vrot.slane %v1392_v25, 4 }
  0xe0   : > { %5893 = vmatpush3.bf16.msra.mxu1 %v7373_v49  ;;  %5864 = vmatprep.mubr.msk.bf16.mxu1 %vm742_vm3, %v8614_v23  ;;  %v3756_v49 = vor.u32 %v3755_v46, %v7585_v28  ;;  %v7639_v46 = vrot.slane %v3759_v5, 5  ;;  %v1385_v23 = vrot.slane %v6502_v6, 5  ;;  %v3783_v48 = vshll.u32 %v7626_v38, 16  ;;  %v1261_v5 = vld [vmem:[%s6716_s21 + $0x9c] sm:$0xe] }
  0xe1   : > { %6359 = vmatprep.subr.msk.bf16.mxu1 %vm791_vm0, %v6501_v36  ;;  %v6503_v36 = vld [vmem:[%s6716_s21 + $0x98] sm:$0x1]  ;;  %v3770_v7 = vor.u32 %v3769_v21, %v3766_v62  ;;  %v3807_v6 = vshll.u32 %v7635_v15, 16  ;;  %v3825_v62 = vshrl.u32 %v7643_v9, 16  ;;  %v3817_v4 = vrot.slane %v3815_v10, 5 }
  0xe2   : > { %v1388_v33 = vrot.slane %v6503_v36, 5  ;;  %v3757_v8 = vrot.slane %v3756_v49, 4  ;;  %v3821_v36 = vshll.u32 %v7643_v9, 16  ;;  %v7664_v21 = vsel %vm6968_vm7, %v5170_v54, %v1385_v23  ;;  %v7675_v2 = vld [vmem:[%s6716_s21 + $0x68] sm:$0x1] }
  0xe3   : > { %v3814_v49 = vrot.slane %v3812_v61, 4  ;;  %v3771_v19 = vrot.slane %v3770_v7, 4  ;;  %v5171_v58 = vrot.slane %v1261_v5, 9  ;;  %v3781_v3 = vrot.slane %v3780_v43, 4  ;;  %8618 = vst [vmem:[#allocation13_spill] sm:$0xff] %v7675_v2  ;;  %v6452_v5 = vld [vmem:[%s6716_s21 + $0xc0] sm:$0xff]  }
  0xe4   : > { %v3785_v54 = vrot.slane %v3783_v48, 5  ;;  %v3809_v63 = vrot.slane %v3807_v6, 5  ;;  %v1399_v61 = vrot.slane %v7110_v56, 5  ;;  %v3795_v10 = vrot.slane %v3794_v31, 4  ;;  %v1263_v31 = vld [vmem:[%s6716_s21 + $0xb4] sm:$0xe] }
  0xe5   : > { %v3805_v51 = vrot.slane %v3804_v53, 4  ;;  %v7677_v1 = vrot.slane %v3821_v36, 5  ;;  %v3827_v7 = vrot.slane %v3825_v62, 4  ;;  %v3752_v43 = vsel %vm6742_vm4, %v7645_v22, %v7585_v28  ;;  %v6506_v62 = vld [vmem:[%s6716_s21 + $0xb0] sm:$0x1] }
  0xe6   : > { %6017 = vmatmul.mubr.msk.bf16.gmra.mrb[20].mxu0 %vm742_vm3, %v6449_v26  ;;  %v1387_v26 = vrot.slane %v1385_v23, 4  ;;  %v1262_v23 = vld [vmem:[%s6716_s21 + $0xa8] sm:$0xe]  ;;  %v3762_v48 = vsel %vm6742_vm4, %v3757_v8, %v7639_v46  ;;  %v3818_v6 = vor.u32 %v3817_v4, %v3814_v49  ;;  %v3776_v53 = vsel %vm6742_vm4, %v3771_v19, %v7628_v34  ;;  %v5504_v46 = vld [vmem:[%s6716_s21 + $0x6c] sm:$0xf] }
  0xe7   : > { %5865 = vmatmul.mubr.msk.bf16.gmra.mrb[4].mxu1 %vm742_vm3, %v8616_v18  ;;  %6020 = vmatprep.mubr.msk.bf16.mxu0 %vm742_vm3, %v6450_v30  ;;  %v6505_v18 = vld [vmem:[%s6716_s21 + $0xa4] sm:$0x1]  ;;  %v7697_v36 = vsel %vm6968_vm7, %v5171_v58, %v1392_v25  ;;  %v5172_v28 = vrot.slane %v1262_v23, 9  ;;  %v1401_v8 = vrot.slane %v1399_v61, 4  ;;  %v3831_v49 = vshll.u32 %v7675_v2, 16 }
  0xe8   : > { %5868 = vmatprep.mubr.msk.bf16.mxu1 %vm742_vm3, %v8617_v27  ;;  %v1395_v30 = vrot.slane %v6505_v18, 5  ;;  %v7689_v56 = vsel %vm6968_vm7, %v1387_v26, %v1388_v33  ;;  %v3786_v33 = vsel %vm6742_vm4, %v3781_v3, %v3785_v54  ;;  %v1402_v26 = vrot.slane %v6506_v62, 5  ;;  %v5507_v18 = vld [vmem:[%s6716_s21 + $0x78] sm:$0xf]  ;;  %v7752_v54 = vld [vmem:[%s6716_s21 + $0xbc] sm:$0x1] }
  0xe9   : > { %v3800_v34 = vsel %vm6742_vm4, %v3795_v10, %v7637_v50  ;;  %v3810_v25 = vsel %vm6742_vm4, %v3805_v51, %v3809_v63  ;;  %v3828_v4 = vor.u32 %v3827_v7, %v7677_v1  ;;  %v5173_v27 = vrot.slane %v1263_v31, 9  ;;  %v7726_v51 = vld [vmem:[%s6716_s21 + $0x70] sm:$0xf]  ;;  %v7756_v10 = vld [vmem:[%s6716_s21 + $0x7c] sm:$0xf] }
  0xea   : > { %v7701_v22 = vsel %vm6968_vm7, %v1394_v52, %v1395_v30  ;;  %v8620_v3 = vcombine.low %v7419_v45, %v7423_v59  ;;  %v7722_v19 = vrot.slane %v3818_v6, 4  ;;  %v1406_v50 = vrot.slane %v7134_v42, 5  ;;  %8621 = vst [vmem:[#allocation15_spill] sm:$0xff] %v7726_v51  ;;  %8623 = vst [vmem:[#allocation16_spill] sm:$0xff] %v7756_v10  ;;  %v5510_v7 = vld [vmem:[%s6716_s21 + $0x84] sm:$0xf] }
  0xeb   : > { %8619 = vst [vmem:[#allocation14_spill] sm:$0xff] %v7701_v22  ;;  %v3836_v63 = vshrl.u32 %v5504_v46, 16  ;;  %v8622_v45 = vcombine.low %v7427_v47, %v7454_v41  ;;  %v7734_v58 = vcombine.low %v3776_v53, %v3786_v33  ;;  %v7740_v42 = vsel %vm6968_vm7, %v5172_v28, %v1399_v61  ;;  %v6453_v61 = vld [vmem:[%s6716_s21 + $0xcc] sm:$0xff]   ;;  %v7768_v31 = vld [vmem:[%s6716_s21 + $0x88] sm:$0xf] }
  0xec   : > { %v7743_v30 = vcombine.low %v3800_v34, %v3810_v25  ;;  %v7747_v47 = vsel %vm6968_vm7, %v1401_v8, %v1402_v26  ;;  %v7749_v41 = vrot.slane %v3831_v49, 5  ;;  %v3845_v6 = vshll.u32 %v7726_v51, 16  ;;  %8624 = vst [vmem:[#allocation17_spill] sm:$0xff] %v7768_v31  ;;  %v5513_v62 = vld [vmem:[%s6716_s21 + $0x90] sm:$0xf] }
  0xed   : > { %v7774_v28 = vrot.slane %v1406_v50, 4  ;;  %v7776_v33 = vrot.slane %v3836_v63, 4  ;;  %v3849_v8 = vshrl.u32 %v7726_v51, 16  ;;  %v3860_v26 = vshrl.u32 %v5507_v18, 16  ;;  %v7783_v25 = vld [vmem:[%s6716_s21 + $0x94] sm:$0xf] }
  0xee   : > { %6021 = vmatmul.mubr.msk.bf16.gmra.mrb[24].mxu0 %vm742_vm3, %v6451_v37  ;;  %v7720_v37 = vcombine.low %v3752_v43, %v3762_v48  ;;  %v7764_v43 = vsel %vm6968_vm7, %v5173_v27, %v1406_v50  ;;  %v3839_v48 = vshll.u32 %v5504_v46, 16  ;;  %v3863_v49 = vshll.u32 %v5507_v18, 16  ;;  %8625 = vst [vmem:[#allocation18_spill] sm:$0xff] %v7783_v25  ;;  %v7821_v2 = vld [vmem:[%s6716_s21 + $0x8c] sm:$0x1] }
  0xef   : > { %5869 = vmatmul.mubr.msk.bf16.gmra.mrb[8].mxu1 %vm742_vm3, %v8620_v3  ;;  %6024 = vmatprep.mubr.msk.bf16.mxu0 %vm742_vm3, %v6452_v5  ;;  %v7760_v5 = vrot.slane %v3828_v4, 4  ;;  %v3869_v46 = vshll.u32 %v7756_v10, 16  ;;  %v3873_v34 = vshrl.u32 %v7756_v10, 16  ;;  %v3884_v4 = vshrl.u32 %v5510_v7, 16 }
  0xf0   : > { %5872 = vmatprep.mubr.msk.bf16.mxu1 %vm742_vm3, %v8622_v45  ;;  %v3887_v27 = vshll.u32 %v5510_v7, 16  ;;  %v3893_v3 = vshll.u32 %v7768_v31, 16  ;;  %v3897_v50 = vshrl.u32 %v7768_v31, 16  ;;  %v7793_v45 = vld [vmem:[%s6716_s21 + $0x74] sm:$0x1]  ;;  %v3841_v18 = vrot.slane %v3839_v48, 5 }
  0xf1   : > { %v3908_v52 = vshrl.u32 %v5513_v62, 16  ;;  %v3911_v53 = vshll.u32 %v5513_v62, 16  ;;  %v8626_v7 = vcombine.low %v7438_v60, %v7463_v44  ;;  %v3851_v59 = vrot.slane %v3849_v8, 4  ;;  %v5516_v48 = vld [vmem:[%s6716_s21 + $0x9c] sm:$0xf] }
  0xf2   : > { %v3917_v63 = vshll.u32 %v7783_v25, 16  ;;  %v3921_v23 = vshrl.u32 %v7783_v25, 16  ;;  %v8627_v62 = vcombine.low %v7478_v17, %v7482_v57  ;;  %v7811_v44 = vld [vmem:[%s6716_s21 + $0x80] sm:$0x1]  ;;  %v3862_v60 = vrot.slane %v3860_v26, 4 }
  0xf3   : > { %8628 = vst [vmem:[#allocation19_spill] sm:$0xff] %v7811_v44  ;;  %v3886_v31 = vrot.slane %v3884_v4, 4  ;;  %v3889_v8 = vrot.slane %v3887_v27, 5  ;;  %v7815_v10 = vrot.slane %v3893_v3, 5  ;;  %v3899_v51 = vrot.slane %v3897_v50, 4 }
  0xf4   : > { %v7818_v25 = vld [vmem:[%s6716_s21 + $0xa0] sm:$0xf]  ;;  %v3910_v17 = vrot.slane %v3908_v52, 4  ;;  %v3913_v57 = vrot.slane %v3911_v53, 5  ;;  %v3935_v9 = vshll.u32 %v5516_v48, 16  ;;  %v3842_v26 = vor.u32 %v3841_v18, %v7776_v33 }
  0xf5   : > { %v3879_v27 = vshll.u32 %v7811_v44, 16  ;;  %v7830_v3 = vld [vmem:[%s6716_s21 + $0x98] sm:$0x1]  ;;  %v3941_v50 = vshll.u32 %v7818_v25, 16  ;;  %v3945_v52 = vshrl.u32 %v7818_v25, 16  ;;  %v3890_v22 = vor.u32 %v3889_v8, %v3886_v31 }
  0xf6   : > { %6025 = vmatmul.mubr.msk.bf16.gmra.mrb[28].mxu0 %vm742_vm3, %v6453_v61  ;;  %v7801_v61 = vrot.slane %v3845_v6, 5  ;;  %v3875_v6 = vrot.slane %v3873_v34, 4  ;;  %v3923_v34 = vrot.slane %v3921_v23, 4  ;;  %v3903_v33 = vshll.u32 %v7821_v2, 16 }
  0xf7   : > { %5873 = vmatmul.mubr.msk.bf16.gmra.mrb[12].mxu1 %vm742_vm3, %v8626_v7  ;;  %6030 = vmatprep.mubr.msk.bf16.mxu0 %vm742_vm3, %v7543_v20  ;;  %v3865_v7 = vrot.slane %v3863_v49, 5  ;;  %v7813_v20 = vrot.slane %v3869_v46, 5  ;;  %v3855_v49 = vshll.u32 %v7793_v45, 16  ;;  %v7825_v46 = vrot.slane %v3917_v63, 5 }
  0xf8   : > { %5876 = vmatprep.mubr.msk.bf16.mxu1 %vm742_vm3, %v8627_v62  ;;  %v3932_v62 = vshrl.u32 %v5516_v48, 16  ;;  %v3852_v4 = vor.u32 %v3851_v59, %v7801_v61  ;;  %v3900_v23 = vor.u32 %v3899_v51, %v7815_v10  ;;  %v3914_v59 = vor.u32 %v3913_v57, %v3910_v17  ;;  %v7863_v57 = vld [vmem:[%s6716_s21 + $0xa4] sm:$0x1] }
  0xf9   : > { %v3866_v53 = vor.u32 %v3865_v7, %v3862_v60  ;;  %v3876_v48 = vor.u32 %v3875_v6, %v7813_v20  ;;  %v3937_v18 = vrot.slane %v3935_v9, 5  ;;  %v8629_v44 = vcombine.low %v7490_v11, %v7494_v40 }
  0xfa   : > { %v3934_v63 = vrot.slane %v3932_v62, 4  ;;  %v8630_v31 = vrot.slane %v7752_v54, 5  ;;  %v3857_v51 = vrot.slane %v3855_v49, 5  ;;  %v3924_v60 = vor.u32 %v3923_v34, %v7825_v46  ;;  %v7866_v34 = vld [vmem:[%s6716_s21 + $0xac] sm:$0xf] }
  0xfb   : > { %v3927_v9 = vshll.u32 %v7830_v3, 16  ;;  %v8631_v11 = vcombine.low %v7562_v39, %v7566_v55  ;;  %v3843_v40 = vrot.slane %v3842_v26, 4  ;;  %v7859_v54 = vrot.slane %v3941_v50, 5 }
  0xfc   : > { %v3867_v7 = vrot.slane %v3866_v53, 4  ;;  %v3877_v6 = vrot.slane %v3876_v48, 4  ;;  %v3881_v8 = vrot.slane %v3879_v27, 5  ;;  %v3905_v17 = vrot.slane %v3903_v33, 5  ;;  %v7876_v48 = vld [vmem:[%s6716_s21 + $0xb0] sm:$0x1] }
  0xfd   : > { %v3891_v39 = vrot.slane %v3890_v22, 4  ;;  %v3901_v55 = vrot.slane %v3900_v23, 4  ;;  %v3915_v62 = vrot.slane %v3914_v59, 4  ;;  %v3938_v49 = vor.u32 %v3937_v18, %v3934_v63 }
  0xfe   : > { %6031 = vmatmul.mubr.msk.bf16.vlgmr.msra.gmra.mrb[0].mxu0 %vm742_vm3, %v7606_v16  ;;  %v7849_v16 = vsel %vm6968_vm7, %v7774_v28, %v8630_v31  ;;  %v3947_v28 = vrot.slane %v3945_v52, 4  ;;  %v3929_v26 = vrot.slane %v3927_v9, 5  ;;  %v3848_v52 = vsel %vm6742_vm4, %v3843_v40, %v7801_v61 }
  0xff   : > { %5877 = vmatmul.mubr.msk.bf16.gmra.mrb[16].mxu1 %vm742_vm3, %v8629_v44  ;;  %6063 = vmatpush3.bf16.msra.mxu0 %v7547_v14  ;;  %v3853_v14 = vrot.slane %v3852_v4, 4  ;;  %v5519_v44 = vld [vmem:[%s6716_s21 + $0xa8] sm:$0xf]  ;;  %v3951_v22 = vshll.u32 %v7863_v57, 16  ;;  %v3872_v33 = vsel %vm6742_vm4, %v3867_v7, %v7813_v20  ;;  %v3882_v23 = vsel %vm6742_vm4, %v3877_v6, %v3881_v8 }
 0x100   : > { %5880 = vmatprep.mubr.msk.bf16.mxu1 %vm742_vm3, %v8631_v11  ;;  %6034 = vmatprep.mubr.msk.bf16.mxu0 %vm742_vm3, %v7617_v29  ;;  %v3925_v29 = vrot.slane %v3924_v60, 4  ;;  %v3956_v4 = vshrl.u32 %v5519_v44, 16  ;;  %v3959_v50 = vshll.u32 %v5519_v44, 16  ;;  %v3948_v53 = vor.u32 %v3947_v28, %v7859_v54  ;;  %v5568_v11 = vld [vmem:[%s6716_s21 + $0x48] sm:$0xe] }
 0x101   : > { %v3858_v27 = vsel %vm6742_vm4, %v3853_v14, %v3857_v51  ;;  %v3965_v59 = vshll.u32 %v7866_v34, 16  ;;  %v3969_v61 = vshrl.u32 %v7866_v34, 16  ;;  %v3896_v63 = vsel %vm6742_vm4, %v3891_v39, %v7815_v10  ;;  %v7941_v39 = vld [vmem:[%s6716_s21 + $0xb8] sm:$0xf] }
 0x102   : > { %v3906_v18 = vsel %vm6742_vm4, %v3901_v55, %v3905_v17  ;;  %v3920_v20 = vsel %vm6742_vm4, %v3915_v62, %v7825_v46  ;;  %v3939_v31 = vrot.slane %v3938_v49, 4  ;;  %v8632_v51 = vcombine.low %v7579_v12, %v7594_v35 }
 0x103   : > { %v3958_v10 = vrot.slane %v3956_v4, 4  ;;  %v3961_v60 = vrot.slane %v3959_v50, 5  ;;  %v3975_v9 = vshll.u32 %v7876_v48, 16  ;;  %v8633_v46 = vcombine.low %v7664_v21, %v7689_v56  ;;  %v5522_v21 = vld [vmem:[%s6716_s21 + $0xb4] sm:$0xf] }
 0x104   : > { %v5189_v12 = vcombine.low %v7740_v42, %v7747_v47  ;;  %v8634_v35 = vsel %vm6742_vm4, %v7760_v5, %v7749_v41  ;;  %v3949_v14 = vrot.slane %v3948_v53, 4  ;;  %v3953_v28 = vrot.slane %v3951_v22, 5  ;;  %v5570_v4 = vld [vmem:[%s6716_s21 + $0x60] sm:$0xe]  ;;  %v5571_v53 = vld [vmem:[%s6716_s21 + $0x6c] sm:$0xe] }
 0x105   : > { %v5190_v56 = vcombine.low %v7764_v43, %v7849_v16  ;;  %v7924_v44 = vcombine.low %v3848_v52, %v3858_v27  ;;  %v7926_v42 = vrot.slane %v3965_v59, 5  ;;  %v3971_v47 = vrot.slane %v3969_v61, 4  ;;  %v8643_v16 = vld [vmem:[#allocation7_spill] sm:$0xff] }
 0x106   : > { %6035 = vmatmul.mubr.msk.bf16.gmra.mrb[4].mxu0 %vm742_vm3, %v7720_v37  ;;  %v3930_v37 = vsel %vm6742_vm4, %v3925_v29, %v3929_v26  ;;  %v7928_v41 = vcombine.low %v3872_v33, %v3882_v23  ;;  %v7930_v5 = vcombine.low %v3896_v63, %v3906_v18  ;;  %v3944_v6 = vsel %vm6742_vm4, %v3939_v31, %v7859_v54  ;;  %v8636_v23 = vld [vmem:[#allocation14_spill] sm:$0xff]  ;;  %v5525_v63 = vld [vmem:[%s6716_s21 + $0xc0] sm:$0xf]  ;;  %v8638_v18 = vld [vmem:[#allocation12_spill] sm:$0xff] }
 0x107   : > { %5881 = vmatmul.mubr.msk.bf16.gmra.mrb[20].mxu1 %vm742_vm3, %v8632_v51  ;;  %6038 = vmatprep.mubr.msk.bf16.mxu0 %vm742_vm3, %v7734_v58  ;;  %v8635_v58 = vsel %vm6742_vm4, %v7722_v19, %v7677_v1  ;;  %v7932_v7 = vcombine.low %v3920_v20, %v3930_v37  ;;  %v5584_v1 = vrot.slane %v5568_v11, 9  ;;  %v5569_v19 = vld [vmem:[%s6716_s21 + $0x54] sm:$0xe]  ;;  %v3962_v8 = vor.u32 %v3961_v60, %v3958_v10 }
 0x108   : > { %5884 = vmatprep.mubr.msk.bf16.mxu1 %vm742_vm3, %v8633_v46  ;;  %v5538_v40 = vcombine.low %v8635_v58, %v8634_v35  ;;  %v7938_v17 = vrot.slane %v3975_v9, 5  ;;  %v3980_v55 = vshrl.u32 %v5522_v21, 16  ;;  %v3954_v62 = vsel %vm6742_vm4, %v3949_v14, %v3953_v28  ;;  %v8639_v31 = vld [vmem:[#allocation13_spill] sm:$0xff]  ;;  %v8640_v9 = vld [vmem:[#allocation15_spill] sm:$0xff]  ;;  %v7990_v35 = vld [vmem:[%s6716_s21 + $0xbc] sm:$0x1] }
 0x109   : > { %v3983_v49 = vshll.u32 %v5522_v21, 16  ;;  %v4439_v29 = vrot.slane %v7572_v0, 5  ;;  %v4442_v26 = vrot.slane %v7626_v38, 5  ;;  %v3972_v50 = vor.u32 %v3971_v47, %v7926_v42  ;;  %v7993_v58 = vld [vmem:[%s6716_s21 + $0xc4] sm:$0xf] }
 0x10a   : > { %v5585_v52 = vrot.slane %v5569_v19, 9  ;;  %v4446_v54 = vrot.slane %v7583_v24, 5  ;;  %v4449_v27 = vrot.slane %v7635_v15, 5  ;;  %v3989_v22 = vshll.u32 %v7941_v39, 16  ;;  %v5572_v19 = vld [vmem:[%s6716_s21 + $0x78] sm:$0xe] }
 0x10b   : > { %v3993_v33 = vshrl.u32 %v7941_v39, 16  ;;  %v7958_v0 = vsel %vm6968_vm7, %v5584_v1, %v4439_v29  ;;  %v4441_v38 = vrot.slane %v4439_v29, 4  ;;  %v8637_v59 = vcombine.low %v7697_v36, %v8636_v23  ;;  %v8641_v23 = vld [vmem:[#allocation16_spill] sm:$0xff] }
 0x10c   : > { %v7965_v24 = vcombine.low %v3944_v6, %v3954_v62  ;;  %v7969_v15 = vsel %vm6968_vm7, %v5585_v52, %v4446_v54  ;;  %v5586_v61 = vrot.slane %v5570_v4, 9  ;;  %v4453_v20 = vrot.slane %v8638_v18, 5  ;;  %v6454_v6 = vld [vmem:[%s6716_s21 + $0xc] sm:$0xff]  }
 0x10d   : > { %v7975_v36 = vsel %vm6968_vm7, %v4441_v38, %v4442_v26  ;;  %v4456_v51 = vrot.slane %v8639_v31, 5  ;;  %v5587_v37 = vrot.slane %v5571_v53, 9  ;;  %v4460_v11 = vrot.slane %v8640_v9, 5 }
 0x10e   : > { %6039 = vmatmul.mubr.msk.bf16.gmra.mrb[8].mxu0 %vm742_vm3, %v7743_v30  ;;  %v4448_v30 = vrot.slane %v4446_v54, 4  ;;  %v5601_v10 = vcombine.low %v7958_v0, %v7975_v36  ;;  %v4463_v46 = vrot.slane %v7793_v45, 5  ;;  %v7999_v14 = vsel %vm6968_vm7, %v5586_v61, %v4453_v20 }
 0x10f   : > { %5885 = vmatmul.mubr.msk.bf16.gmra.mrb[24].mxu1 %vm742_vm3, %v8637_v59  ;;  %6042 = vmatprep.mubr.msk.bf16.mxu0 %vm742_vm3, %v5538_v40  ;;  %v4455_v28 = vrot.slane %v4453_v20, 4  ;;  %v8001_v21 = vrot.slane %v3980_v55, 4  ;;  %v4004_v47 = vshrl.u32 %v5525_v63, 16  ;;  %v8005_v45 = vsel %vm6968_vm7, %v5587_v37, %v4460_v11  ;;  %v5299_v55 = vld [vmem:[%s6716_s21 + $0x78] sm:$0xf]  ;;  %v8642_v59 = vld [vmem:[#allocation19_spill] sm:$0xff] }
 0x110   : > { %5888 = vmatprep.mubr.msk.bf16.mxu1 %vm742_vm3, %v5189_v12  ;;  %v7983_v60 = vsel %vm6968_vm7, %v4448_v30, %v4449_v27  ;;  %v7987_v12 = vrot.slane %v3962_v8, 4  ;;  %v4462_v1 = vrot.slane %v4460_v11, 4  ;;  %v8009_v8 = vrot.slane %v3972_v50, 4 }
 0x111   : > { %v5602_v40 = vcombine.low %v7969_v15, %v7983_v60  ;;  %v8011_v62 = vrot.slane %v3983_v49, 5  ;;  %v4007_v29 = vshll.u32 %v5525_v63, 16  ;;  %v8015_v26 = vsel %vm6968_vm7, %v4455_v28, %v4456_v51  ;;  %v8645_v28 = vld [vmem:[#allocation17_spill] sm:$0xff]  ;;  %v6517_v60 = vld [vmem:[%s6716_s21 + $0xa0] sm:$0xf] }
 0x112   : > { %v8018_v4 = vrot.slane %v3989_v22, 5  ;;  %v8020_v52 = vrot.slane %v3993_v33, 4  ;;  %v5603_v54 = vcombine.low %v7999_v14, %v8015_v26  ;;  %v8026_v27 = vsel %vm6968_vm7, %v4462_v1, %v4463_v46  ;;  %v5573_v33 = vld [vmem:[%s6716_s21 + $0x84] sm:$0xe]  ;;  %v6455_v1 = vld [vmem:[%s6716_s21 + $0x18] sm:$0xff]  }
 0x113   : > { %v3999_v49 = vshll.u32 %v7990_v35, 16  ;;  %v4013_v50 = vshll.u32 %v7993_v58, 16  ;;  %v5604_v53 = vcombine.low %v8005_v45, %v8026_v27  ;;  %v5588_v22 = vrot.slane %v5572_v19, 9  ;;  %v6521_v27 = vld [vmem:[%s6716_s21 + $0xac] sm:$0xf] }
 0x114   : > { %v4006_v38 = vrot.slane %v4004_v47, 4  ;;  %v4470_v30 = vrot.slane %v8642_v59, 5  ;;  %v2329_v61 = vshrl.u32 %v5299_v55, 16  ;;  %v4009_v63 = vrot.slane %v4007_v29, 5  ;;  %v5528_v29 = vld [vmem:[%s6716_s21 + $0xcc] sm:$0xf] }
 0x115   : > { %v4017_v18 = vshrl.u32 %v7993_v58, 16  ;;  %v2332_v43 = vshll.u32 %v5299_v55, 16  ;;  %v5589_v37 = vrot.slane %v5573_v33, 9  ;;  %v3968_v9 = vsel %vm6742_vm4, %v7987_v12, %v7926_v42  ;;  %v8069_v55 = vld [vmem:[%s6716_s21 + $0xd0] sm:$0xf] }
 0x116   : > { %6043 = vmatmul.mubr.msk.bf16.gmra.mrb[12].mxu0 %vm742_vm3, %v7924_v44  ;;  %v4467_v44 = vrot.slane %v8641_v23, 5  ;;  %v2331_v51 = vrot.slane %v2329_v61, 4  ;;  %v3986_v11 = vor.u32 %v8011_v62, %v8001_v21  ;;  %v4474_v47 = vrot.slane %v8645_v28, 5  ;;  %v6456_v21 = vld [vmem:[%s6716_s21 + $0x24] sm:$0xff]  }
 0x117   : > { %5889 = vmatmul.mubr.msk.bf16.gmra.mrb[28].mxu1 %vm742_vm3, %v5190_v56  ;;  %6046 = vmatprep.mubr.msk.bf16.mxu0 %vm742_vm3, %v7928_v41  ;;  %v8644_v56 = vld [vmem:[#allocation8_spill] sm:$0xff]  ;;  %v2334_v46 = vrot.slane %v2332_v43, 5  ;;  %v3978_v19 = vsel %vm6742_vm4, %v8009_v8, %v7938_v17  ;;  %v4477_v12 = vrot.slane %v7821_v2, 5  ;;  %v8077_v62 = vrot.slane %v4013_v50, 5  ;;  %v5574_v8 = vld [vmem:[%s6716_s21 + $0x90] sm:$0xe] }
 0x118   : > { %5894 = vmatprep.mubr.msk.bf16.mxu1 %vm742_vm3, %v6454_v6  ;;  %v2351_v41 = vsel %vm6742_vm4, %v8644_v56, %v8643_v16  ;;  %v8051_v20 = vsel %vm6968_vm7, %v5588_v22, %v4467_v44  ;;  %v4469_v31 = vrot.slane %v4467_v44, 4  ;;  %v3996_v6 = vor.u32 %v8020_v52, %v8018_v4  ;;  %v8083_v52 = vld [vmem:[%s6716_s21 + $0xc8] sm:$0x1]  ;;  %v8647_v16 = vld [vmem:[#allocation5_spill] sm:$0xff] }
 0x119   : > { %v4019_v22 = vrot.slane %v4017_v18, 4  ;;  %v2335_v17 = vor.u32 %v2334_v46, %v2331_v51  ;;  %v4001_v23 = vrot.slane %v3999_v49, 5  ;;  %v4010_v44 = vor.u32 %v4009_v63, %v4006_v38  ;;  %v8648_v51 = vld [vmem:[#allocation6_spill] sm:$0xff] }
 0x11a   : > { %v8073_v42 = vsel %vm6968_vm7, %v4469_v31, %v4470_v30  ;;  %v8087_v59 = vsel %vm6968_vm7, %v5589_v37, %v4474_v47  ;;  %v4476_v30 = vrot.slane %v4474_v47, 4  ;;  %v4028_v2 = vshrl.u32 %v5528_v29, 16 }
 0x11b   : > { %v5605_v33 = vcombine.low %v8051_v20, %v8073_v42  ;;  %v4031_v50 = vshll.u32 %v5528_v29, 16  ;;  %v4037_v61 = vshll.u32 %v8069_v55, 16  ;;  %v2336_v18 = vrot.slane %v2335_v17, 4  ;;  %v6457_v29 = vld [vmem:[%s6716_s21 + $0x30] sm:$0xff]  }
 0x11c   : > { %v4041_v49 = vshrl.u32 %v8069_v55, 16  ;;  %v8098_v38 = vsel %vm6968_vm7, %v4476_v30, %v4477_v12  ;;  %v5590_v63 = vrot.slane %v5574_v8, 9  ;;  %v4020_v56 = vor.u32 %v4019_v22, %v8077_v62 }
 0x11d   : > { %v4023_v31 = vshll.u32 %v8083_v52, 16  ;;  %v5606_v37 = vcombine.low %v8087_v59, %v8098_v38  ;;  %v5544_v46 = vcombine.low %v3968_v9, %v3978_v19  ;;  %v3987_v28 = vrot.slane %v3986_v11, 4  ;;  %v5575_v11 = vld [vmem:[%s6716_s21 + $0x9c] sm:$0xe] }
 0x11e   : > { %6047 = vmatmul.mubr.msk.bf16.gmra.mrb[16].mxu0 %vm742_vm3, %v7930_v5  ;;  %v8646_v5 = vld [vmem:[#allocation18_spill] sm:$0xff]  ;;  %v3997_v47 = vrot.slane %v3996_v6, 4  ;;  %v4011_v12 = vrot.slane %v4010_v44, 4  ;;  %v4484_v8 = vrot.slane %v7830_v3, 5  ;;  %v4030_v30 = vrot.slane %v4028_v2, 4 }
 0x11f   : > { %5895 = vmatmul.mubr.msk.bf16.vlgmr.msra.gmra.mrb[0].mxu1 %vm742_vm3, %v6455_v1  ;;  %6050 = vmatprep.mubr.msk.bf16.mxu0 %vm742_vm3, %v7932_v7  ;;  %v4481_v43 = vrot.slane %v8646_v5, 5  ;;  %v2341_v7 = vsel %vm6742_vm4, %v2336_v18, %v8648_v51  ;;  %v4033_v18 = vrot.slane %v4031_v50, 5  ;;  %v8121_v5 = vrot.slane %v4037_v61, 5  ;;  %v6458_v19 = vld [vmem:[%s6716_s21 + $0x3c] sm:$0xff]  }
 0x120   : > { %6097 = vmatpush3.bf16.msra.mxu1 %v8647_v16  ;;  %5898 = vmatprep.mubr.msk.bf16.mxu1 %vm742_vm3, %v6456_v21  ;;  %v8110_v1 = vcombine.low %v2341_v7, %v2351_v41  ;;  %v8114_v21 = vld [vmem:[%s6716_s21 + $0xd4] sm:$0x1]  ;;  %v4043_v9 = vrot.slane %v4041_v49, 4  ;;  %v4021_v41 = vrot.slane %v4020_v56, 4  ;;  %v4025_v6 = vrot.slane %v4023_v31, 5 }
 0x121   : > { %v8118_v22 = vsel %vm6968_vm7, %v5590_v63, %v4481_v43  ;;  %v4483_v17 = vrot.slane %v4481_v43, 4  ;;  %v3992_v63 = vsel %vm6742_vm4, %v3987_v28, %v8018_v4  ;;  %v4002_v2 = vsel %vm6742_vm4, %v3997_v47, %v4001_v23  ;;  %v6508_v16 = vld [vmem:[%s6716_s21 + $0x1c] sm:$0xf]  ;;  %v5576_v28 = vld [vmem:[%s6716_s21 + $0xa8] sm:$0xe] }
 0x122   : > { %v4047_v50 = vshll.u32 %v8114_v21, 16  ;;  %v5591_v61 = vrot.slane %v5575_v11, 9  ;;  %v4488_v49 = vrot.slane %v7818_v25, 5  ;;  %v4016_v4 = vsel %vm6742_vm4, %v4011_v12, %v8077_v62  ;;  %v5564_v62 = vld [vmem:[%s6716_s21 + $0x18] sm:$0xe]  ;;  %v6459_v47 = vld [vmem:[%s6716_s21 + $0x48] sm:$0xff]  }
 0x123   : > { %v8127_v44 = vsel %vm6968_vm7, %v4483_v17, %v4484_v8  ;;  %v4044_v43 = vor.u32 %v4043_v9, %v8121_v5  ;;  %v4491_v23 = vrot.slane %v7863_v57, 5  ;;  %v4026_v25 = vsel %vm6742_vm4, %v4021_v41, %v4025_v6  ;;  %v6509_v11 = vld [vmem:[%s6716_s21 + $0x20] sm:$0x1] }
 0x124   : > { %v5607_v3 = vcombine.low %v8118_v22, %v8127_v44  ;;  %v4411_v56 = vrot.slane %v6508_v16, 5  ;;  %v8153_v31 = vsel %vm6968_vm7, %v5591_v61, %v4488_v49  ;;  %v4490_v51 = vrot.slane %v4488_v49, 4  ;;  %v5577_v49 = vld [vmem:[%s6716_s21 + $0xb4] sm:$0xe] }
 0x125   : > { %v5545_v7 = vcombine.low %v3992_v63, %v4002_v2  ;;  %v4045_v17 = vrot.slane %v4044_v43, 4  ;;  %v5592_v41 = vrot.slane %v5576_v28, 9  ;;  %v4495_v6 = vrot.slane %v7866_v34, 5  ;;  %v5565_v2 = vld [vmem:[%s6716_s21 + $0x24] sm:$0xe] }
 0x126   : > { %6051 = vmatmul.mubr.msk.bf16.gmra.mrb[20].mxu0 %vm742_vm3, %v7965_v24  ;;  %v4034_v24 = vor.u32 %v4033_v18, %v4030_v30  ;;  %v8158_v57 = vsel %vm6968_vm7, %v4490_v51, %v4491_v23  ;;  %v6460_v30 = vld [vmem:[%s6716_s21 + $0x54] sm:$0xff]   ;;  %v5580_v18 = vrot.slane %v5564_v62, 9  ;;  %v4413_v9 = vrot.slane %v4411_v56, 4  ;;  %v6512_v28 = vld [vmem:[%s6716_s21 + $0x2c] sm:$0x1] }
 0x127   : > { %5899 = vmatmul.mubr.msk.bf16.gmra.mrb[4].mxu1 %vm742_vm3, %v6457_v29  ;;  %6054 = vmatprep.mubr.msk.bf16.mxu0 %vm742_vm3, %v5544_v46  ;;  %v4049_v46 = vrot.slane %v4047_v50, 5  ;;  %v5546_v29 = vcombine.low %v4016_v4, %v4026_v25  ;;  %v5608_v8 = vcombine.low %v8153_v31, %v8158_v57  ;;  %v4498_v63 = vrot.slane %v7876_v48, 5  ;;  %v6510_v50 = vld [vmem:[%s6716_s21 + $0x28] sm:$0xf]  ;;  %v5566_v25 = vld [vmem:[%s6716_s21 + $0x30] sm:$0xe] }
 0x128   : > { %5902 = vmatprep.mubr.msk.bf16.mxu1 %vm742_vm3, %v6458_v19  ;;  %v4035_v12 = vrot.slane %v4034_v24, 4  ;;  %v4414_v19 = vrot.slane %v6509_v11, 5  ;;  %v4418_v61 = vrot.slane %v6510_v50, 5  ;;  %v8181_v48 = vsel %vm6968_vm7, %v5592_v41, %v4495_v6  ;;  %v6462_v11 = vld [vmem:[%s6716_s21 + $0x6c] sm:$0xff]   ;;  %v5578_v50 = vld [vmem:[%s6716_s21 + $0xc0] sm:$0xe] }
 0x129   : > { %v4050_v34 = vsel %vm6742_vm4, %v4045_v17, %v4049_v46  ;;  %v4497_v24 = vrot.slane %v4495_v6, 4  ;;  %v4412_v43 = vsel %vm6968_vm7, %v5580_v18, %v4411_v56  ;;  %v5581_v51 = vrot.slane %v5565_v2, 9  ;;  %v8649_v41 = vld [vmem:[#allocation9_spill] sm:$0xff]  ;;  %v6526_v31 = vld [vmem:[%s6716_s21 + $0xc8] sm:$0x1] }
 0x12a   : > { %v4040_v4 = vsel %vm6742_vm4, %v4035_v12, %v8121_v5  ;;  %v4415_v23 = vsel %vm6968_vm7, %v4413_v9, %v4414_v19  ;;  %v6511_v5 = vld [vmem:[%s6716_s21 + $0x34] sm:$0xf]  ;;  %v6461_v12 = vld [vmem:[%s6716_s21 + $0x60] sm:$0xff]   ;;  %v5582_v18 = vrot.slane %v5566_v25, 9  ;;  %v4505_v9 = vrot.slane %v7990_v35, 5 }
 0x12b   : > { %v4425_v16 = vrot.slane %v6511_v5, 5  ;;  %v8192_v62 = vsel %vm6968_vm7, %v4497_v24, %v4498_v63  ;;  %v5547_v46 = vcombine.low %v4040_v4, %v4050_v34  ;;  %v5597_v17 = vcombine.low %v4412_v43, %v4415_v23  ;;  %v5567_v24 = vld [vmem:[%s6716_s21 + $0x3c] sm:$0xe] }
 0x12c   : > { %v5609_v56 = vcombine.low %v8181_v48, %v8192_v62  ;;  %v4428_v6 = vrot.slane %v8649_v41, 5  ;;  %v4419_v35 = vsel %vm6968_vm7, %v5581_v51, %v4418_v61  ;;  %v5594_v5 = vrot.slane %v5578_v50, 9 }
 0x12d   : > { %v4427_v19 = vrot.slane %v4425_v16, 4  ;;  %v4426_v23 = vsel %vm6968_vm7, %v5582_v18, %v4425_v16  ;;  %v4512_v51 = vrot.slane %v8083_v52, 5  ;;  %v2492_v57 = vshll.u32 %v6526_v31, 16 }
 0x12e   : > { %6055 = vmatmul.mubr.msk.bf16.gmra.mrb[24].mxu0 %vm742_vm3, %v5545_v7  ;;  %v5593_v7 = vrot.slane %v5577_v49, 9 }
 0x12f   : > { %5903 = vmatmul.mubr.msk.bf16.gmra.mrb[8].mxu1 %vm742_vm3, %v6459_v47  ;;  %6058 = vmatprep.mubr.msk.bf16.mxu0 %vm742_vm3, %v5546_v29  ;;  %v4421_v47 = vrot.slane %v6512_v28, 5  ;;  %v4502_v29 = vrot.slane %v7941_v39, 5  ;;  %v8650_v39 = vld [vmem:[#allocation10_spill] sm:$0xff]  ;;  %v4429_v25 = vsel %vm6968_vm7, %v4427_v19, %v4428_v6  ;;  %v5583_v28 = vrot.slane %v5567_v24, 9 }
 0x130   : > { %5906 = vmatprep.mubr.msk.bf16.mxu1 %vm742_vm3, %v6460_v30  ;;  %v4420_v30 = vrot.slane %v4418_v61, 4  ;;  %v4432_v49 = vrot.slane %v8650_v39, 5  ;;  %v4509_v61 = vrot.slane %v7993_v58, 5  ;;  %v6513_v39 = vld [vmem:[%s6716_s21 + $0x70] sm:$0xf]  ;;  %v4516_v24 = vrot.slane %v8069_v55, 5 }
 0x131   : > { %v8204_v63 = vsel %vm6968_vm7, %v5593_v7, %v4502_v29  ;;  %v4504_v2 = vrot.slane %v4502_v29, 4  ;;  %v5296_v7 = vld [vmem:[%s6716_s21 + $0x6c] sm:$0xf]  ;;  %v8651_v29 = vld [vmem:[#allocation11_spill] sm:$0xff] }
 0x132   : > { %v4422_v34 = vsel %vm6968_vm7, %v4420_v30, %v4421_v47  ;;  %v4434_v47 = vrot.slane %v4432_v49, 4  ;;  %v6463_v30 = vld [vmem:[%s6716_s21 + $0x78] sm:$0xff]   ;;  %v8235_v16 = vsel %vm6968_vm7, %v5594_v5, %v4509_v61  ;;  %v4511_v18 = vrot.slane %v4509_v61, 4 }
 0x133   : > { %v8211_v4 = vsel %vm6968_vm7, %v4504_v2, %v4505_v9  ;;  %v5599_v9 = vcombine.low %v4426_v23, %v4429_v25  ;;  %v2305_v19 = vshrl.u32 %v5296_v7, 16  ;;  %v2308_v41 = vshll.u32 %v5296_v7, 16 }
 0x134   : > { %v5610_v43 = vcombine.low %v8204_v63, %v8211_v4  ;;  %v8240_v58 = vsel %vm6968_vm7, %v4511_v18, %v4512_v51  ;;  %v4433_v6 = vsel %vm6968_vm7, %v5583_v28, %v4432_v49  ;;  %v4519_v49 = vrot.slane %v8114_v21, 5  ;;  %v6465_v51 = vld [vmem:[%s6716_s21 + $0x90] sm:$0xff]   ;;  %v6466_v21 = vld [vmem:[%s6716_s21 + $0x9c] sm:$0xff]  }
 0x135   : > { %v5611_v50 = vcombine.low %v8235_v16, %v8240_v58  ;;  %v2307_v23 = vrot.slane %v2305_v19, 4  ;;  %v2310_v25 = vrot.slane %v2308_v41, 5  ;;  %v4518_v7 = vrot.slane %v4516_v24, 4 }
 0x136   : > { %6059 = vmatmul.mubr.msk.bf16.gmra.mrb[28].mxu0 %vm742_vm3, %v5547_v46  ;;  %v5598_v46 = vcombine.low %v4419_v35, %v4422_v34  ;;  %v2314_v35 = vshll.u32 %v6513_v39, 16  ;;  %v2318_v34 = vshrl.u32 %v6513_v39, 16 }
 0x137   : > { %5907 = vmatmul.mubr.msk.bf16.gmra.mrb[12].mxu1 %vm742_vm3, %v6461_v12  ;;  %6064 = vmatprep.mubr.msk.bf16.mxu0 %vm742_vm3, %v5597_v17  ;;  %v4435_v12 = vrot.slane %v8651_v29, 5  ;;  %v5579_v17 = vld [vmem:[%s6716_s21 + $0xcc] sm:$0xe]  ;;  %v8262_v55 = vsel %vm6968_vm7, %v4518_v7, %v4519_v49 }
 0x138   : > { %5910 = vmatprep.mubr.msk.bf16.mxu1 %vm742_vm3, %v6462_v11  ;;  %v6464_v11 = vld [vmem:[%s6716_s21 + $0x84] sm:$0xff]   ;;  %v5595_v52 = vrot.slane %v5579_v17, 9  ;;  %v2320_v28 = vrot.slane %v2318_v34, 4  ;;  %v6514_v17 = vld [vmem:[%s6716_s21 + $0x74] sm:$0x1] }
 0x139   : > { %v4436_v2 = vsel %vm6968_vm7, %v4434_v47, %v4435_v12  ;;  %v5302_v47 = vld [vmem:[%s6716_s21 + $0x84] sm:$0xf]  ;;  %v2311_v12 = vor.u32 %v2310_v25, %v2307_v23  ;;  %v6468_v34 = vld [vmem:[%s6716_s21 + $0xb4] sm:$0xff]  }
 0x13a   : > { %v8257_v5 = vsel %vm6968_vm7, %v5595_v52, %v4516_v24  ;;  %v5600_v61 = vcombine.low %v4433_v6, %v4436_v2  ;;  %v2356_v18 = vshll.u32 %v5302_v47, 16  ;;  %v5305_v6 = vld [vmem:[%s6716_s21 + $0x90] sm:$0xf]  ;;  %v6467_v2 = vld [vmem:[%s6716_s21 + $0xa8] sm:$0xff]  }
 0x13b   : > { %v5612_v29 = vcombine.low %v8257_v5, %v8262_v55  ;;  %v2312_v52 = vrot.slane %v2311_v12, 4  ;;  %v2377_v23 = vshrl.u32 %v5305_v6, 16  ;;  %v2380_v25 = vshll.u32 %v5305_v6, 16 }
 0x13c   : > { %v2410_v12 = vshll.u32 %v6517_v60, 16 }
 0x13d   : > { %v2382_v14 = vrot.slane %v2380_v25, 5  ;;  %v6520_v25 = vld [vmem:[%s6716_s21 + $0xa4] sm:$0x1] }
 0x13e   : > { %6065 = vmatmul.mubr.msk.bf16.vlgmr.msra.gmra.mrb[0].mxu0 %vm742_vm3, %v5598_v46  ;;  %v2316_v46 = vrot.slane %v2314_v35, 5  ;;  %v5308_v35 = vld [vmem:[%s6716_s21 + $0x9c] sm:$0xf]  ;;  %v8304_v6 = vrot.slane %v2410_v12, 5 }
 0x13f   : > { %5911 = vmatmul.mubr.msk.bf16.gmra.mrb[16].mxu1 %vm742_vm3, %v6463_v30  ;;  %6068 = vmatprep.mubr.msk.bf16.mxu0 %vm742_vm3, %v5599_v9  ;;  %v2324_v30 = vshll.u32 %v6514_v17, 16  ;;  %v2353_v9 = vshrl.u32 %v5302_v47, 16  ;;  %v2404_v47 = vshll.u32 %v5308_v35, 16  ;;  %v6518_v17 = vld [vmem:[%s6716_s21 + $0x8c] sm:$0x1] }
 0x140   : > { %5914 = vmatprep.mubr.msk.bf16.mxu1 %vm742_vm3, %v6464_v11  ;;  %v2321_v13 = vor.u32 %v2320_v28, %v2316_v46  ;;  %v6515_v11 = vld [vmem:[%s6716_s21 + $0x88] sm:$0xf]  ;;  %v2317_v7 = vsel %vm6742_vm4, %v2312_v52, %v2316_v46 }
 0x141   : > { %v2362_v19 = vshll.u32 %v6515_v11, 16  ;;  %v2366_v41 = vshrl.u32 %v6515_v11, 16  ;;  %v2326_v0 = vrot.slane %v2324_v30, 5  ;;  %v2355_v36 = vrot.slane %v2353_v9, 4 }
 0x142   : > { %v2322_v39 = vrot.slane %v2321_v13, 4  ;;  %v2372_v30 = vshll.u32 %v6518_v17, 16  ;;  %v2379_v9 = vrot.slane %v2377_v23, 4  ;;  %v2406_v11 = vrot.slane %v2404_v47, 5 }
 0x143   : > { %v8281_v24 = vrot.slane %v2362_v19, 5  ;;  %v2368_v49 = vrot.slane %v2366_v41, 4  ;;  %v6469_v19 = vld [vmem:[%s6716_s21 + $0xc0] sm:$0xff]  }
 0x144   : > { %v2327_v46 = vsel %vm6742_vm4, %v2322_v39, %v2326_v0  ;;  %v5311_v39 = vld [vmem:[%s6716_s21 + $0xa8] sm:$0xf] }
 0x145   : > { %v2369_v13 = vor.u32 %v2368_v49, %v8281_v24  ;;  %v5329_v41 = vcombine.low %v2317_v7, %v2327_v46  ;;  %v2420_v7 = vshll.u32 %v6520_v25, 16  ;;  %v2428_v45 = vshll.u32 %v5311_v39, 16 }
 0x146   : > { %6069 = vmatmul.mubr.msk.bf16.gmra.mrb[4].mxu0 %vm742_vm3, %v5600_v61  ;;  %v6516_v61 = vld [vmem:[%s6716_s21 + $0x94] sm:$0xf] }
 0x147   : > { %5915 = vmatmul.mubr.msk.bf16.gmra.mrb[20].mxu1 %vm742_vm3, %v6465_v51  ;;  %6072 = vmatprep.mubr.msk.bf16.mxu0 %vm742_vm3, %v5601_v10  ;;  %v2358_v10 = vrot.slane %v2356_v18, 5  ;;  %v2386_v51 = vshll.u32 %v6516_v61, 16  ;;  %v2390_v28 = vshrl.u32 %v6516_v61, 16  ;;  %v2370_v0 = vrot.slane %v2369_v13, 4 }
 0x148   : > { %5918 = vmatprep.mubr.msk.bf16.mxu1 %vm742_vm3, %v6466_v21  ;;  %v2401_v21 = vshrl.u32 %v5308_v35, 16  ;;  %v6519_v35 = vld [vmem:[%s6716_s21 + $0x98] sm:$0x1]  ;;  %v2425_v61 = vshrl.u32 %v5311_v39, 16  ;;  %v5317_v39 = vld [vmem:[%s6716_s21 + $0xc0] sm:$0xf] }
 0x149   : > { %v2359_v15 = vor.u32 %v2358_v10, %v2355_v36  ;;  %v8301_v26 = vrot.slane %v2386_v51, 5  ;;  %v2374_v36 = vrot.slane %v2372_v30, 5  ;;  %v2383_v10 = vor.u32 %v2382_v14, %v2379_v9  ;;  %v5314_v51 = vld [vmem:[%s6716_s21 + $0xb4] sm:$0xf] }
 0x14a   : > { %v2403_v18 = vrot.slane %v2401_v21, 4  ;;  %v2438_v21 = vshrl.u32 %v6521_v27, 16  ;;  %v2449_v20 = vshrl.u32 %v5314_v51, 16  ;;  %v2452_v42 = vshll.u32 %v5314_v51, 16 }
 0x14b   : > { %v2360_v52 = vrot.slane %v2359_v15, 4  ;;  %v2375_v46 = vsel %vm6742_vm4, %v2370_v0, %v2374_v36  ;;  %v2384_v15 = vrot.slane %v2383_v10, 4  ;;  %v2422_v30 = vrot.slane %v2420_v7, 5 }
 0x14c   : > { %v2407_v23 = vor.u32 %v2406_v11, %v2403_v18  ;;  %v2427_v9 = vrot.slane %v2425_v61, 4  ;;  %v2440_v11 = vrot.slane %v2438_v21, 4  ;;  %v6525_v61 = vld [vmem:[%s6716_s21 + $0xbc] sm:$0x1] }
 0x14d   : > { %v2365_v47 = vsel %vm6742_vm4, %v2360_v52, %v8281_v24  ;;  %v2389_v0 = vsel %vm6742_vm4, %v2384_v15, %v8301_v26  ;;  %v2468_v22 = vshll.u32 %v6525_v61, 16 }
 0x14e   : > { %6073 = vmatmul.mubr.msk.bf16.gmra.mrb[8].mxu0 %vm742_vm3, %v5602_v40  ;;  %v2414_v40 = vshrl.u32 %v6517_v60, 16  ;;  %v2408_v17 = vrot.slane %v2407_v23, 4  ;;  %v5331_v24 = vcombine.low %v2365_v47, %v2375_v46 }
 0x14f   : > { %5919 = vmatmul.mubr.msk.bf16.gmra.mrb[24].mxu1 %vm742_vm3, %v6467_v2  ;;  %6076 = vmatprep.mubr.msk.bf16.mxu0 %vm742_vm3, %v5603_v54  ;;  %v2392_v54 = vrot.slane %v2390_v28, 4 }
 0x150   : > { %5922 = vmatprep.mubr.msk.bf16.mxu1 %vm742_vm3, %v6468_v34  ;;  %v2416_v2 = vrot.slane %v2414_v40, 4  ;;  %v2396_v34 = vshll.u32 %v6519_v35, 16  ;;  %v2413_v10 = vsel %vm6742_vm4, %v2408_v17, %v8304_v6  ;;  %v2494_v17 = vrot.slane %v2492_v57, 5 }
 0x151   : > { %v2393_v49 = vor.u32 %v2392_v54, %v8301_v26  ;;  %v2430_v54 = vrot.slane %v2428_v45, 5  ;;  %v6523_v26 = vld [vmem:[%s6716_s21 + $0xb0] sm:$0x1] }
 0x152   : > { %v2417_v28 = vor.u32 %v2416_v2, %v8304_v6  ;;  %v2398_v60 = vrot.slane %v2396_v34, 5  ;;  %v2444_v35 = vshll.u32 %v6523_v26, 16  ;;  %v2473_v34 = vshrl.u32 %v5317_v39, 16 }
 0x153   : > { %v2394_v13 = vrot.slane %v2393_v49, 4  ;;  %v2431_v38 = vor.u32 %v2430_v54, %v2427_v9  ;;  %v2476_v6 = vshll.u32 %v5317_v39, 16  ;;  %v6524_v49 = vld [vmem:[%s6716_s21 + $0xc4] sm:$0xf] }
 0x154   : > { %v2418_v14 = vrot.slane %v2417_v28, 4  ;;  %v2482_v23 = vshll.u32 %v6524_v49, 16  ;;  %v2486_v25 = vshrl.u32 %v6524_v49, 16  ;;  %v2446_v45 = vrot.slane %v2444_v35, 5 }
 0x155   : > { %v2399_v36 = vsel %vm6742_vm4, %v2394_v13, %v2398_v60  ;;  %v2432_v51 = vrot.slane %v2431_v38, 4  ;;  %v2470_v60 = vrot.slane %v2468_v22, 5 }
 0x156   : > { %6077 = vmatmul.mubr.msk.bf16.gmra.mrb[12].mxu0 %vm742_vm3, %v5604_v53  ;;  %v2434_v53 = vshll.u32 %v6521_v27, 16  ;;  %v2423_v59 = vsel %vm6742_vm4, %v2418_v14, %v2422_v30  ;;  %v5332_v44 = vcombine.low %v2389_v0, %v2399_v36  ;;  %v2475_v27 = vrot.slane %v2473_v34, 4  ;;  %v8413_v36 = vld [vmem:[%s8581_s3] ss:$0 sm:$0xff] }
 0x157   : > { %5923 = vmatmul.mubr.msk.bf16.gmra.mrb[28].mxu1 %vm742_vm3, %v6469_v19  ;;  %6080 = vmatprep.mubr.msk.bf16.mxu0 %vm742_vm3, %v5605_v33  ;;  %v6522_v33 = vld [vmem:[%s6716_s21 + $0xb8] sm:$0xf]  ;;  %v2451_v19 = vrot.slane %v2449_v20, 4  ;;  %v2484_v21 = vrot.slane %v2482_v23, 5  ;;  %v2488_v47 = vrot.slane %v2486_v25, 4 }
 0x158   : > { %5944 = vmatprep.mubr.msk.bf16.mxu1 %vm742_vm3, %v5329_v41  ;;  %v2458_v12 = vshll.u32 %v6522_v33, 16  ;;  %v2462_v40 = vshrl.u32 %v6522_v33, 16  ;;  %v2436_v18 = vrot.slane %v2434_v53, 5  ;;  %v2454_v41 = vrot.slane %v2452_v42, 5 }
 0x159   : > { %v2478_v53 = vrot.slane %v2476_v6, 5 }
 0x15a   : > { %v2460_v52 = vrot.slane %v2458_v12, 5  ;;  %v2464_v2 = vrot.slane %v2462_v40, 4  ;;  %v2437_v20 = vsel %vm6742_vm4, %v2432_v51, %v2436_v18  ;;  %v2489_v12 = vor.u32 %v2488_v47, %v2484_v21 }
 0x15b   : > { %v2479_v33 = vor.u32 %v2478_v53, %v2475_v27 }
 0x15c   : > { %v2465_v7 = vor.u32 %v2464_v2, %v2460_v52  ;;  %v2490_v13 = vrot.slane %v2489_v12, 4  ;;  %v8408_v2 = vld [vmem:[%s8580_s2] ss:$0 sm:$0xff] }
 0x15d   : > { %v2480_v40 = vrot.slane %v2479_v33, 4 }
 0x15e   : > { %6081 = vmatmul.mubr.msk.bf16.gmra.mrb[16].mxu0 %vm742_vm3, %v5606_v37  ;;  %v2441_v37 = vor.u32 %v2440_v11, %v2436_v18  ;;  %v2466_v15 = vrot.slane %v2465_v7, 4  ;;  %v2495_v9 = vsel %vm6742_vm4, %v2490_v13, %v2494_v17 }
 0x15f   : > { %5945 = vmatmul.mubr.msk.bf16.vlgmr.msra.gmra.mrb[16].mxu1 %vm742_vm3, %v8110_v1  ;;  %6084 = vmatprep.mubr.msk.bf16.mxu0 %vm742_vm3, %v5607_v3  ;;  %v2455_v1 = vor.u32 %v2454_v41, %v2451_v19  ;;  %v5333_v3 = vcombine.low %v2413_v10, %v2423_v59  ;;  %v2485_v30 = vsel %vm6742_vm4, %v2480_v40, %v2484_v21 }
 0x160   : > { %5948 = vmatprep.mubr.msk.bf16.mxu1 %vm742_vm3, %v5331_v24  ;;  %v2442_v28 = vrot.slane %v2441_v37, 4  ;;  %v2471_v48 = vsel %vm6742_vm4, %v2466_v15, %v2470_v60  ;;  %v5336_v14 = vcombine.low %v2485_v30, %v2495_v9 }
 0x161   : > { %v2456_v46 = vrot.slane %v2455_v1, 4 }
 0x162   : > { %v2447_v42 = vsel %vm6742_vm4, %v2442_v28, %v2446_v45 }
 0x163   : > { %v5334_v62 = vcombine.low %v2437_v20, %v2447_v42 }
 0x166   : > { %6085 = vmatmul.mubr.msk.bf16.gmra.mrb[20].mxu0 %vm742_vm3, %v5608_v8  ;;  %v2461_v8 = vsel %vm6742_vm4, %v2456_v46, %v2460_v52 }
 0x167   : > { %5949 = vmatmul.mubr.msk.bf16.gmra.mrb[20].mxu1 %vm742_vm3, %v5332_v44  ;;  %6088 = vmatprep.mubr.msk.bf16.mxu0 %vm742_vm3, %v5609_v56  ;;  %v5335_v56 = vcombine.low %v2461_v8, %v2471_v48 }
 0x168   : > { %5952 = vmatprep.mubr.msk.bf16.mxu1 %vm742_vm3, %v5333_v3 }
 0x16e   : > { %6089 = vmatmul.mubr.msk.bf16.gmra.mrb[24].mxu0 %vm742_vm3, %v5610_v43 }
 0x16f   : > { %5953 = vmatmul.mubr.msk.bf16.gmra.mrb[24].mxu1 %vm742_vm3, %v5334_v62  ;;  %6092 = vmatprep.mubr.msk.bf16.mxu0 %vm742_vm3, %v5611_v50 }
 0x170   : > { %5956 = vmatprep.mubr.msk.bf16.mxu1 %vm742_vm3, %v5335_v56 }
 0x176   : > { %6093 = vmatmul.mubr.msk.bf16.gmra.mrb[28].mxu0 %vm742_vm3, %v5612_v29 }
 0x177   : > { %5957 = vmatmul.mubr.msk.bf16.gmra.mrb[28].mxu1 %vm742_vm3, %v5336_v14 }
 0x1f2   : > { %v5896_v63 = vpop.f32.mrb[0].mxu1 }
 0x1f3   : > { %v1905_v4 = vpop.f32.mrb[1].mxu1 }
 0x1f4   : > { %v5897_v43 = vpop.f32.mrb[2].mxu1 }
 0x1f5   : > { %v1908_v16 = vpop.f32.mrb[3].mxu1 }
 0x1fa   : > { %v5900_v58 = vpop.f32.mrb[4].mxu1 }
 0x1fb   : > { %v1921_v50 = vpop.f32.mrb[5].mxu1 }
 0x1fc   : > { %v5901_v54 = vpop.f32.mrb[6].mxu1 }
 0x1fd   : > { %v1924_v18 = vpop.f32.mrb[7].mxu1 }
 0x202   : > { %v5904_v11 = vpop.f32.mrb[8].mxu1 }
 0x203   : > { %v1937_v32 = vpop.f32.mrb[9].mxu1 }
 0x204   : > { %v8392_v24 = vpop.f32.mrb[10].mxu1 }
 0x205   : > { %v8394_v19 = vpop.f32.mrb[11].mxu1 }
 0x20a   : > { %v8396_v5 = vpop.f32.mrb[12].mxu1 }
 0x20b   : > { %v8398_v55 = vpop.f32.mrb[13].mxu1 }
 0x20c   : > { %v8400_v29 = vpop.f32.mrb[14].mxu1 }
 0x20d   : > { %v8402_v41 = vpop.f32.mrb[15].mxu1 }
 0x211   : > { %v6066_v52 = vpop.f32.mrb[0].mxu0 }
 0x212   : > { %v6098_v39 = vadd.f32 %v6066_v52, %v5896_v63  ;;  %v4656_v0 = vpop.f32.mrb[1].mxu0 }
 0x213   : > { %v6099_v10 = vadd.f32 %v4656_v0, %v1905_v4  ;;  %v6067_v59 = vpop.f32.mrb[2].mxu0 }
 0x214   : > { %v4824_v38 = vmul.f32 %v6098_v39, %v8408_v2  ;;  %v6100_v37 = vadd.f32 %v6067_v59, %v5897_v43  ;;  %v4659_v26 = vpop.f32.mrb[3].mxu0 }
 0x215   : > { %v4822_v35 = vmul.f32 %v6099_v10, %v8408_v2  ;;  %v6101_v34 = vadd.f32 %v4659_v26, %v1908_v16 }
 0x216   : > { %v4863_v6 = vadd.f32 %v8413_v36, %v4824_v38  ;;  %v4825_v49 = vmul.f32 %v6100_v37, %v8408_v2 }
 0x217   : > { %v4861_v23 = vadd.f32 %v8413_v36, %v4822_v35  ;;  %v4823_v25 = vmul.f32 %v6101_v34, %v8408_v2 }
 0x218   : > { %v4895_v1 = vmax.f32 %v4863_v6, 0.0  ;;  %v4864_v7 = vadd.f32 %v8413_v36, %v4825_v49 }
 0x219   : > { %v4893_v61 = vmax.f32 %v4861_v23, 0.0  ;;  %v4862_v22 = vadd.f32 %v8413_v36, %v4823_v25  ;;  %v6070_v44 = vpop.f32.mrb[4].mxu0 }
 0x21a   : > { %4927 = vst [vmem:[%s8425_s30 + $0x10] sm:$0xff] %v4895_v1  ;;  %v4896_v3 = vmax.f32 %v4864_v7, 0.0  ;;  %v6102_v51 = vadd.f32 %v6070_v44, %v5900_v58  ;;  %v4672_v28 = vpop.f32.mrb[5].mxu0 }
 0x21b   : > { %4925 = vst [vmem:[%s8425_s30] sm:$0xff] %v4893_v61  ;;  %v4894_v45 = vmax.f32 %v4862_v22, 0.0  ;;  %v6103_v27 = vadd.f32 %v4672_v28, %v1921_v50  ;;  %v6071_v53 = vpop.f32.mrb[6].mxu0 }
 0x21c   : > { %4928 = vst [vmem:[%s8425_s30 + $0x18] sm:$0xff] %v4896_v3  ;;  %v4828_v21 = vmul.f32 %v6102_v51, %v8408_v2  ;;  %v6104_v47 = vadd.f32 %v6071_v53, %v5901_v54  ;;  %v4675_v46 = vpop.f32.mrb[7].mxu0 }
 0x21d   : > { %4926 = vst [vmem:[%s8425_s30 + $0x8] sm:$0xff] %v4894_v45  ;;  %v4826_v15 = vmul.f32 %v6103_v27, %v8408_v2  ;;  %v6105_v60 = vadd.f32 %v4675_v46, %v1924_v18 }
 0x21e   : > { %v4867_v20 = vadd.f32 %v8413_v36, %v4828_v21  ;;  %v4829_v42 = vmul.f32 %v6104_v47, %v8408_v2 }
 0x21f   : > { %v4865_v33 = vadd.f32 %v8413_v36, %v4826_v15  ;;  %v4827_v12 = vmul.f32 %v6105_v60, %v8408_v2 }
 0x220   : > { %v4899_v31 = vmax.f32 %v4867_v20, 0.0  ;;  %v4868_v57 = vadd.f32 %v8413_v36, %v4829_v42 }
 0x221   : > { %v4897_v8 = vmax.f32 %v4865_v33, 0.0  ;;  %v4866_v48 = vadd.f32 %v8413_v36, %v4827_v12  ;;  %v6074_v62 = vpop.f32.mrb[8].mxu0 }
 0x222   : > { %4931 = vst [vmem:[%s8425_s30 + $0x30] sm:$0xff] %v4899_v31  ;;  %v4900_v56 = vmax.f32 %v4868_v57, 0.0  ;;  %v6106_v40 = vadd.f32 %v6074_v62, %v5904_v11  ;;  %v4688_v13 = vpop.f32.mrb[9].mxu0 }
 0x223   : > { %4929 = vst [vmem:[%s8425_s30 + $0x20] sm:$0xff] %v4897_v8  ;;  %v4898_v17 = vmax.f32 %v4866_v48, 0.0  ;;  %v6107_v30 = vadd.f32 %v4688_v13, %v1937_v32  ;;  %v6075_v9 = vpop.f32.mrb[10].mxu0 }
 0x224   : > { %4932 = vst [vmem:[%s8425_s30 + $0x38] sm:$0xff] %v4900_v56  ;;  %v4832_v14 = vmul.f32 %v6106_v40, %v8408_v2  ;;  %v6108_v63 = vadd.f32 %v6075_v9, %v8392_v24  ;;  %v4691_v4 = vpop.f32.mrb[11].mxu0 }
 0x225   : > { %4930 = vst [vmem:[%s8425_s30 + $0x28] sm:$0xff] %v4898_v17  ;;  %v4830_v43 = vmul.f32 %v6107_v30, %v8408_v2  ;;  %v6109_v16 = vadd.f32 %v4691_v4, %v8394_v19 }
 0x226   : > { %v4871_v58 = vadd.f32 %v8413_v36, %v4832_v14  ;;  %v4833_v50 = vmul.f32 %v6108_v63, %v8408_v2 }
 0x227   : > { %v4869_v54 = vadd.f32 %v8413_v36, %v4830_v43  ;;  %v4831_v18 = vmul.f32 %v6109_v16, %v8408_v2 }
 0x228   : > { %v4903_v11 = vmax.f32 %v4871_v58, 0.0  ;;  %v4872_v32 = vadd.f32 %v8413_v36, %v4833_v50 }
 0x229   : > { %v4901_v24 = vmax.f32 %v4869_v54, 0.0  ;;  %v4870_v52 = vadd.f32 %v8413_v36, %v4831_v18  ;;  %v6078_v39 = vpop.f32.mrb[12].mxu0 }
 0x22a   : > { %4935 = vst [vmem:[%s8425_s30 + $0x50] sm:$0xff] %v4903_v11  ;;  %v4904_v0 = vmax.f32 %v4872_v32, 0.0  ;;  %v6110_v19 = vadd.f32 %v6078_v39, %v8396_v5  ;;  %v4704_v10 = vpop.f32.mrb[13].mxu0 }
 0x22b   : > { %4933 = vst [vmem:[%s8425_s30 + $0x40] sm:$0xff] %v4901_v24  ;;  %v4902_v59 = vmax.f32 %v4870_v52, 0.0  ;;  %v6111_v38 = vadd.f32 %v4704_v10, %v8398_v55  ;;  %v6079_v37 = vpop.f32.mrb[14].mxu0 }
 0x22c   : > { %4936 = vst [vmem:[%s8425_s30 + $0x58] sm:$0xff] %v4904_v0  ;;  %v4836_v26 = vmul.f32 %v6110_v19, %v8408_v2  ;;  %v6112_v35 = vadd.f32 %v6079_v37, %v8400_v29  ;;  %v4707_v34 = vpop.f32.mrb[15].mxu0 }
 0x22d   : > { %4934 = vst [vmem:[%s8425_s30 + $0x48] sm:$0xff] %v4902_v59  ;;  %v4834_v6 = vmul.f32 %v6111_v38, %v8408_v2  ;;  %v6113_v49 = vadd.f32 %v4707_v34, %v8402_v41 }
 0x22e   : > { %v4875_v5 = vadd.f32 %v8413_v36, %v4836_v26  ;;  %v4837_v23 = vmul.f32 %v6112_v35, %v8408_v2 }
 0x22f   : > { %v4873_v55 = vadd.f32 %v8413_v36, %v4834_v6  ;;  %v4835_v25 = vmul.f32 %v6113_v49, %v8408_v2 }
 0x230   : > { %v4907_v1 = vmax.f32 %v4875_v5, 0.0  ;;  %v4876_v7 = vadd.f32 %v8413_v36, %v4837_v23 }
 0x231   : > { %v4905_v29 = vmax.f32 %v4873_v55, 0.0  ;;  %v4874_v61 = vadd.f32 %v8413_v36, %v4835_v25  ;;  %v6082_v22 = vpop.f32.mrb[16].mxu0 }
 0x232   : > { %4939 = vst [vmem:[%s8425_s30 + $0x70] sm:$0xff] %v4907_v1  ;;  %v4908_v44 = vmax.f32 %v4876_v7, 0.0  ;;  %v5946_v41 = vpop.f32.mrb[16].mxu1  ;;  %v4720_v3 = vpop.f32.mrb[17].mxu0 }
 0x233   : > { %4937 = vst [vmem:[%s8425_s30 + $0x60] sm:$0xff] %v4905_v29  ;;  %v4906_v51 = vmax.f32 %v4874_v61, 0.0  ;;  %v6114_v28 = vadd.f32 %v6082_v22, %v5946_v41  ;;  %v2695_v45 = vpop.f32.mrb[17].mxu1  ;;  %v6083_v27 = vpop.f32.mrb[18].mxu0 }
 0x234   : > { %4940 = vst [vmem:[%s8425_s30 + $0x78] sm:$0xff] %v4908_v44  ;;  %v6115_v53 = vadd.f32 %v4720_v3, %v2695_v45  ;;  %v5947_v21 = vpop.f32.mrb[18].mxu1  ;;  %v4723_v47 = vpop.f32.mrb[19].mxu0 }
 0x235   : > { %4938 = vst [vmem:[%s8425_s30 + $0x68] sm:$0xff] %v4906_v51  ;;  %v4840_v46 = vmul.f32 %v6114_v28, %v8408_v2  ;;  %v6116_v15 = vadd.f32 %v6083_v27, %v5947_v21  ;;  %v2698_v60 = vpop.f32.mrb[19].mxu1 }
 0x236   : > { %v4838_v20 = vmul.f32 %v6115_v53, %v8408_v2  ;;  %v6117_v42 = vadd.f32 %v4723_v47, %v2698_v60 }
 0x237   : > { %v4879_v33 = vadd.f32 %v8413_v36, %v4840_v46  ;;  %v4841_v12 = vmul.f32 %v6116_v15, %v8408_v2 }
 0x238   : > { %v4877_v31 = vadd.f32 %v8413_v36, %v4838_v20  ;;  %v4839_v57 = vmul.f32 %v6117_v42, %v8408_v2 }
 0x239   : > { %v4911_v8 = vmax.f32 %v4879_v33, 0.0  ;;  %v4880_v48 = vadd.f32 %v8413_v36, %v4841_v12  ;;  %v6086_v62 = vpop.f32.mrb[20].mxu0 }
 0x23a   : > { %v4909_v56 = vmax.f32 %v4877_v31, 0.0  ;;  %v4878_v40 = vadd.f32 %v8413_v36, %v4839_v57  ;;  %v5950_v13 = vpop.f32.mrb[20].mxu1  ;;  %v4736_v17 = vpop.f32.mrb[21].mxu0 }
 0x23b   : > { %4943 = vst [vmem:[%s8425_s30 + $0x90] sm:$0xff] %v4911_v8  ;;  %v4912_v30 = vmax.f32 %v4880_v48, 0.0  ;;  %v6118_v9 = vadd.f32 %v6086_v62, %v5950_v13  ;;  %v2711_v14 = vpop.f32.mrb[21].mxu1  ;;  %v6087_v63 = vpop.f32.mrb[22].mxu0 }
 0x23c   : > { %4941 = vst [vmem:[%s8425_s30 + $0x80] sm:$0xff] %v4909_v56  ;;  %v4910_v4 = vmax.f32 %v4878_v40, 0.0  ;;  %v6119_v43 = vadd.f32 %v4736_v17, %v2711_v14  ;;  %v5951_v16 = vpop.f32.mrb[22].mxu1  ;;  %v4739_v58 = vpop.f32.mrb[23].mxu0 }
 0x23d   : > { %4944 = vst [vmem:[%s8425_s30 + $0x98] sm:$0xff] %v4912_v30  ;;  %v4844_v50 = vmul.f32 %v6118_v9, %v8408_v2  ;;  %v6120_v54 = vadd.f32 %v6087_v63, %v5951_v16  ;;  %v2714_v18 = vpop.f32.mrb[23].mxu1 }
 0x23e   : > { %4942 = vst [vmem:[%s8425_s30 + $0x88] sm:$0xff] %v4910_v4  ;;  %v4842_v11 = vmul.f32 %v6119_v43, %v8408_v2  ;;  %v6121_v32 = vadd.f32 %v4739_v58, %v2714_v18 }
 0x23f   : > { %v4883_v24 = vadd.f32 %v8413_v36, %v4844_v50  ;;  %v4845_v52 = vmul.f32 %v6120_v54, %v8408_v2 }
 0x240   : > { %v4881_v39 = vadd.f32 %v8413_v36, %v4842_v11  ;;  %v4843_v0 = vmul.f32 %v6121_v32, %v8408_v2 }
 0x241   : > { %v4915_v19 = vmax.f32 %v4883_v24, 0.0  ;;  %v4884_v10 = vadd.f32 %v8413_v36, %v4845_v52  ;;  %v6090_v59 = vpop.f32.mrb[24].mxu0 }
 0x242   : > { %v4913_v38 = vmax.f32 %v4881_v39, 0.0  ;;  %v4882_v37 = vadd.f32 %v8413_v36, %v4843_v0  ;;  %v5954_v26 = vpop.f32.mrb[24].mxu1  ;;  %v4752_v35 = vpop.f32.mrb[25].mxu0 }
 0x243   : > { %4947 = vst [vmem:[%s8425_s30 + $0xb0] sm:$0xff] %v4915_v19  ;;  %v4916_v34 = vmax.f32 %v4884_v10, 0.0  ;;  %v6122_v6 = vadd.f32 %v6090_v59, %v5954_v26  ;;  %v2727_v49 = vpop.f32.mrb[25].mxu1  ;;  %v6091_v5 = vpop.f32.mrb[26].mxu0 }
 0x244   : > { %4945 = vst [vmem:[%s8425_s30 + $0xa0] sm:$0xff] %v4913_v38  ;;  %v4914_v23 = vmax.f32 %v4882_v37, 0.0  ;;  %v6123_v55 = vadd.f32 %v4752_v35, %v2727_v49  ;;  %v5955_v25 = vpop.f32.mrb[26].mxu1  ;;  %v4755_v1 = vpop.f32.mrb[27].mxu0 }
 0x245   : > { %4948 = vst [vmem:[%s8425_s30 + $0xb8] sm:$0xff] %v4916_v34  ;;  %v4848_v7 = vmul.f32 %v6122_v6, %v8408_v2  ;;  %v6124_v29 = vadd.f32 %v6091_v5, %v5955_v25  ;;  %v2730_v61 = vpop.f32.mrb[27].mxu1 }
 0x246   : > { %4946 = vst [vmem:[%s8425_s30 + $0xa8] sm:$0xff] %v4914_v23  ;;  %v4846_v22 = vmul.f32 %v6123_v55, %v8408_v2  ;;  %v6125_v44 = vadd.f32 %v4755_v1, %v2730_v61 }
 0x247   : > { %v4887_v41 = vadd.f32 %v8413_v36, %v4848_v7  ;;  %v4849_v3 = vmul.f32 %v6124_v29, %v8408_v2 }
 0x248   : > { %v4885_v51 = vadd.f32 %v8413_v36, %v4846_v22  ;;  %v4847_v28 = vmul.f32 %v6125_v44, %v8408_v2 }
 0x249   : > { %v4919_v45 = vmax.f32 %v4887_v41, 0.0  ;;  %v4888_v27 = vadd.f32 %v8413_v36, %v4849_v3  ;;  %v6094_v53 = vpop.f32.mrb[28].mxu0 }
 0x24a   : > { %v4917_v21 = vmax.f32 %v4885_v51, 0.0  ;;  %v4886_v47 = vadd.f32 %v8413_v36, %v4847_v28  ;;  %v5958_v46 = vpop.f32.mrb[28].mxu1  ;;  %v4768_v15 = vpop.f32.mrb[29].mxu0 }
 0x24b   : > { %4951 = vst [vmem:[%s8425_s30 + $0xd0] sm:$0xff] %v4919_v45  ;;  %v4920_v60 = vmax.f32 %v4888_v27, 0.0  ;;  %v6126_v20 = vadd.f32 %v6094_v53, %v5958_v46  ;;  %v2743_v42 = vpop.f32.mrb[29].mxu1  ;;  %v6095_v33 = vpop.f32.mrb[30].mxu0 }
 0x24c   : > { %4949 = vst [vmem:[%s8425_s30 + $0xc0] sm:$0xff] %v4917_v21  ;;  %v4918_v12 = vmax.f32 %v4886_v47, 0.0  ;;  %v6127_v31 = vadd.f32 %v4768_v15, %v2743_v42  ;;  %v5959_v57 = vpop.f32.mrb[30].mxu1  ;;  %v4771_v8 = vpop.f32.mrb[31].mxu0 }
 0x24d   : > { %4952 = vst [vmem:[%s8425_s30 + $0xd8] sm:$0xff] %v4920_v60  ;;  %v4852_v48 = vmul.f32 %v6126_v20, %v8408_v2  ;;  %v6128_v62 = vadd.f32 %v6095_v33, %v5959_v57  ;;  %v2746_v56 = vpop.f32.mrb[31].mxu1 }
 0x24e   : > { %4950 = vst [vmem:[%s8425_s30 + $0xc8] sm:$0xff] %v4918_v12  ;;  %v4850_v40 = vmul.f32 %v6127_v31, %v8408_v2  ;;  %v6129_v13 = vadd.f32 %v4771_v8, %v2746_v56 }
 0x24f   : > { %v4891_v17 = vadd.f32 %v8413_v36, %v4852_v48  ;;  %v4853_v30 = vmul.f32 %v6128_v62, %v8408_v2 }
 0x250   : > { %v4889_v9 = vadd.f32 %v8413_v36, %v4850_v40  ;;  %v4851_v14 = vmul.f32 %v6129_v13, %v8408_v2 }
 0x251   : > { %v4923_v63 = vmax.f32 %v4891_v17, 0.0  ;;  %v4892_v4 = vadd.f32 %v8413_v36, %v4853_v30 }
 0x252   : > { %v4921_v43 = vmax.f32 %v4889_v9, 0.0  ;;  %v4890_v16 = vadd.f32 %v8413_v36, %v4851_v14 }
 0x253   : > { %4955 = vst [vmem:[%s8425_s30 + $0xf0] sm:$0xff] %v4923_v63  ;;  %v4924_v58 = vmax.f32 %v4892_v4, 0.0 }
 0x254   : > { %4953 = vst [vmem:[%s8425_s30 + $0xe0] sm:$0xff] %v4921_v43  ;;  %v4922_v2 = vmax.f32 %v4890_v16, 0.0 }
 0x255   : > { %4956 = vst [vmem:[%s8425_s30 + $0xf8] sm:$0xff] %v4924_v58 }
 0x256   : > { %4954 = vst [vmem:[%s8425_s30 + $0xe8] sm:$0xff] %v4922_v2 }
 0x257   : > { %6540 = shalt.err (!%p6537_p5)
}
 0x258   : > { %s6541_s14 = scalar_lea.hbm %s8523_s9, 4096  ;;  %s6545_s24 = scalar_lea.hbm %s8582_s4, 8192 }
 0x259   : > { %p6542_p6 = scmp.ne.s32.totalorder %s8523_s9, %s6541_s14  ;;  %p6546_p10 = scmp.lt.u32.totalorder %s8523_s9, %s8582_s4 }
 0x25a   : > { %p6547_p11 = scmp.lt.u32.totalorder %s6545_s24, %s6541_s14  ;;  %p6549_p13 = scmp.lt.u32.totalorder %s6541_s14, %s8523_s9 }
 0x25b   : > { %p6543_p7 = pnand %p6542_p6, %p6675_p4 }
 0x25c   : > { %p6548_p12 = por %p6547_p11, %p6546_p10 }
 0x25d   : > { %p6544_p9 = pneg %p6543_p7 }
 0x25e   : > { %p6550_p0 = por %p6549_p13, %p6548_p12 }
 0x260   : > { %p6551_p1 = pnand %p6550_p0, %p6544_p9 }
 0x262   : > { %6554 = shalt.err (!%p6551_p1)
}
 0x263   : > { %s6608_s30 = smov 128   ;;  %s6609_s5 = smov 8  }
 0x264   : > { %6365 = dma.vmem_to_hbm [thread:$0]  (%p6675_p4), %s8525_s6, 4096, %s8523_s9, %s8532_s18, %s6608_s30, %s6608_s30, %s6609_s5  }
 0x265 PF: > { %p6371_p2 = scmp.ge.s32.totalorder %s6605_s20, 2  ;;  %s4987_s7 = sand.u32 1, %s6585_s15  }
 0x266   : > { %s4988_s8 = scalar_lea.sflag [#allocation3], %s4987_s7 }
 0x267   : > { %p6368_p3 = pnand %p6371_p2, %p6682_p8 }
 0x269   : > { %6580 = dma.done.wait (!%p6368_p3), %s4988_s8, 4096  }
 0x26a   : > { %6582 = vsyncadd (!%p6368_p3), %s4988_s8, 4294963200  ;;  %s17_s20 = sadd.s32 1, %s6605_s20   ;;  %s8652_s15 = smov %s6589_s16 }
 0x26b   : > { %p14_p5 = scmp.ge.s32.totalorder %s17_s20, 4   ;;  %s8653_s16 = smov %s6593_s17 }
 0x26c   : > { %s8654_s17 = smov %s6688_s28  ;;  %s8655_s18 = smov %s6601_s19 }
 0x26d   : > { %s8656_s19 = smov %s8658_s23  ;;  %16 = sbr.rel (!%p14_p5) target bundleno = 4 (0x4), region = 90 }
 0x274   :  { %4993 = vsyncpa [#allocation3], 1 }
 0x275   :  { %4995 = vsyncpa [#allocation3 + $0x1], 1 }

</bundles_post_ra>
